<compile_context>
chip_gen: v5e
topology: v5e:2x2
jax: 0.10.0
libtpu: 0.0.40
codegen_flags: <defaults>
</compile_context>

<pallas_src>
import functools

import jax
import jax.numpy as jnp
from jax import lax
from jax.experimental import pallas as pl
from jax.experimental.pallas import tpu as pltpu


# --------------------------------------------------------------------------- kernel 1
# Fused: LeakyReLU + Conv2d(k4,s2,p1) -> ReLU + phase-decomposed ConvTranspose2d(k4,s2,p1)
#        -> per-batch BatchNorm partial statistics (sum, sum of squares).
def _down_up_stats_kernel(xp_ref, wd_ref, wu_ref, u_ref, psum_ref, psq_ref, dpad_ref,
                          *, Ho, Wo, cin, inner, outer):
    f32 = jnp.float32
    bf16 = jnp.bfloat16
    rows = Ho * Wo

    # ---- down path: LeakyReLU + conv as 4 tap-merged bf16 matmuls (one per input parity,
    #      K = 4*cin), f32 accumulation.  No im2col matrix ever hits HBM.
    d_acc = jnp.zeros((rows, inner), f32)
    for par in range(4):                                   # par = 2*ph + pw (input parity)
        xpar = xp_ref[0, par]                              # (HP, WP, cin) f32
        h = jnp.where(xpar >= 0, xpar, 0.2 * xpar)         # LeakyReLU(0.2) in f32 (v5e VALU)
        hb = h.astype(bf16)
        slab = jnp.concatenate(
            [hb[dh:dh + Ho, dw:dw + Wo, :] for dh in range(2) for dw in range(2)],
            axis=-1).reshape(rows, 4 * cin)
        d_acc = d_acc + jnp.dot(slab, wd_ref[par], preferred_element_type=f32)

    # ---- ReLU (f32) -> bf16 scratch.  Re-zero only the 1-pixel halo each step (interior is
    #      fully overwritten); done unconditionally so megacore sharding of the parallel
    #      batch axis (per-core scratch) stays correct.
    zrow = jnp.zeros((1, Wo + 2, inner), bf16)
    zcol = jnp.zeros((Ho + 2, 1, inner), bf16)
    dpad_ref[0:1, :, :] = zrow
    dpad_ref[Ho + 1:Ho + 2, :, :] = zrow
    dpad_ref[:, 0:1, :] = zcol
    dpad_ref[:, Wo + 1:Wo + 2, :] = zcol
    dpad_ref[1:Ho + 1, 1:Wo + 1, :] = (
        jnp.maximum(d_acc, 0.0).astype(bf16).reshape(Ho, Wo, inner))

    # ---- up path: ConvTranspose as 4 output-parity phases, each ONE K=4*inner bf16 matmul
    #      (no dilation zeros, 4x fewer MACs than the dilated stride-1 formulation).
    s = jnp.zeros((1, outer), f32)
    sq = jnp.zeros((1, outer), f32)
    for p in range(2):
        for q in range(2):
            slab = jnp.concatenate(
                [dpad_ref[p + dh:p + dh + Ho, q + dw:q + dw + Wo, :]
                 for dh in range(2) for dw in range(2)],
                axis=-1).reshape(rows, 4 * inner)
            u_acc = jnp.dot(slab, wu_ref[2 * p + q], preferred_element_type=f32)
            u_ref[0, 2 * p + q] = u_acc.astype(bf16).reshape(Ho, Wo, outer)
            s = s + jnp.sum(u_acc, axis=0, keepdims=True)
            sq = sq + jnp.sum(u_acc * u_acc, axis=0, keepdims=True)
    psum_ref[0] = s
    psq_ref[0] = sq


def down_up_stats(x_par, wd, wu, Ho, Wo):
    N, _, HP, WP, cin = x_par.shape
    inner = wd.shape[-1]
    outer = wu.shape[-1]
    kern = functools.partial(_down_up_stats_kernel, Ho=Ho, Wo=Wo, cin=cin,
                             inner=inner, outer=outer)
    return pl.pallas_call(
        kern,
        out_shape=(jax.ShapeDtypeStruct((N, 4, Ho, Wo, outer), jnp.bfloat16),
                   jax.ShapeDtypeStruct((N, 1, outer), jnp.float32),
                   jax.ShapeDtypeStruct((N, 1, outer), jnp.float32)),
        grid_spec=pltpu.PrefetchScalarGridSpec(
            num_scalar_prefetch=0,
            grid=(N,),
            in_specs=[
                pl.BlockSpec((1, 4, HP, WP, cin), lambda n: (n, 0, 0, 0, 0)),
                pl.BlockSpec((4, 4 * cin, inner), lambda n: (0, 0, 0)),
                pl.BlockSpec((4, 4 * inner, outer), lambda n: (0, 0, 0)),
            ],
            out_specs=[
                pl.BlockSpec((1, 4, Ho, Wo, outer), lambda n: (n, 0, 0, 0, 0)),
                pl.BlockSpec((1, 1, outer), lambda n: (n, 0, 0)),
                pl.BlockSpec((1, 1, outer), lambda n: (n, 0, 0)),
            ],
            scratch_shapes=[pltpu.VMEM((Ho + 2, Wo + 2, inner), jnp.bfloat16)],
        ),
        compiler_params=pltpu.CompilerParams(dimension_semantics=("parallel",)),
    )(x_par, wd, wu)


# --------------------------------------------------------------------------- kernel 2
# BatchNorm affine apply (pre-folded scale/shift) fused with the skip-connection write.
# Output layout is phase-interleaved (N, Ho, 2, Wo, 2*(cin+outer)) so the phase interleave
# is a free reshape; stores are direct lane-slice stores (no concat relayout).
def _bn_concat_kernel(x_ref, u_ref, scale_ref, shift_ref, o_ref, *, cin, outer):
    C = cin + outer
    scale = scale_ref[...]
    shift = shift_ref[...]
    for p in range(2):
        for q in range(2):
            o_ref[0, :, p, :, q * C:q * C + cin] = x_ref[0, :, p, :, q * cin:(q + 1) * cin]
            y = u_ref[0, 2 * p + q].astype(jnp.float32) * scale + shift
            o_ref[0, :, p, :, q * C + cin:(q + 1) * C] = y


def bn_concat(x_r, u, scale, shift):
    N, Ho, _, Wo, cin2 = x_r.shape
    cin = cin2 // 2
    outer = u.shape[-1]
    C = cin + outer
    kern = functools.partial(_bn_concat_kernel, cin=cin, outer=outer)
    return pl.pallas_call(
        kern,
        out_shape=jax.ShapeDtypeStruct((N, Ho, 2, Wo, 2 * C), jnp.float32),
        grid_spec=pltpu.PrefetchScalarGridSpec(
            num_scalar_prefetch=0,
            grid=(N,),
            in_specs=[
                pl.BlockSpec((1, Ho, 2, Wo, 2 * cin), lambda n: (n, 0, 0, 0, 0)),
                pl.BlockSpec((1, 4, Ho, Wo, outer), lambda n: (n, 0, 0, 0, 0)),
                pl.BlockSpec((1, outer), lambda n: (0, 0)),
                pl.BlockSpec((1, outer), lambda n: (0, 0)),
            ],
            out_specs=pl.BlockSpec((1, Ho, 2, Wo, 2 * C), lambda n: (n, 0, 0, 0, 0)),
        ),
        compiler_params=pltpu.CompilerParams(dimension_semantics=("parallel",)),
    )(x_r, u, scale, shift)


# --------------------------------------------------------------------------- forward pass

def unet_innermost_forward(x, params):
    """x: (N, input_nc, H, W) NCHW float32 (matches the PyTorch module interface)."""
    N, Cin, H, W = x.shape
    Wd = params["down_w"]            # (inner_nc, input_nc, 4, 4)  Conv2d weight (bias=False)
    Wt = params["up_w"]              # (inner_nc, outer_nc, 4, 4)  ConvTranspose2d weight
    gamma, beta = params["gamma"], params["beta"]
    inner, outer = Wd.shape[0], Wt.shape[1]
    Ho, Wo = H // 2, W // 2

    # ---- layout prep (cheap, O(|x|)): NHWC, pad 1, split into the 4 input-pixel parities
    #      so every window the down conv reads is a contiguous 2x2 slice.
    x_nhwc = jnp.transpose(x, (0, 2, 3, 1))
    x_pad = jnp.pad(x_nhwc, ((0, 0), (1, 1), (1, 1), (0, 0)))
    x_par = jnp.stack([x_pad[:, ph::2, pw::2, :]
                       for ph in range(2) for pw in range(2)], axis=1)   # (N,4,HP,WP,Cin)
    # skip-connection rows for kernel 2: a FREE reshape of x (no extra HBM materialization)
    x_r = x_nhwc.reshape(N, Ho, 2, Wo, 2 * Cin)

    # down-conv weights, tap-merged along K: parity (ph,pw) uses kernel taps (2dh+ph, 2dw+pw)
    wd = jnp.stack([
        jnp.concatenate([Wd[:, :, 2 * dh + ph, 2 * dw + pw].T
                         for dh in range(2) for dw in range(2)], axis=0)
        for ph in range(2) for pw in range(2)], axis=0).astype(jnp.bfloat16)  # (4,4*Cin,inner)
    # transposed-conv phase weights, tap-merged along K: output parity (p,q), tap (dh,dw)
    # uses kernel tap (3-p-2dh, 3-q-2dw); the flipped/dilated conv tensor is never built.
    wu = jnp.stack([
        jnp.concatenate([Wt[:, :, 3 - p - 2 * dh, 3 - q - 2 * dw]
                         for dh in range(2) for dw in range(2)], axis=0)
        for p in range(2) for q in range(2)], axis=0).astype(jnp.bfloat16)    # (4,4*inner,outer)

    u, psum, psq = down_up_stats(x_par, wd, wu, Ho, Wo)

    # ---- training-mode BatchNorm2d statistics; folding is a tiny (outer,)-sized computation
    m = jnp.float32(N * H * W)
    mean = jnp.sum(psum, axis=(0, 1)) / m
    var = jnp.maximum(jnp.sum(psq, axis=(0, 1)) / m - mean * mean, 0.0)
    inv = lax.rsqrt(var + 1e-5)
    scale = (gamma * inv).reshape(1, outer)
    shift = (beta - mean * gamma * inv).reshape(1, outer)

    # ---- normalize + skip-concat fused, phase-interleaved lane-dense output
    y = bn_concat(x_r, u, scale, shift)                    # (N, Ho, 2, Wo, 2*(Cin+outer))
    C = Cin + outer
    out = jnp.transpose(y.reshape(N, H, W, C), (0, 3, 1, 2))   # free reshape + one transpose
    return out


# --------------------------------------------------------------------------- pure-JAX reference

def reference_forward(x, params):
    Wd, Wt = params["down_w"], params["up_w"]
    gamma, beta = params["gamma"], params["beta"]
    h = jnp.where(x >= 0, x, 0.2 * x)
    d = lax.conv_general_dilated(h, Wd, window_strides=(2, 2), padding=((1, 1), (1, 1)),
                                 dimension_numbers=("NCHW", "OIHW", "NCHW"))
    r = jnp.maximum(d, 0.0)
    wc = jnp.flip(Wt, axis=(2, 3)).transpose(1, 0, 2, 3)
    u = lax.conv_general_dilated(r, wc, window_strides=(1, 1), padding=((2, 2), (2, 2)),
                                 lhs_dilation=(2, 2),
                                 dimension_numbers=("NCHW", "OIHW", "NCHW"))
    mean = u.mean(axis=(0, 2, 3), keepdims=True)
    var = jnp.square(u - mean).mean(axis=(0, 2, 3), keepdims=True)
    y = (u - mean) * lax.rsqrt(var + 1e-5) * gamma.reshape(1, -1, 1, 1) + beta.reshape(1, -1, 1, 1)
    return jnp.concatenate([x, y], axis=1)


# --------------------------------------------------------------------------- main

if __name__ == "__main__":
    # innermost UnetSkipConnectionBlock: input_nc = outer_nc
    N, outer_nc, inner_nc, H, W = 2, 4, 8, 16, 16
    input_nc = outer_nc

    key = jax.random.PRNGKey(0)
    kx, kd, ku = jax.random.split(key, 3)
    x = jax.random.normal(kx, (N, input_nc, H, W), dtype=jnp.float32)

    params = {
        # Conv2d(input_nc, inner_nc, 4, stride=2, padding=1, bias=False) -> OIHW
        "down_w": 0.1 * jax.random.normal(kd, (inner_nc, input_nc, 4, 4), dtype=jnp.float32),
        # ConvTranspose2d(inner_nc, outer_nc, 4, stride=2, padding=1, bias=False) -> (in, out, kh, kw)
        "up_w": 0.1 * jax.random.normal(ku, (inner_nc, outer_nc, 4, 4), dtype=jnp.float32),
        # BatchNorm2d(outer_nc) affine params (PyTorch defaults)
        "gamma": jnp.ones((outer_nc,), dtype=jnp.float32),
        "beta": jnp.zeros((outer_nc,), dtype=jnp.float32),
    }

    out = jax.jit(unet_innermost_forward)(x, params)
    out = jax.block_until_ready(out)
    assert out.shape == (N, input_nc + outer_nc, H, W), out.shape

    ref = reference_forward(x, params)
    # skip-connection lanes pass through untouched in f32 -> exact
    skip_err = float(jnp.max(jnp.abs(out[:, :input_nc] - x)))
    assert skip_err < 1e-6, skip_err
    # BN(up-conv) lanes go through bf16 MXU operands + bf16 u storage (f32 accumulation);
    # tolerance below is the bf16 error budget vs. the pure-f32 reference.
    err = float(jnp.max(jnp.abs(out - ref)))
    mean_err = float(jnp.mean(jnp.abs(out - ref)))
    assert err < 1.5e-1 and mean_err < 1e-2, (err, mean_err)

    # TODO(synk): outermost / middle UnetSkipConnectionBlock variants (submodule recursion,
    # Tanh, Dropout) are not instantiated here; they compose the same fused kernels recursively.
    print("KERNEL_OK")
</pallas_src>

<mosaic_0001>
module attributes {stable_mosaic.version = 11 : i64} {
  func.func @_down_up_stats_kernel(%arg0: i32, %arg1: memref<1x4x9x9x4xf32, #tpu.memory_space<vmem>>, %arg2: memref<4x16x8xbf16, #tpu.memory_space<vmem>>, %arg3: memref<4x32x4xbf16, #tpu.memory_space<vmem>>, %arg4: memref<1x4x8x8x4xbf16, #tpu.memory_space<vmem>>, %arg5: memref<1x1x4xf32, #tpu.memory_space<vmem>>, %arg6: memref<1x1x4xf32, #tpu.memory_space<vmem>>, %arg7: memref<10x10x8xbf16, #tpu.memory_space<vmem>>) attributes {dimension_semantics = [#tpu.dimension_semantics<parallel>], iteration_bounds = array<i64: 2>, scalar_prefetch = 0 : i64, scratch_operands = 1 : i64, tpu.core_type = #tpu.core_type<tc>, window_params = [{transform_indices = @transform_0, window_bounds = array<i64: 1, 4, 9, 9, 4>}, {pipeline_mode = #tpu.pipeline_mode<synchronous>, transform_indices = @transform_1, window_bounds = array<i64: 4, 16, 8>}, {pipeline_mode = #tpu.pipeline_mode<synchronous>, transform_indices = @transform_2, window_bounds = array<i64: 4, 32, 4>}, {transform_indices = @transform_3, window_bounds = array<i64: 1, 4, 8, 8, 4>}, {transform_indices = @transform_4, window_bounds = array<i64: 1, 1, 4>}, {transform_indices = @transform_5, window_bounds = array<i64: 1, 1, 4>}]} {
    %cst = arith.constant 0.000000e+00 : f32
    %0 = vector.broadcast %cst : f32 to vector<64x8xf32>
    %c0 = arith.constant 0 : index
    %c0_0 = arith.constant 0 : index
    %c0_1 = arith.constant 0 : index
    %c0_2 = arith.constant 0 : index
    %c0_3 = arith.constant 0 : index
    %1 = vector.load %arg1[%c0, %c0_0, %c0_1, %c0_2, %c0_3] : memref<1x4x9x9x4xf32, #tpu.memory_space<vmem>>, vector<1x1x9x9x4xf32>
    %2 = vector.shape_cast %1 : vector<1x1x9x9x4xf32> to vector<9x9x4xf32>
    %cst_4 = arith.constant 0.000000e+00 : f32
    %3 = vector.broadcast %cst_4 : f32 to vector<9x9x4xf32>
    %4 = arith.cmpf oge, %2, %3 : vector<9x9x4xf32>
    %cst_5 = arith.constant 2.000000e-01 : f32
    %5 = vector.broadcast %cst_5 : f32 to vector<9x9x4xf32>
    %6 = arith.mulf %5, %2 : vector<9x9x4xf32>
    %7 = arith.select %4, %2, %6 : vector<9x9x4xi1>, vector<9x9x4xf32>
    %8 = arith.truncf %7 : vector<9x9x4xf32> to vector<9x9x4xbf16>
    %9 = vector.extract_strided_slice %8 {offsets = [0, 0, 0], sizes = [8, 8, 4], strides = [1, 1, 1]} : vector<9x9x4xbf16> to vector<8x8x4xbf16>
    %10 = vector.extract_strided_slice %8 {offsets = [0, 1, 0], sizes = [8, 8, 4], strides = [1, 1, 1]} : vector<9x9x4xbf16> to vector<8x8x4xbf16>
    %11 = vector.extract_strided_slice %8 {offsets = [1, 0, 0], sizes = [8, 8, 4], strides = [1, 1, 1]} : vector<9x9x4xbf16> to vector<8x8x4xbf16>
    %12 = vector.extract_strided_slice %8 {offsets = [1, 1, 0], sizes = [8, 8, 4], strides = [1, 1, 1]} : vector<9x9x4xbf16> to vector<8x8x4xbf16>
    %13 = tpu.concatenate %9, %10, %11, %12 in 2 : vector<8x8x4xbf16>, vector<8x8x4xbf16>, vector<8x8x4xbf16>, vector<8x8x4xbf16> -> vector<8x8x16xbf16>
    %14 = vector.shape_cast %13 : vector<8x8x16xbf16> to vector<64x16xbf16>
    %c0_6 = arith.constant 0 : index
    %c0_7 = arith.constant 0 : index
    %c0_8 = arith.constant 0 : index
    %15 = vector.load %arg2[%c0_6, %c0_7, %c0_8] : memref<4x16x8xbf16, #tpu.memory_space<vmem>>, vector<1x16x8xbf16>
    %16 = vector.shape_cast %15 : vector<1x16x8xbf16> to vector<16x8xbf16>
    %cst_9 = arith.constant dense<0.000000e+00> : vector<64x8xf32>
    %17 = tpu.matmul %14, %16, %cst_9 {dimension_numbers = #tpu.dot_dimension_numbers<[1], [0], [0], [1], [0, 0, 1, 1], [], []>} : vector<64x16xbf16>, vector<16x8xbf16>, vector<64x8xf32> -> vector<64x8xf32>
    %18 = arith.addf %0, %17 : vector<64x8xf32>
    %c0_10 = arith.constant 0 : index
    %c1 = arith.constant 1 : index
    %c0_11 = arith.constant 0 : index
    %c0_12 = arith.constant 0 : index
    %c0_13 = arith.constant 0 : index
    %19 = vector.load %arg1[%c0_10, %c1, %c0_11, %c0_12, %c0_13] : memref<1x4x9x9x4xf32, #tpu.memory_space<vmem>>, vector<1x1x9x9x4xf32>
    %20 = vector.shape_cast %19 : vector<1x1x9x9x4xf32> to vector<9x9x4xf32>
    %cst_14 = arith.constant 0.000000e+00 : f32
    %21 = vector.broadcast %cst_14 : f32 to vector<9x9x4xf32>
    %22 = arith.cmpf oge, %20, %21 : vector<9x9x4xf32>
    %cst_15 = arith.constant 2.000000e-01 : f32
    %23 = vector.broadcast %cst_15 : f32 to vector<9x9x4xf32>
    %24 = arith.mulf %23, %20 : vector<9x9x4xf32>
    %25 = arith.select %22, %20, %24 : vector<9x9x4xi1>, vector<9x9x4xf32>
    %26 = arith.truncf %25 : vector<9x9x4xf32> to vector<9x9x4xbf16>
    %27 = vector.extract_strided_slice %26 {offsets = [0, 0, 0], sizes = [8, 8, 4], strides = [1, 1, 1]} : vector<9x9x4xbf16> to vector<8x8x4xbf16>
    %28 = vector.extract_strided_slice %26 {offsets = [0, 1, 0], sizes = [8, 8, 4], strides = [1, 1, 1]} : vector<9x9x4xbf16> to vector<8x8x4xbf16>
    %29 = vector.extract_strided_slice %26 {offsets = [1, 0, 0], sizes = [8, 8, 4], strides = [1, 1, 1]} : vector<9x9x4xbf16> to vector<8x8x4xbf16>
    %30 = vector.extract_strided_slice %26 {offsets = [1, 1, 0], sizes = [8, 8, 4], strides = [1, 1, 1]} : vector<9x9x4xbf16> to vector<8x8x4xbf16>
    %31 = tpu.concatenate %27, %28, %29, %30 in 2 : vector<8x8x4xbf16>, vector<8x8x4xbf16>, vector<8x8x4xbf16>, vector<8x8x4xbf16> -> vector<8x8x16xbf16>
    %32 = vector.shape_cast %31 : vector<8x8x16xbf16> to vector<64x16xbf16>
    %c1_16 = arith.constant 1 : index
    %c0_17 = arith.constant 0 : index
    %c0_18 = arith.constant 0 : index
    %33 = vector.load %arg2[%c1_16, %c0_17, %c0_18] : memref<4x16x8xbf16, #tpu.memory_space<vmem>>, vector<1x16x8xbf16>
    %34 = vector.shape_cast %33 : vector<1x16x8xbf16> to vector<16x8xbf16>
    %cst_19 = arith.constant dense<0.000000e+00> : vector<64x8xf32>
    %35 = tpu.matmul %32, %34, %cst_19 {dimension_numbers = #tpu.dot_dimension_numbers<[1], [0], [0], [1], [0, 0, 1, 1], [], []>} : vector<64x16xbf16>, vector<16x8xbf16>, vector<64x8xf32> -> vector<64x8xf32>
    %36 = arith.addf %18, %35 : vector<64x8xf32>
    %c0_20 = arith.constant 0 : index
    %c2 = arith.constant 2 : index
    %c0_21 = arith.constant 0 : index
    %c0_22 = arith.constant 0 : index
    %c0_23 = arith.constant 0 : index
    %37 = vector.load %arg1[%c0_20, %c2, %c0_21, %c0_22, %c0_23] : memref<1x4x9x9x4xf32, #tpu.memory_space<vmem>>, vector<1x1x9x9x4xf32>
    %38 = vector.shape_cast %37 : vector<1x1x9x9x4xf32> to vector<9x9x4xf32>
    %cst_24 = arith.constant 0.000000e+00 : f32
    %39 = vector.broadcast %cst_24 : f32 to vector<9x9x4xf32>
    %40 = arith.cmpf oge, %38, %39 : vector<9x9x4xf32>
    %cst_25 = arith.constant 2.000000e-01 : f32
    %41 = vector.broadcast %cst_25 : f32 to vector<9x9x4xf32>
    %42 = arith.mulf %41, %38 : vector<9x9x4xf32>
    %43 = arith.select %40, %38, %42 : vector<9x9x4xi1>, vector<9x9x4xf32>
    %44 = arith.truncf %43 : vector<9x9x4xf32> to vector<9x9x4xbf16>
    %45 = vector.extract_strided_slice %44 {offsets = [0, 0, 0], sizes = [8, 8, 4], strides = [1, 1, 1]} : vector<9x9x4xbf16> to vector<8x8x4xbf16>
    %46 = vector.extract_strided_slice %44 {offsets = [0, 1, 0], sizes = [8, 8, 4], strides = [1, 1, 1]} : vector<9x9x4xbf16> to vector<8x8x4xbf16>
    %47 = vector.extract_strided_slice %44 {offsets = [1, 0, 0], sizes = [8, 8, 4], strides = [1, 1, 1]} : vector<9x9x4xbf16> to vector<8x8x4xbf16>
    %48 = vector.extract_strided_slice %44 {offsets = [1, 1, 0], sizes = [8, 8, 4], strides = [1, 1, 1]} : vector<9x9x4xbf16> to vector<8x8x4xbf16>
    %49 = tpu.concatenate %45, %46, %47, %48 in 2 : vector<8x8x4xbf16>, vector<8x8x4xbf16>, vector<8x8x4xbf16>, vector<8x8x4xbf16> -> vector<8x8x16xbf16>
    %50 = vector.shape_cast %49 : vector<8x8x16xbf16> to vector<64x16xbf16>
    %c2_26 = arith.constant 2 : index
    %c0_27 = arith.constant 0 : index
    %c0_28 = arith.constant 0 : index
    %51 = vector.load %arg2[%c2_26, %c0_27, %c0_28] : memref<4x16x8xbf16, #tpu.memory_space<vmem>>, vector<1x16x8xbf16>
    %52 = vector.shape_cast %51 : vector<1x16x8xbf16> to vector<16x8xbf16>
    %cst_29 = arith.constant dense<0.000000e+00> : vector<64x8xf32>
    %53 = tpu.matmul %50, %52, %cst_29 {dimension_numbers = #tpu.dot_dimension_numbers<[1], [0], [0], [1], [0, 0, 1, 1], [], []>} : vector<64x16xbf16>, vector<16x8xbf16>, vector<64x8xf32> -> vector<64x8xf32>
    %54 = arith.addf %36, %53 : vector<64x8xf32>
    %c0_30 = arith.constant 0 : index
    %c3 = arith.constant 3 : index
    %c0_31 = arith.constant 0 : index
    %c0_32 = arith.constant 0 : index
    %c0_33 = arith.constant 0 : index
    %55 = vector.load %arg1[%c0_30, %c3, %c0_31, %c0_32, %c0_33] : memref<1x4x9x9x4xf32, #tpu.memory_space<vmem>>, vector<1x1x9x9x4xf32>
    %56 = vector.shape_cast %55 : vector<1x1x9x9x4xf32> to vector<9x9x4xf32>
    %cst_34 = arith.constant 0.000000e+00 : f32
    %57 = vector.broadcast %cst_34 : f32 to vector<9x9x4xf32>
    %58 = arith.cmpf oge, %56, %57 : vector<9x9x4xf32>
    %cst_35 = arith.constant 2.000000e-01 : f32
    %59 = vector.broadcast %cst_35 : f32 to vector<9x9x4xf32>
    %60 = arith.mulf %59, %56 : vector<9x9x4xf32>
    %61 = arith.select %58, %56, %60 : vector<9x9x4xi1>, vector<9x9x4xf32>
    %62 = arith.truncf %61 : vector<9x9x4xf32> to vector<9x9x4xbf16>
    %63 = vector.extract_strided_slice %62 {offsets = [0, 0, 0], sizes = [8, 8, 4], strides = [1, 1, 1]} : vector<9x9x4xbf16> to vector<8x8x4xbf16>
    %64 = vector.extract_strided_slice %62 {offsets = [0, 1, 0], sizes = [8, 8, 4], strides = [1, 1, 1]} : vector<9x9x4xbf16> to vector<8x8x4xbf16>
    %65 = vector.extract_strided_slice %62 {offsets = [1, 0, 0], sizes = [8, 8, 4], strides = [1, 1, 1]} : vector<9x9x4xbf16> to vector<8x8x4xbf16>
    %66 = vector.extract_strided_slice %62 {offsets = [1, 1, 0], sizes = [8, 8, 4], strides = [1, 1, 1]} : vector<9x9x4xbf16> to vector<8x8x4xbf16>
    %67 = tpu.concatenate %63, %64, %65, %66 in 2 : vector<8x8x4xbf16>, vector<8x8x4xbf16>, vector<8x8x4xbf16>, vector<8x8x4xbf16> -> vector<8x8x16xbf16>
    %68 = vector.shape_cast %67 : vector<8x8x16xbf16> to vector<64x16xbf16>
    %c3_36 = arith.constant 3 : index
    %c0_37 = arith.constant 0 : index
    %c0_38 = arith.constant 0 : index
    %69 = vector.load %arg2[%c3_36, %c0_37, %c0_38] : memref<4x16x8xbf16, #tpu.memory_space<vmem>>, vector<1x16x8xbf16>
    %70 = vector.shape_cast %69 : vector<1x16x8xbf16> to vector<16x8xbf16>
    %cst_39 = arith.constant dense<0.000000e+00> : vector<64x8xf32>
    %71 = tpu.matmul %68, %70, %cst_39 {dimension_numbers = #tpu.dot_dimension_numbers<[1], [0], [0], [1], [0, 0, 1, 1], [], []>} : vector<64x16xbf16>, vector<16x8xbf16>, vector<64x8xf32> -> vector<64x8xf32>
    %72 = arith.addf %54, %71 : vector<64x8xf32>
    %cst_40 = arith.constant 0.000000e+00 : bf16
    %73 = vector.broadcast %cst_40 : bf16 to vector<1x10x8xbf16>
    %cst_41 = arith.constant 0.000000e+00 : bf16
    %74 = vector.broadcast %cst_41 : bf16 to vector<10x1x8xbf16>
    %c0_42 = arith.constant 0 : index
    %c0_43 = arith.constant 0 : index
    %c0_44 = arith.constant 0 : index
    %75 = vector.load %arg7[%c0_42, %c0_43, %c0_44] : memref<10x10x8xbf16, #tpu.memory_space<vmem>>, vector<1x10x8xbf16>
    tpu.vector_store %arg7[%c0_42, %c0_43, %c0_44], %73 {strides = array<i32>} : memref<10x10x8xbf16, #tpu.memory_space<vmem>>, vector<1x10x8xbf16>,
    %c9 = arith.constant 9 : index
    %c0_45 = arith.constant 0 : index
    %c0_46 = arith.constant 0 : index
    %76 = vector.load %arg7[%c9, %c0_45, %c0_46] : memref<10x10x8xbf16, #tpu.memory_space<vmem>>, vector<1x10x8xbf16>
    tpu.vector_store %arg7[%c9, %c0_45, %c0_46], %73 {strides = array<i32>} : memref<10x10x8xbf16, #tpu.memory_space<vmem>>, vector<1x10x8xbf16>,
    %c0_47 = arith.constant 0 : index
    %c0_48 = arith.constant 0 : index
    %c0_49 = arith.constant 0 : index
    %77 = vector.load %arg7[%c0_47, %c0_48, %c0_49] : memref<10x10x8xbf16, #tpu.memory_space<vmem>>, vector<10x1x8xbf16>
    tpu.vector_store %arg7[%c0_47, %c0_48, %c0_49], %74 {strides = array<i32>} : memref<10x10x8xbf16, #tpu.memory_space<vmem>>, vector<10x1x8xbf16>,
    %c0_50 = arith.constant 0 : index
    %c9_51 = arith.constant 9 : index
    %c0_52 = arith.constant 0 : index
    %78 = vector.load %arg7[%c0_50, %c9_51, %c0_52] : memref<10x10x8xbf16, #tpu.memory_space<vmem>>, vector<10x1x8xbf16>
    tpu.vector_store %arg7[%c0_50, %c9_51, %c0_52], %74 {strides = array<i32>} : memref<10x10x8xbf16, #tpu.memory_space<vmem>>, vector<10x1x8xbf16>,
    %cst_53 = arith.constant 0.000000e+00 : f32
    %79 = vector.broadcast %cst_53 : f32 to vector<64x8xf32>
    %80 = arith.maximumf %72, %79 : vector<64x8xf32>
    %81 = arith.truncf %80 : vector<64x8xf32> to vector<64x8xbf16>
    %82 = vector.shape_cast %81 : vector<64x8xbf16> to vector<8x8x8xbf16>
    %c1_54 = arith.constant 1 : index
    %c1_55 = arith.constant 1 : index
    %c0_56 = arith.constant 0 : index
    %83 = vector.load %arg7[%c1_54, %c1_55, %c0_56] : memref<10x10x8xbf16, #tpu.memory_space<vmem>>, vector<8x8x8xbf16>
    tpu.vector_store %arg7[%c1_54, %c1_55, %c0_56], %82 {strides = array<i32>} : memref<10x10x8xbf16, #tpu.memory_space<vmem>>, vector<8x8x8xbf16>,
    %cst_57 = arith.constant 0.000000e+00 : f32
    %84 = vector.broadcast %cst_57 : f32 to vector<1x4xf32>
    %cst_58 = arith.constant 0.000000e+00 : f32
    %85 = vector.broadcast %cst_58 : f32 to vector<1x4xf32>
    %c0_59 = arith.constant 0 : index
    %c0_60 = arith.constant 0 : index
    %c0_61 = arith.constant 0 : index
    %86 = vector.load %arg7[%c0_59, %c0_60, %c0_61] : memref<10x10x8xbf16, #tpu.memory_space<vmem>>, vector<8x8x8xbf16>
    %c0_62 = arith.constant 0 : index
    %c1_63 = arith.constant 1 : index
    %c0_64 = arith.constant 0 : index
    %87 = vector.load %arg7[%c0_62, %c1_63, %c0_64] : memref<10x10x8xbf16, #tpu.memory_space<vmem>>, vector<8x8x8xbf16>
    %c1_65 = arith.constant 1 : index
    %c0_66 = arith.constant 0 : index
    %c0_67 = arith.constant 0 : index
    %88 = vector.load %arg7[%c1_65, %c0_66, %c0_67] : memref<10x10x8xbf16, #tpu.memory_space<vmem>>, vector<8x8x8xbf16>
    %c1_68 = arith.constant 1 : index
    %c1_69 = arith.constant 1 : index
    %c0_70 = arith.constant 0 : index
    %89 = vector.load %arg7[%c1_68, %c1_69, %c0_70] : memref<10x10x8xbf16, #tpu.memory_space<vmem>>, vector<8x8x8xbf16>
    %90 = tpu.concatenate %86, %87, %88, %89 in 2 : vector<8x8x8xbf16>, vector<8x8x8xbf16>, vector<8x8x8xbf16>, vector<8x8x8xbf16> -> vector<8x8x32xbf16>
    %91 = vector.shape_cast %90 : vector<8x8x32xbf16> to vector<64x32xbf16>
    %c0_71 = arith.constant 0 : index
    %c0_72 = arith.constant 0 : index
    %c0_73 = arith.constant 0 : index
    %92 = vector.load %arg3[%c0_71, %c0_72, %c0_73] : memref<4x32x4xbf16, #tpu.memory_space<vmem>>, vector<1x32x4xbf16>
    %93 = vector.shape_cast %92 : vector<1x32x4xbf16> to vector<32x4xbf16>
    %cst_74 = arith.constant dense<0.000000e+00> : vector<64x4xf32>
    %94 = tpu.matmul %91, %93, %cst_74 {dimension_numbers = #tpu.dot_dimension_numbers<[1], [0], [0], [1], [0, 0, 1, 1], [], []>} : vector<64x32xbf16>, vector<32x4xbf16>, vector<64x4xf32> -> vector<64x4xf32>
    %95 = arith.truncf %94 : vector<64x4xf32> to vector<64x4xbf16>
    %96 = vector.shape_cast %95 : vector<64x4xbf16> to vector<8x8x4xbf16>
    %c0_75 = arith.constant 0 : index
    %c0_76 = arith.constant 0 : index
    %c0_77 = arith.constant 0 : index
    %c0_78 = arith.constant 0 : index
    %c0_79 = arith.constant 0 : index
    %97 = vector.load %arg4[%c0_75, %c0_76, %c0_77, %c0_78, %c0_79] : memref<1x4x8x8x4xbf16, #tpu.memory_space<vmem>>, vector<1x1x8x8x4xbf16>
    %98 = vector.shape_cast %97 : vector<1x1x8x8x4xbf16> to vector<8x8x4xbf16>
    %99 = vector.shape_cast %96 : vector<8x8x4xbf16> to vector<1x1x8x8x4xbf16>
    tpu.vector_store %arg4[%c0_75, %c0_76, %c0_77, %c0_78, %c0_79], %99 {strides = array<i32>} : memref<1x4x8x8x4xbf16, #tpu.memory_space<vmem>>, vector<1x1x8x8x4xbf16>,
    %cst_80 = arith.constant dense<0.000000e+00> : vector<4xf32>
    %100 = vector.multi_reduction <add>, %94, %cst_80 [0] : vector<64x4xf32> to vector<4xf32>
    %101 = vector.shape_cast %100 : vector<4xf32> to vector<1x4xf32>
    %102 = arith.addf %84, %101 : vector<1x4xf32>
    %103 = arith.mulf %94, %94 : vector<64x4xf32>
    %cst_81 = arith.constant dense<0.000000e+00> : vector<4xf32>
    %104 = vector.multi_reduction <add>, %103, %cst_81 [0] : vector<64x4xf32> to vector<4xf32>
    %105 = vector.shape_cast %104 : vector<4xf32> to vector<1x4xf32>
    %106 = arith.addf %85, %105 : vector<1x4xf32>
    %c0_82 = arith.constant 0 : index
    %c1_83 = arith.constant 1 : index
    %c0_84 = arith.constant 0 : index
    %107 = vector.load %arg7[%c0_82, %c1_83, %c0_84] : memref<10x10x8xbf16, #tpu.memory_space<vmem>>, vector<8x8x8xbf16>
    %c0_85 = arith.constant 0 : index
    %c2_86 = arith.constant 2 : index
    %c0_87 = arith.constant 0 : index
    %108 = vector.load %arg7[%c0_85, %c2_86, %c0_87] : memref<10x10x8xbf16, #tpu.memory_space<vmem>>, vector<8x8x8xbf16>
    %c1_88 = arith.constant 1 : index
    %c1_89 = arith.constant 1 : index
    %c0_90 = arith.constant 0 : index
    %109 = vector.load %arg7[%c1_88, %c1_89, %c0_90] : memref<10x10x8xbf16, #tpu.memory_space<vmem>>, vector<8x8x8xbf16>
    %c1_91 = arith.constant 1 : index
    %c2_92 = arith.constant 2 : index
    %c0_93 = arith.constant 0 : index
    %110 = vector.load %arg7[%c1_91, %c2_92, %c0_93] : memref<10x10x8xbf16, #tpu.memory_space<vmem>>, vector<8x8x8xbf16>
    %111 = tpu.concatenate %107, %108, %109, %110 in 2 : vector<8x8x8xbf16>, vector<8x8x8xbf16>, vector<8x8x8xbf16>, vector<8x8x8xbf16> -> vector<8x8x32xbf16>
    %112 = vector.shape_cast %111 : vector<8x8x32xbf16> to vector<64x32xbf16>
    %c1_94 = arith.constant 1 : index
    %c0_95 = arith.constant 0 : index
    %c0_96 = arith.constant 0 : index
    %113 = vector.load %arg3[%c1_94, %c0_95, %c0_96] : memref<4x32x4xbf16, #tpu.memory_space<vmem>>, vector<1x32x4xbf16>
    %114 = vector.shape_cast %113 : vector<1x32x4xbf16> to vector<32x4xbf16>
    %cst_97 = arith.constant dense<0.000000e+00> : vector<64x4xf32>
    %115 = tpu.matmul %112, %114, %cst_97 {dimension_numbers = #tpu.dot_dimension_numbers<[1], [0], [0], [1], [0, 0, 1, 1], [], []>} : vector<64x32xbf16>, vector<32x4xbf16>, vector<64x4xf32> -> vector<64x4xf32>
    %116 = arith.truncf %115 : vector<64x4xf32> to vector<64x4xbf16>
    %117 = vector.shape_cast %116 : vector<64x4xbf16> to vector<8x8x4xbf16>
    %c0_98 = arith.constant 0 : index
    %c1_99 = arith.constant 1 : index
    %c0_100 = arith.constant 0 : index
    %c0_101 = arith.constant 0 : index
    %c0_102 = arith.constant 0 : index
    %118 = vector.load %arg4[%c0_98, %c1_99, %c0_100, %c0_101, %c0_102] : memref<1x4x8x8x4xbf16, #tpu.memory_space<vmem>>, vector<1x1x8x8x4xbf16>
    %119 = vector.shape_cast %118 : vector<1x1x8x8x4xbf16> to vector<8x8x4xbf16>
    %120 = vector.shape_cast %117 : vector<8x8x4xbf16> to vector<1x1x8x8x4xbf16>
    tpu.vector_store %arg4[%c0_98, %c1_99, %c0_100, %c0_101, %c0_102], %120 {strides = array<i32>} : memref<1x4x8x8x4xbf16, #tpu.memory_space<vmem>>, vector<1x1x8x8x4xbf16>,
    %cst_103 = arith.constant dense<0.000000e+00> : vector<4xf32>
    %121 = vector.multi_reduction <add>, %115, %cst_103 [0] : vector<64x4xf32> to vector<4xf32>
    %122 = vector.shape_cast %121 : vector<4xf32> to vector<1x4xf32>
    %123 = arith.addf %102, %122 : vector<1x4xf32>
    %124 = arith.mulf %115, %115 : vector<64x4xf32>
    %cst_104 = arith.constant dense<0.000000e+00> : vector<4xf32>
    %125 = vector.multi_reduction <add>, %124, %cst_104 [0] : vector<64x4xf32> to vector<4xf32>
    %126 = vector.shape_cast %125 : vector<4xf32> to vector<1x4xf32>
    %127 = arith.addf %106, %126 : vector<1x4xf32>
    %c1_105 = arith.constant 1 : index
    %c0_106 = arith.constant 0 : index
    %c0_107 = arith.constant 0 : index
    %128 = vector.load %arg7[%c1_105, %c0_106, %c0_107] : memref<10x10x8xbf16, #tpu.memory_space<vmem>>, vector<8x8x8xbf16>
    %c1_108 = arith.constant 1 : index
    %c1_109 = arith.constant 1 : index
    %c0_110 = arith.constant 0 : index
    %129 = vector.load %arg7[%c1_108, %c1_109, %c0_110] : memref<10x10x8xbf16, #tpu.memory_space<vmem>>, vector<8x8x8xbf16>
    %c2_111 = arith.constant 2 : index
    %c0_112 = arith.constant 0 : index
    %c0_113 = arith.constant 0 : index
    %130 = vector.load %arg7[%c2_111, %c0_112, %c0_113] : memref<10x10x8xbf16, #tpu.memory_space<vmem>>, vector<8x8x8xbf16>
    %c2_114 = arith.constant 2 : index
    %c1_115 = arith.constant 1 : index
    %c0_116 = arith.constant 0 : index
    %131 = vector.load %arg7[%c2_114, %c1_115, %c0_116] : memref<10x10x8xbf16, #tpu.memory_space<vmem>>, vector<8x8x8xbf16>
    %132 = tpu.concatenate %128, %129, %130, %131 in 2 : vector<8x8x8xbf16>, vector<8x8x8xbf16>, vector<8x8x8xbf16>, vector<8x8x8xbf16> -> vector<8x8x32xbf16>
    %133 = vector.shape_cast %132 : vector<8x8x32xbf16> to vector<64x32xbf16>
    %c2_117 = arith.constant 2 : index
    %c0_118 = arith.constant 0 : index
    %c0_119 = arith.constant 0 : index
    %134 = vector.load %arg3[%c2_117, %c0_118, %c0_119] : memref<4x32x4xbf16, #tpu.memory_space<vmem>>, vector<1x32x4xbf16>
    %135 = vector.shape_cast %134 : vector<1x32x4xbf16> to vector<32x4xbf16>
    %cst_120 = arith.constant dense<0.000000e+00> : vector<64x4xf32>
    %136 = tpu.matmul %133, %135, %cst_120 {dimension_numbers = #tpu.dot_dimension_numbers<[1], [0], [0], [1], [0, 0, 1, 1], [], []>} : vector<64x32xbf16>, vector<32x4xbf16>, vector<64x4xf32> -> vector<64x4xf32>
    %137 = arith.truncf %136 : vector<64x4xf32> to vector<64x4xbf16>
    %138 = vector.shape_cast %137 : vector<64x4xbf16> to vector<8x8x4xbf16>
    %c0_121 = arith.constant 0 : index
    %c2_122 = arith.constant 2 : index
    %c0_123 = arith.constant 0 : index
    %c0_124 = arith.constant 0 : index
    %c0_125 = arith.constant 0 : index
    %139 = vector.load %arg4[%c0_121, %c2_122, %c0_123, %c0_124, %c0_125] : memref<1x4x8x8x4xbf16, #tpu.memory_space<vmem>>, vector<1x1x8x8x4xbf16>
    %140 = vector.shape_cast %139 : vector<1x1x8x8x4xbf16> to vector<8x8x4xbf16>
    %141 = vector.shape_cast %138 : vector<8x8x4xbf16> to vector<1x1x8x8x4xbf16>
    tpu.vector_store %arg4[%c0_121, %c2_122, %c0_123, %c0_124, %c0_125], %141 {strides = array<i32>} : memref<1x4x8x8x4xbf16, #tpu.memory_space<vmem>>, vector<1x1x8x8x4xbf16>,
    %cst_126 = arith.constant dense<0.000000e+00> : vector<4xf32>
    %142 = vector.multi_reduction <add>, %136, %cst_126 [0] : vector<64x4xf32> to vector<4xf32>
    %143 = vector.shape_cast %142 : vector<4xf32> to vector<1x4xf32>
    %144 = arith.addf %123, %143 : vector<1x4xf32>
    %145 = arith.mulf %136, %136 : vector<64x4xf32>
    %cst_127 = arith.constant dense<0.000000e+00> : vector<4xf32>
    %146 = vector.multi_reduction <add>, %145, %cst_127 [0] : vector<64x4xf32> to vector<4xf32>
    %147 = vector.shape_cast %146 : vector<4xf32> to vector<1x4xf32>
    %148 = arith.addf %127, %147 : vector<1x4xf32>
    %c1_128 = arith.constant 1 : index
    %c1_129 = arith.constant 1 : index
    %c0_130 = arith.constant 0 : index
    %149 = vector.load %arg7[%c1_128, %c1_129, %c0_130] : memref<10x10x8xbf16, #tpu.memory_space<vmem>>, vector<8x8x8xbf16>
    %c1_131 = arith.constant 1 : index
    %c2_132 = arith.constant 2 : index
    %c0_133 = arith.constant 0 : index
    %150 = vector.load %arg7[%c1_131, %c2_132, %c0_133] : memref<10x10x8xbf16, #tpu.memory_space<vmem>>, vector<8x8x8xbf16>
    %c2_134 = arith.constant 2 : index
    %c1_135 = arith.constant 1 : index
    %c0_136 = arith.constant 0 : index
    %151 = vector.load %arg7[%c2_134, %c1_135, %c0_136] : memref<10x10x8xbf16, #tpu.memory_space<vmem>>, vector<8x8x8xbf16>
    %c2_137 = arith.constant 2 : index
    %c2_138 = arith.constant 2 : index
    %c0_139 = arith.constant 0 : index
    %152 = vector.load %arg7[%c2_137, %c2_138, %c0_139] : memref<10x10x8xbf16, #tpu.memory_space<vmem>>, vector<8x8x8xbf16>
    %153 = tpu.concatenate %149, %150, %151, %152 in 2 : vector<8x8x8xbf16>, vector<8x8x8xbf16>, vector<8x8x8xbf16>, vector<8x8x8xbf16> -> vector<8x8x32xbf16>
    %154 = vector.shape_cast %153 : vector<8x8x32xbf16> to vector<64x32xbf16>
    %c3_140 = arith.constant 3 : index
    %c0_141 = arith.constant 0 : index
    %c0_142 = arith.constant 0 : index
    %155 = vector.load %arg3[%c3_140, %c0_141, %c0_142] : memref<4x32x4xbf16, #tpu.memory_space<vmem>>, vector<1x32x4xbf16>
    %156 = vector.shape_cast %155 : vector<1x32x4xbf16> to vector<32x4xbf16>
    %cst_143 = arith.constant dense<0.000000e+00> : vector<64x4xf32>
    %157 = tpu.matmul %154, %156, %cst_143 {dimension_numbers = #tpu.dot_dimension_numbers<[1], [0], [0], [1], [0, 0, 1, 1], [], []>} : vector<64x32xbf16>, vector<32x4xbf16>, vector<64x4xf32> -> vector<64x4xf32>
    %158 = arith.truncf %157 : vector<64x4xf32> to vector<64x4xbf16>
    %159 = vector.shape_cast %158 : vector<64x4xbf16> to vector<8x8x4xbf16>
    %c0_144 = arith.constant 0 : index
    %c3_145 = arith.constant 3 : index
    %c0_146 = arith.constant 0 : index
    %c0_147 = arith.constant 0 : index
    %c0_148 = arith.constant 0 : index
    %160 = vector.load %arg4[%c0_144, %c3_145, %c0_146, %c0_147, %c0_148] : memref<1x4x8x8x4xbf16, #tpu.memory_space<vmem>>, vector<1x1x8x8x4xbf16>
    %161 = vector.shape_cast %160 : vector<1x1x8x8x4xbf16> to vector<8x8x4xbf16>
    %162 = vector.shape_cast %159 : vector<8x8x4xbf16> to vector<1x1x8x8x4xbf16>
    tpu.vector_store %arg4[%c0_144, %c3_145, %c0_146, %c0_147, %c0_148], %162 {strides = array<i32>} : memref<1x4x8x8x4xbf16, #tpu.memory_space<vmem>>, vector<1x1x8x8x4xbf16>,
    %cst_149 = arith.constant dense<0.000000e+00> : vector<4xf32>
    %163 = vector.multi_reduction <add>, %157, %cst_149 [0] : vector<64x4xf32> to vector<4xf32>
    %164 = vector.shape_cast %163 : vector<4xf32> to vector<1x4xf32>
    %165 = arith.addf %144, %164 : vector<1x4xf32>
    %166 = arith.mulf %157, %157 : vector<64x4xf32>
    %cst_150 = arith.constant dense<0.000000e+00> : vector<4xf32>
    %167 = vector.multi_reduction <add>, %166, %cst_150 [0] : vector<64x4xf32> to vector<4xf32>
    %168 = vector.shape_cast %167 : vector<4xf32> to vector<1x4xf32>
    %169 = arith.addf %148, %168 : vector<1x4xf32>
    %c0_151 = arith.constant 0 : index
    %c0_152 = arith.constant 0 : index
    %c0_153 = arith.constant 0 : index
    %170 = vector.load %arg5[%c0_151, %c0_152, %c0_153] : memref<1x1x4xf32, #tpu.memory_space<vmem>>, vector<1x1x4xf32>
    %171 = vector.shape_cast %170 : vector<1x1x4xf32> to vector<1x4xf32>
    %172 = vector.shape_cast %165 : vector<1x4xf32> to vector<1x1x4xf32>
    tpu.vector_store %arg5[%c0_151, %c0_152, %c0_153], %172 {strides = array<i32>} : memref<1x1x4xf32, #tpu.memory_space<vmem>>, vector<1x1x4xf32>,
    %c0_154 = arith.constant 0 : index
    %c0_155 = arith.constant 0 : index
    %c0_156 = arith.constant 0 : index
    %173 = vector.load %arg6[%c0_154, %c0_155, %c0_156] : memref<1x1x4xf32, #tpu.memory_space<vmem>>, vector<1x1x4xf32>
    %174 = vector.shape_cast %173 : vector<1x1x4xf32> to vector<1x4xf32>
    %175 = vector.shape_cast %169 : vector<1x4xf32> to vector<1x1x4xf32>
    tpu.vector_store %arg6[%c0_154, %c0_155, %c0_156], %175 {strides = array<i32>} : memref<1x1x4xf32, #tpu.memory_space<vmem>>, vector<1x1x4xf32>,
    return
  }
  func.func @transform_0(%arg0: i32) -> (i32, i32, i32, i32, i32) {
    %c0_i32 = arith.constant 0 : i32
    %c0_i32_0 = arith.constant 0 : i32
    %c0_i32_1 = arith.constant 0 : i32
    %c0_i32_2 = arith.constant 0 : i32
    %c0_i32_3 = arith.constant 0 : i32
    return %arg0, %c0_i32, %c0_i32_0, %c0_i32_1, %c0_i32_2 : i32, i32, i32, i32, i32
  }
  func.func @transform_1(%arg0: i32) -> (i32, i32, i32) {
    %c0_i32 = arith.constant 0 : i32
    %c0_i32_0 = arith.constant 0 : i32
    %c0_i32_1 = arith.constant 0 : i32
    %c0_i32_2 = arith.constant 0 : i32
    return %c0_i32, %c0_i32_0, %c0_i32_1 : i32, i32, i32
  }
  func.func @transform_2(%arg0: i32) -> (i32, i32, i32) {
    %c0_i32 = arith.constant 0 : i32
    %c0_i32_0 = arith.constant 0 : i32
    %c0_i32_1 = arith.constant 0 : i32
    %c0_i32_2 = arith.constant 0 : i32
    return %c0_i32, %c0_i32_0, %c0_i32_1 : i32, i32, i32
  }
  func.func @transform_3(%arg0: i32) -> (i32, i32, i32, i32, i32) {
    %c0_i32 = arith.constant 0 : i32
    %c0_i32_0 = arith.constant 0 : i32
    %c0_i32_1 = arith.constant 0 : i32
    %c0_i32_2 = arith.constant 0 : i32
    %c0_i32_3 = arith.constant 0 : i32
    return %arg0, %c0_i32, %c0_i32_0, %c0_i32_1, %c0_i32_2 : i32, i32, i32, i32, i32
  }
  func.func @transform_4(%arg0: i32) -> (i32, i32, i32) {
    %c0_i32 = arith.constant 0 : i32
    %c0_i32_0 = arith.constant 0 : i32
    %c0_i32_1 = arith.constant 0 : i32
    return %arg0, %c0_i32, %c0_i32_0 : i32, i32, i32
  }
  func.func @transform_5(%arg0: i32) -> (i32, i32, i32) {
    %c0_i32 = arith.constant 0 : i32
    %c0_i32_0 = arith.constant 0 : i32
    %c0_i32_1 = arith.constant 0 : i32
    return %arg0, %c0_i32, %c0_i32_0 : i32, i32, i32
  }
}

module attributes {stable_mosaic.version = 11 : i64} {
  func.func @_bn_concat_kernel(%arg0: i32, %arg1: memref<1x8x2x8x8xf32, #tpu.memory_space<vmem>>, %arg2: memref<1x4x8x8x4xbf16, #tpu.memory_space<vmem>>, %arg3: memref<1x4xf32, #tpu.memory_space<vmem>>, %arg4: memref<1x4xf32, #tpu.memory_space<vmem>>, %arg5: memref<1x8x2x8x16xf32, #tpu.memory_space<vmem>>) attributes {dimension_semantics = [#tpu.dimension_semantics<parallel>], iteration_bounds = array<i64: 2>, scalar_prefetch = 0 : i64, scratch_operands = 0 : i64, tpu.core_type = #tpu.core_type<tc>, window_params = [{transform_indices = @transform_0, window_bounds = array<i64: 1, 8, 2, 8, 8>}, {transform_indices = @transform_1, window_bounds = array<i64: 1, 4, 8, 8, 4>}, {pipeline_mode = #tpu.pipeline_mode<synchronous>, transform_indices = @transform_2, window_bounds = array<i64: 1, 4>}, {pipeline_mode = #tpu.pipeline_mode<synchronous>, transform_indices = @transform_3, window_bounds = array<i64: 1, 4>}, {transform_indices = @transform_4, window_bounds = array<i64: 1, 8, 2, 8, 16>}]} {
    %c0 = arith.constant 0 : index
    %c0_0 = arith.constant 0 : index
    %0 = vector.load %arg3[%c0, %c0_0] : memref<1x4xf32, #tpu.memory_space<vmem>>, vector<1x4xf32>
    %c0_1 = arith.constant 0 : index
    %c0_2 = arith.constant 0 : index
    %1 = vector.load %arg4[%c0_1, %c0_2] : memref<1x4xf32, #tpu.memory_space<vmem>>, vector<1x4xf32>
    %c0_3 = arith.constant 0 : index
    %c0_4 = arith.constant 0 : index
    %c0_5 = arith.constant 0 : index
    %c0_6 = arith.constant 0 : index
    %c0_7 = arith.constant 0 : index
    %2 = vector.load %arg1[%c0_3, %c0_4, %c0_5, %c0_6, %c0_7] : memref<1x8x2x8x8xf32, #tpu.memory_space<vmem>>, vector<1x8x1x8x4xf32>
    %3 = vector.shape_cast %2 : vector<1x8x1x8x4xf32> to vector<8x8x4xf32>
    %c0_8 = arith.constant 0 : index
    %c0_9 = arith.constant 0 : index
    %c0_10 = arith.constant 0 : index
    %c0_11 = arith.constant 0 : index
    %c0_12 = arith.constant 0 : index
    %4 = vector.load %arg5[%c0_8, %c0_9, %c0_10, %c0_11, %c0_12] : memref<1x8x2x8x16xf32, #tpu.memory_space<vmem>>, vector<1x8x1x8x4xf32>
    %5 = vector.shape_cast %4 : vector<1x8x1x8x4xf32> to vector<8x8x4xf32>
    %6 = vector.shape_cast %3 : vector<8x8x4xf32> to vector<1x8x1x8x4xf32>
    tpu.vector_store %arg5[%c0_8, %c0_9, %c0_10, %c0_11, %c0_12], %6 {strides = array<i32>} : memref<1x8x2x8x16xf32, #tpu.memory_space<vmem>>, vector<1x8x1x8x4xf32>,
    %c0_13 = arith.constant 0 : index
    %c0_14 = arith.constant 0 : index
    %c0_15 = arith.constant 0 : index
    %c0_16 = arith.constant 0 : index
    %c0_17 = arith.constant 0 : index
    %7 = vector.load %arg2[%c0_13, %c0_14, %c0_15, %c0_16, %c0_17] : memref<1x4x8x8x4xbf16, #tpu.memory_space<vmem>>, vector<1x1x8x8x4xbf16>
    %8 = vector.shape_cast %7 : vector<1x1x8x8x4xbf16> to vector<8x8x4xbf16>
    %9 = arith.extf %8 : vector<8x8x4xbf16> to vector<8x8x4xf32>
    %10 = vector.shape_cast %0 : vector<1x4xf32> to vector<1x1x4xf32>
    %11 = vector.broadcast %10 : vector<1x1x4xf32> to vector<8x8x4xf32>
    %12 = arith.mulf %9, %11 : vector<8x8x4xf32>
    %13 = vector.shape_cast %1 : vector<1x4xf32> to vector<1x1x4xf32>
    %14 = vector.broadcast %13 : vector<1x1x4xf32> to vector<8x8x4xf32>
    %15 = arith.addf %12, %14 : vector<8x8x4xf32>
    %c0_18 = arith.constant 0 : index
    %c0_19 = arith.constant 0 : index
    %c0_20 = arith.constant 0 : index
    %c0_21 = arith.constant 0 : index
    %c4 = arith.constant 4 : index
    %16 = vector.load %arg5[%c0_18, %c0_19, %c0_20, %c0_21, %c4] : memref<1x8x2x8x16xf32, #tpu.memory_space<vmem>>, vector<1x8x1x8x4xf32>
    %17 = vector.shape_cast %16 : vector<1x8x1x8x4xf32> to vector<8x8x4xf32>
    %18 = vector.shape_cast %15 : vector<8x8x4xf32> to vector<1x8x1x8x4xf32>
    tpu.vector_store %arg5[%c0_18, %c0_19, %c0_20, %c0_21, %c4], %18 {strides = array<i32>} : memref<1x8x2x8x16xf32, #tpu.memory_space<vmem>>, vector<1x8x1x8x4xf32>,
    %c0_22 = arith.constant 0 : index
    %c0_23 = arith.constant 0 : index
    %c0_24 = arith.constant 0 : index
    %c0_25 = arith.constant 0 : index
    %c4_26 = arith.constant 4 : index
    %19 = vector.load %arg1[%c0_22, %c0_23, %c0_24, %c0_25, %c4_26] : memref<1x8x2x8x8xf32, #tpu.memory_space<vmem>>, vector<1x8x1x8x4xf32>
    %20 = vector.shape_cast %19 : vector<1x8x1x8x4xf32> to vector<8x8x4xf32>
    %c0_27 = arith.constant 0 : index
    %c0_28 = arith.constant 0 : index
    %c0_29 = arith.constant 0 : index
    %c0_30 = arith.constant 0 : index
    %c8 = arith.constant 8 : index
    %21 = vector.load %arg5[%c0_27, %c0_28, %c0_29, %c0_30, %c8] : memref<1x8x2x8x16xf32, #tpu.memory_space<vmem>>, vector<1x8x1x8x4xf32>
    %22 = vector.shape_cast %21 : vector<1x8x1x8x4xf32> to vector<8x8x4xf32>
    %23 = vector.shape_cast %20 : vector<8x8x4xf32> to vector<1x8x1x8x4xf32>
    tpu.vector_store %arg5[%c0_27, %c0_28, %c0_29, %c0_30, %c8], %23 {strides = array<i32>} : memref<1x8x2x8x16xf32, #tpu.memory_space<vmem>>, vector<1x8x1x8x4xf32>,
    %c0_31 = arith.constant 0 : index
    %c1 = arith.constant 1 : index
    %c0_32 = arith.constant 0 : index
    %c0_33 = arith.constant 0 : index
    %c0_34 = arith.constant 0 : index
    %24 = vector.load %arg2[%c0_31, %c1, %c0_32, %c0_33, %c0_34] : memref<1x4x8x8x4xbf16, #tpu.memory_space<vmem>>, vector<1x1x8x8x4xbf16>
    %25 = vector.shape_cast %24 : vector<1x1x8x8x4xbf16> to vector<8x8x4xbf16>
    %26 = arith.extf %25 : vector<8x8x4xbf16> to vector<8x8x4xf32>
    %27 = vector.shape_cast %0 : vector<1x4xf32> to vector<1x1x4xf32>
    %28 = vector.broadcast %27 : vector<1x1x4xf32> to vector<8x8x4xf32>
    %29 = arith.mulf %26, %28 : vector<8x8x4xf32>
    %30 = vector.shape_cast %1 : vector<1x4xf32> to vector<1x1x4xf32>
    %31 = vector.broadcast %30 : vector<1x1x4xf32> to vector<8x8x4xf32>
    %32 = arith.addf %29, %31 : vector<8x8x4xf32>
    %c0_35 = arith.constant 0 : index
    %c0_36 = arith.constant 0 : index
    %c0_37 = arith.constant 0 : index
    %c0_38 = arith.constant 0 : index
    %c12 = arith.constant 12 : index
    %33 = vector.load %arg5[%c0_35, %c0_36, %c0_37, %c0_38, %c12] : memref<1x8x2x8x16xf32, #tpu.memory_space<vmem>>, vector<1x8x1x8x4xf32>
    %34 = vector.shape_cast %33 : vector<1x8x1x8x4xf32> to vector<8x8x4xf32>
    %35 = vector.shape_cast %32 : vector<8x8x4xf32> to vector<1x8x1x8x4xf32>
    tpu.vector_store %arg5[%c0_35, %c0_36, %c0_37, %c0_38, %c12], %35 {strides = array<i32>} : memref<1x8x2x8x16xf32, #tpu.memory_space<vmem>>, vector<1x8x1x8x4xf32>,
    %c0_39 = arith.constant 0 : index
    %c0_40 = arith.constant 0 : index
    %c1_41 = arith.constant 1 : index
    %c0_42 = arith.constant 0 : index
    %c0_43 = arith.constant 0 : index
    %36 = vector.load %arg1[%c0_39, %c0_40, %c1_41, %c0_42, %c0_43] : memref<1x8x2x8x8xf32, #tpu.memory_space<vmem>>, vector<1x8x1x8x4xf32>
    %37 = vector.shape_cast %36 : vector<1x8x1x8x4xf32> to vector<8x8x4xf32>
    %c0_44 = arith.constant 0 : index
    %c0_45 = arith.constant 0 : index
    %c1_46 = arith.constant 1 : index
    %c0_47 = arith.constant 0 : index
    %c0_48 = arith.constant 0 : index
    %38 = vector.load %arg5[%c0_44, %c0_45, %c1_46, %c0_47, %c0_48] : memref<1x8x2x8x16xf32, #tpu.memory_space<vmem>>, vector<1x8x1x8x4xf32>
    %39 = vector.shape_cast %38 : vector<1x8x1x8x4xf32> to vector<8x8x4xf32>
    %40 = vector.shape_cast %37 : vector<8x8x4xf32> to vector<1x8x1x8x4xf32>
    tpu.vector_store %arg5[%c0_44, %c0_45, %c1_46, %c0_47, %c0_48], %40 {strides = array<i32>} : memref<1x8x2x8x16xf32, #tpu.memory_space<vmem>>, vector<1x8x1x8x4xf32>,
    %c0_49 = arith.constant 0 : index
    %c2 = arith.constant 2 : index
    %c0_50 = arith.constant 0 : index
    %c0_51 = arith.constant 0 : index
    %c0_52 = arith.constant 0 : index
    %41 = vector.load %arg2[%c0_49, %c2, %c0_50, %c0_51, %c0_52] : memref<1x4x8x8x4xbf16, #tpu.memory_space<vmem>>, vector<1x1x8x8x4xbf16>
    %42 = vector.shape_cast %41 : vector<1x1x8x8x4xbf16> to vector<8x8x4xbf16>
    %43 = arith.extf %42 : vector<8x8x4xbf16> to vector<8x8x4xf32>
    %44 = vector.shape_cast %0 : vector<1x4xf32> to vector<1x1x4xf32>
    %45 = vector.broadcast %44 : vector<1x1x4xf32> to vector<8x8x4xf32>
    %46 = arith.mulf %43, %45 : vector<8x8x4xf32>
    %47 = vector.shape_cast %1 : vector<1x4xf32> to vector<1x1x4xf32>
    %48 = vector.broadcast %47 : vector<1x1x4xf32> to vector<8x8x4xf32>
    %49 = arith.addf %46, %48 : vector<8x8x4xf32>
    %c0_53 = arith.constant 0 : index
    %c0_54 = arith.constant 0 : index
    %c1_55 = arith.constant 1 : index
    %c0_56 = arith.constant 0 : index
    %c4_57 = arith.constant 4 : index
    %50 = vector.load %arg5[%c0_53, %c0_54, %c1_55, %c0_56, %c4_57] : memref<1x8x2x8x16xf32, #tpu.memory_space<vmem>>, vector<1x8x1x8x4xf32>
    %51 = vector.shape_cast %50 : vector<1x8x1x8x4xf32> to vector<8x8x4xf32>
    %52 = vector.shape_cast %49 : vector<8x8x4xf32> to vector<1x8x1x8x4xf32>
    tpu.vector_store %arg5[%c0_53, %c0_54, %c1_55, %c0_56, %c4_57], %52 {strides = array<i32>} : memref<1x8x2x8x16xf32, #tpu.memory_space<vmem>>, vector<1x8x1x8x4xf32>,
    %c0_58 = arith.constant 0 : index
    %c0_59 = arith.constant 0 : index
    %c1_60 = arith.constant 1 : index
    %c0_61 = arith.constant 0 : index
    %c4_62 = arith.constant 4 : index
    %53 = vector.load %arg1[%c0_58, %c0_59, %c1_60, %c0_61, %c4_62] : memref<1x8x2x8x8xf32, #tpu.memory_space<vmem>>, vector<1x8x1x8x4xf32>
    %54 = vector.shape_cast %53 : vector<1x8x1x8x4xf32> to vector<8x8x4xf32>
    %c0_63 = arith.constant 0 : index
    %c0_64 = arith.constant 0 : index
    %c1_65 = arith.constant 1 : index
    %c0_66 = arith.constant 0 : index
    %c8_67 = arith.constant 8 : index
    %55 = vector.load %arg5[%c0_63, %c0_64, %c1_65, %c0_66, %c8_67] : memref<1x8x2x8x16xf32, #tpu.memory_space<vmem>>, vector<1x8x1x8x4xf32>
    %56 = vector.shape_cast %55 : vector<1x8x1x8x4xf32> to vector<8x8x4xf32>
    %57 = vector.shape_cast %54 : vector<8x8x4xf32> to vector<1x8x1x8x4xf32>
    tpu.vector_store %arg5[%c0_63, %c0_64, %c1_65, %c0_66, %c8_67], %57 {strides = array<i32>} : memref<1x8x2x8x16xf32, #tpu.memory_space<vmem>>, vector<1x8x1x8x4xf32>,
    %c0_68 = arith.constant 0 : index
    %c3 = arith.constant 3 : index
    %c0_69 = arith.constant 0 : index
    %c0_70 = arith.constant 0 : index
    %c0_71 = arith.constant 0 : index
    %58 = vector.load %arg2[%c0_68, %c3, %c0_69, %c0_70, %c0_71] : memref<1x4x8x8x4xbf16, #tpu.memory_space<vmem>>, vector<1x1x8x8x4xbf16>
    %59 = vector.shape_cast %58 : vector<1x1x8x8x4xbf16> to vector<8x8x4xbf16>
    %60 = arith.extf %59 : vector<8x8x4xbf16> to vector<8x8x4xf32>
    %61 = vector.shape_cast %0 : vector<1x4xf32> to vector<1x1x4xf32>
    %62 = vector.broadcast %61 : vector<1x1x4xf32> to vector<8x8x4xf32>
    %63 = arith.mulf %60, %62 : vector<8x8x4xf32>
    %64 = vector.shape_cast %1 : vector<1x4xf32> to vector<1x1x4xf32>
    %65 = vector.broadcast %64 : vector<1x1x4xf32> to vector<8x8x4xf32>
    %66 = arith.addf %63, %65 : vector<8x8x4xf32>
    %c0_72 = arith.constant 0 : index
    %c0_73 = arith.constant 0 : index
    %c1_74 = arith.constant 1 : index
    %c0_75 = arith.constant 0 : index
    %c12_76 = arith.constant 12 : index
    %67 = vector.load %arg5[%c0_72, %c0_73, %c1_74, %c0_75, %c12_76] : memref<1x8x2x8x16xf32, #tpu.memory_space<vmem>>, vector<1x8x1x8x4xf32>
    %68 = vector.shape_cast %67 : vector<1x8x1x8x4xf32> to vector<8x8x4xf32>
    %69 = vector.shape_cast %66 : vector<8x8x4xf32> to vector<1x8x1x8x4xf32>
    tpu.vector_store %arg5[%c0_72, %c0_73, %c1_74, %c0_75, %c12_76], %69 {strides = array<i32>} : memref<1x8x2x8x16xf32, #tpu.memory_space<vmem>>, vector<1x8x1x8x4xf32>,
    return
  }
  func.func @transform_0(%arg0: i32) -> (i32, i32, i32, i32, i32) {
    %c0_i32 = arith.constant 0 : i32
    %c0_i32_0 = arith.constant 0 : i32
    %c0_i32_1 = arith.constant 0 : i32
    %c0_i32_2 = arith.constant 0 : i32
    %c0_i32_3 = arith.constant 0 : i32
    return %arg0, %c0_i32, %c0_i32_0, %c0_i32_1, %c0_i32_2 : i32, i32, i32, i32, i32
  }
  func.func @transform_1(%arg0: i32) -> (i32, i32, i32, i32, i32) {
    %c0_i32 = arith.constant 0 : i32
    %c0_i32_0 = arith.constant 0 : i32
    %c0_i32_1 = arith.constant 0 : i32
    %c0_i32_2 = arith.constant 0 : i32
    %c0_i32_3 = arith.constant 0 : i32
    return %arg0, %c0_i32, %c0_i32_0, %c0_i32_1, %c0_i32_2 : i32, i32, i32, i32, i32
  }
  func.func @transform_2(%arg0: i32) -> (i32, i32) {
    %c0_i32 = arith.constant 0 : i32
    %c0_i32_0 = arith.constant 0 : i32
    %c0_i32_1 = arith.constant 0 : i32
    return %c0_i32, %c0_i32_0 : i32, i32
  }
  func.func @transform_3(%arg0: i32) -> (i32, i32) {
    %c0_i32 = arith.constant 0 : i32
    %c0_i32_0 = arith.constant 0 : i32
    %c0_i32_1 = arith.constant 0 : i32
    return %c0_i32, %c0_i32_0 : i32, i32
  }
  func.func @transform_4(%arg0: i32) -> (i32, i32, i32, i32, i32) {
    %c0_i32 = arith.constant 0 : i32
    %c0_i32_0 = arith.constant 0 : i32
    %c0_i32_1 = arith.constant 0 : i32
    %c0_i32_2 = arith.constant 0 : i32
    %c0_i32_3 = arith.constant 0 : i32
    return %arg0, %c0_i32, %c0_i32_0, %c0_i32_1, %c0_i32_2 : i32, i32, i32, i32, i32
  }
}

</mosaic_0001>

<bundles_post_ra>
// kernel: unet_innermost_forward.3
= control target key start
LH: loop header
LB: loop body
LE: loop exit
PB: predicated region body
PF: predicated region fallthrough
CT: control target
= control target key end

     0   :  { %s932_s15 = smov 0   ;;  %s1277_s0 = inlined_call_operand.vmem [shape: f32[2,8,2,8,8], index: 0, kind: input, shape index: {}]   ;;  %s1278_s1 = inlined_call_operand.vmem [shape: bf16[2,4,8,8,4], index: 1, kind: input, shape index: {}]   ;;  %s1279_s2 = inlined_call_operand.vmem [shape: f32[1,4], index: 2, kind: input, shape index: {}]   ;;  %s1280_s3 = inlined_call_operand.vmem [shape: f32[1,4], index: 3, kind: input, shape index: {}]   ;;  %s1281_s4 = inlined_call_operand.vmem [shape: f32[2,8,2,8,16], index: 4, kind: output, shape index: {}]  }
   0x1 LB: > { %s718_s16 = sadd.s32 4294967295, %s903_s15   ;;  %p722_p0 = scmp.ge.s32.totalorder %s903_s15, 1  ;;  %s903_s15 = sphi %s932_s15, %s14_s15  }
   0x2   : > { %p172_p1 = scmp.lt.s32.totalorder %s903_s15, 3 }
   0x4   : > { %p173_p2 = pnand %p722_p0, %p172_p1 }
   0x5   : > { %p203_p3 = scmp.lt.s32.totalorder (!%p173_p2), %s718_s16, 1  ;;  %s905_s25 = smov (!%p173_p2), 4  }
   0x6   : > { %176 = sbr.rel (%p173_p2) target bundleno = 258 (0x102), region = 36  ;;  %s906_s29 = smov (!%p173_p2), 12  }
   0xb   : > { %s1283_s16 = smov (!%p203_p3, %s718_s16), 1  ;;  %v951_v0 = vld [vmem:[%s1279_s2] ss:$0 sm:$0xff]  ;;  %vm228_vm0 = vcmask 31744   ;;  %vm307_vm1 = vcmask 64544   ;;  %vm356_vm2 = vcmask 97344  }
   0xc   : > { %s940_s17 = sshll.u32 %s1283_s16, 7  ;;  %v958_v4 = vld [vmem:[%s1280_s3] ss:$0 sm:$0xff]  ;;  %vm430_vm3 = vcmask 130144  }
   0xd   : > { %s946_s20 = scalar_lea.vmem %s1278_s1, %s940_s17  ;;  %s988_s28 = scalar_lea.vmem %s1277_s0, %s940_s17 }
   0xe   : > { %v870_v1 = vld [vmem:[%s946_s20 + $0x8] sm:$0xff]   ;;  %v807_v2 = vld [vmem:[%s946_s20] sm:$0xff]   ;;  %v871_v6 = vld [vmem:[%s946_s20 + $0x10] sm:$0xff]   ;;  %s1090_s6 = scalar_lea.vmem %s1281_s4, %s940_s17 }
   0xf   : > { %v812_v3 = vunpack.c.l.bf16 %v870_v1  ;;  %v808_v5 = vunpack.c.l.bf16 %v807_v2  ;;  %v816_v7 = vunpack.c.l.bf16 %v871_v6  ;;  %v813_v8 = vunpack.c.h.bf16 %v870_v1  ;;  %v872_v19 = vld [vmem:[%s946_s20 + $0x18] sm:$0xff]   ;;  %v991_v30 = vld [vmem:[%s988_s28] sm:$0xff]  ;;  %v1001_v32 = vld [vmem:[%s988_s28 + $0x10] sm:$0xff] }
  0x10   : > { %v809_v10 = vunpack.c.h.bf16 %v807_v2  ;;  %v817_v12 = vunpack.c.h.bf16 %v871_v6  ;;  %v821_v23 = vunpack.c.h.bf16 %v872_v19  ;;  %v820_v24 = vunpack.c.l.bf16 %v872_v19  ;;  %v998_v31 = vld [vmem:[%s988_s28 + $0x20] sm:$0xff]  ;;  %v1004_v33 = vld [vmem:[%s988_s28 + $0x30] sm:$0xff]  ;;  %v874_v41 = vld [vmem:[%s946_s20 + $0x28] sm:$0xff]   ;;  %229 = vst.msk [vmem:[%s1090_s6] sm:$0xff] %vm228_vm0, %v991_v30 }
  0x11   : > { %v258_v9 = vmul.f32 %v951_v0, %v812_v3  ;;  %v256_v11 = vmul.f32 %v951_v0, %v808_v5  ;;  %v260_v13 = vmul.f32 %v951_v0, %v816_v7  ;;  %v259_v17 = vmul.f32 %v951_v0, %v813_v8  ;;  %v873_v34 = vld [vmem:[%s946_s20 + $0x20] sm:$0xff]   ;;  %v1014_v36 = vld [vmem:[%s988_s28 + $0x50] sm:$0xff]  ;;  %v876_v52 = vld [vmem:[%s946_s20 + $0x38] sm:$0xff]   ;;  %231 = vst.msk [vmem:[%s1090_s6 + $0x20] sm:$0xff] %vm228_vm0, %v998_v31 }
  0x12   : > { %v257_v18 = vmul.f32 %v951_v0, %v809_v10  ;;  %v261_v20 = vmul.f32 %v951_v0, %v817_v12  ;;  %v263_v26 = vmul.f32 %v951_v0, %v821_v23  ;;  %v262_v27 = vmul.f32 %v951_v0, %v820_v24  ;;  %v1017_v37 = vld [vmem:[%s988_s28 + $0x40] sm:$0xff]  ;;  %v875_v46 = vld [vmem:[%s946_s20 + $0x30] sm:$0xff]   ;;  %v878_v6 = vld [vmem:[%s946_s20 + $0x48] sm:$0xff]   ;;  %234 = vst.msk [vmem:[%s1090_s6 + $0x50] sm:$0xff] %vm228_vm0, %v1014_v36 }
  0x13   : > { %v269_v14 = vadd.f32 %v958_v4, %v258_v9  ;;  %v267_v15 = vadd.f32 %v958_v4, %v256_v11  ;;  %v271_v16 = vadd.f32 %v958_v4, %v260_v13  ;;  %v270_v21 = vadd.f32 %v958_v4, %v259_v17  ;;  %v1020_v39 = vld [vmem:[%s988_s28 + $0x60] sm:$0xff]  ;;  %v1034_v47 = vld [vmem:[%s988_s28 + $0x70] sm:$0xff]  ;;  %233 = vst.msk [vmem:[%s1090_s6 + $0x40] sm:$0xff] %vm228_vm0, %v1017_v37 }
  0x14   : > { %v268_v22 = vadd.f32 %v958_v4, %v257_v18  ;;  %v272_v25 = vadd.f32 %v958_v4, %v261_v20  ;;  %v274_v28 = vadd.f32 %v958_v4, %v263_v26  ;;  %v273_v29 = vadd.f32 %v958_v4, %v262_v27  ;;  %v877_v62 = vld [vmem:[%s946_s20 + $0x40] sm:$0xff]   ;;  %v879_v11 = vld [vmem:[%s946_s20 + $0x50] sm:$0xff]   ;;  %232 = vst.msk [vmem:[%s1090_s6 + $0x30] sm:$0xff] %vm228_vm0, %v1004_v33 }
  0x15   : > { %287 = vrot.lane.b32.xlu1 %v269_v14, %s905_s25  ;;  %283 = vrot.lane.b32.xlu0 %v267_v15, %s905_s25  ;;  %v824_v35 = vunpack.c.l.bf16 %v873_v34  ;;  %v825_v38 = vunpack.c.h.bf16 %v873_v34  ;;  %v829_v44 = vunpack.c.h.bf16 %v874_v41  ;;  %v828_v45 = vunpack.c.l.bf16 %v874_v41  ;;  %v770_v41 = vld [vmem:[%s988_s28 + $0x18] sm:$0xff]  ;;  %230 = vst.msk [vmem:[%s1090_s6 + $0x10] sm:$0xff] %vm228_vm0, %v1001_v32 }
  0x16   : > { %291 = vrot.lane.b32.xlu2 %v271_v16, %s905_s25  ;;  %v832_v49 = vunpack.c.l.bf16 %v875_v46  ;;  %v836_v56 = vunpack.c.l.bf16 %v876_v52  ;;  %v833_v57 = vunpack.c.h.bf16 %v875_v46  ;;  %v837_v59 = vunpack.c.h.bf16 %v876_v52  ;;  %236 = vst.msk [vmem:[%s1090_s6 + $0x70] sm:$0xff] %vm228_vm0, %v1034_v47 }
  0x17   : > { %v382_v40 = vmul.f32 %v951_v0, %v824_v35  ;;  %v383_v42 = vmul.f32 %v951_v0, %v825_v38  ;;  %v385_v50 = vmul.f32 %v951_v0, %v829_v44  ;;  %v384_v51 = vmul.f32 %v951_v0, %v828_v45  ;;  %v769_v38 = vld [vmem:[%s988_s28 + $0x8] sm:$0xff]  ;;  %235 = vst.msk [vmem:[%s1090_s6 + $0x60] sm:$0xff] %vm228_vm0, %v1020_v39 }
  0x18   : > { %v386_v53 = vmul.f32 %v951_v0, %v832_v49  ;;  %v388_v60 = vmul.f32 %v951_v0, %v836_v56  ;;  %v387_v61 = vmul.f32 %v951_v0, %v833_v57  ;;  %v389_v63 = vmul.f32 %v951_v0, %v837_v59  ;;  %746 = vst.msk [vmem:[%s1090_s6 + $0x18] sm:$0xff] %vm228_vm0, %v770_v41  ;;  %v882_v45 = vld [vmem:[%s946_s20 + $0x68] sm:$0xff]   ;;  %v884_v56 = vld [vmem:[%s946_s20 + $0x78] sm:$0xff]  }
  0x19   : > { %v390_v43 = vadd.f32 %v958_v4, %v382_v40  ;;  %v391_v48 = vadd.f32 %v958_v4, %v383_v42  ;;  %v393_v54 = vadd.f32 %v958_v4, %v385_v50  ;;  %v392_v55 = vadd.f32 %v958_v4, %v384_v51  ;;  %v771_v40 = vld [vmem:[%s988_s28 + $0x28] sm:$0xff]  ;;  %745 = vst.msk [vmem:[%s1090_s6 + $0x8] sm:$0xff] %vm228_vm0, %v769_v38  ;;  %v883_v51 = vld [vmem:[%s946_s20 + $0x70] sm:$0xff]  }
  0x1a   : > { %v394_v58 = vadd.f32 %v958_v4, %v386_v53  ;;  %v396_v1 = vadd.f32 %v958_v4, %v388_v60  ;;  %v395_v2 = vadd.f32 %v958_v4, %v387_v61  ;;  %v841_v3 = vunpack.c.h.bf16 %v877_v62  ;;  %747 = vst.msk [vmem:[%s1090_s6 + $0x28] sm:$0xff] %vm228_vm0, %v771_v40  ;;  %v775_v42 = vld [vmem:[%s988_s28 + $0x68] sm:$0xff] }
  0x1b   : > { %v840_v5 = vunpack.c.l.bf16 %v877_v62  ;;  %v397_v7 = vadd.f32 %v958_v4, %v389_v63  ;;  %v844_v8 = vunpack.c.l.bf16 %v878_v6  ;;  %v848_v15 = vunpack.c.l.bf16 %v879_v11  ;;  %751 = vst.msk [vmem:[%s1090_s6 + $0x68] sm:$0xff] %vm228_vm0, %v775_v42 }
  0x1c   : > { %v475_v9 = vmul.f32 %v951_v0, %v841_v3  ;;  %v845_v16 = vunpack.c.h.bf16 %v878_v6  ;;  %v849_v18 = vunpack.c.h.bf16 %v879_v11  ;;  %v861_v49 = vunpack.c.h.bf16 %v882_v45 }
  0x1d   : > { %289 = vrot.lane.b32.xlu1 %v270_v21, %s905_s25  ;;  %285 = vrot.lane.b32.xlu0 %v268_v22, %s905_s25  ;;  %v474_v10 = vmul.f32 %v951_v0, %v840_v5  ;;  %v476_v12 = vmul.f32 %v951_v0, %v844_v8  ;;  %v478_v19 = vmul.f32 %v951_v0, %v848_v15  ;;  %v880_v21 = vld [vmem:[%s946_s20 + $0x58] sm:$0xff]   ;;  %v860_v50 = vunpack.c.l.bf16 %v882_v45 }
  0x1e   : > { %293 = vrot.lane.b32.xlu2 %v272_v25, %s905_s25  ;;  %v483_v13 = vadd.f32 %v958_v4, %v475_v9  ;;  %v477_v20 = vmul.f32 %v951_v0, %v845_v16  ;;  %v479_v22 = vmul.f32 %v951_v0, %v849_v18  ;;  %v853_v25 = vunpack.c.h.bf16 %v880_v21 }
  0x1f   : > { %v482_v14 = vadd.f32 %v958_v4, %v474_v10  ;;  %v484_v17 = vadd.f32 %v958_v4, %v476_v12  ;;  %v486_v23 = vadd.f32 %v958_v4, %v478_v19  ;;  %v852_v26 = vunpack.c.l.bf16 %v880_v21 }
  0x20   : > { %v485_v24 = vadd.f32 %v958_v4, %v477_v20  ;;  %v487_v27 = vadd.f32 %v958_v4, %v479_v22  ;;  %v864_v53 = vunpack.c.l.bf16 %v883_v51  ;;  %v868_v61 = vunpack.c.l.bf16 %v884_v56 }
  0x21   : > { %v865_v62 = vunpack.c.h.bf16 %v883_v51 }
  0x22   : > { %v599_v57 = vmul.f32 %v951_v0, %v864_v53 }
  0x23   : > { %v600_v3 = vmul.f32 %v951_v0, %v865_v62 }
  0x24   : > { %v607_v63 = vadd.f32 %v958_v4, %v599_v57 }
  0x25   : > { %297 = vrot.lane.b32.xlu1 %v274_v28, %s905_s25  ;;  %295 = vrot.lane.b32.xlu0 %v273_v29, %s905_s25  ;;  %v481_v28 = vmul.f32 %v951_v0, %v853_v25  ;;  %v480_v29 = vmul.f32 %v951_v0, %v852_v26  ;;  %v608_v10 = vadd.f32 %v958_v4, %v600_v3 }
  0x26   : > { %332 = vrot.lane.b32.xlu2 %v991_v30, %s905_s25  ;;  %v881_v30 = vld [vmem:[%s946_s20 + $0x60] sm:$0xff]  }
  0x27   : > { %v489_v34 = vadd.f32 %v958_v4, %v481_v28  ;;  %v488_v35 = vadd.f32 %v958_v4, %v480_v29 }
  0x2d   : > { %336 = vrot.lane.b32.xlu1 %v998_v31, %s905_s25  ;;  %334 = vrot.lane.b32.xlu0 %v1001_v32, %s905_s25  ;;  %v773_v32 = vld [vmem:[%s988_s28 + $0x48] sm:$0xff] }
  0x2e   : > { %338 = vrot.lane.b32.xlu2 %v1004_v33, %s905_s25  ;;  %v856_v33 = vunpack.c.l.bf16 %v881_v30  ;;  %749 = vst.msk [vmem:[%s1090_s6 + $0x48] sm:$0xff] %vm228_vm0, %v773_v32 }
  0x30   : > { %v595_v44 = vmul.f32 %v951_v0, %v856_v33 }
  0x35   : > { %342 = vrot.lane.b32.xlu1 %v1014_v36, %s905_s25  ;;  %340 = vrot.lane.b32.xlu0 %v1017_v37, %s905_s25  ;;  %v772_v37 = vld [vmem:[%s988_s28 + $0x38] sm:$0xff] }
  0x36   : > { %344 = vrot.lane.b32.xlu2 %v1020_v39, %s905_s25  ;;  %v774_v36 = vld [vmem:[%s988_s28 + $0x58] sm:$0xff]  ;;  %v857_v39 = vunpack.c.h.bf16 %v881_v30  ;;  %748 = vst.msk [vmem:[%s1090_s6 + $0x38] sm:$0xff] %vm228_vm0, %v772_v37 }
  0x37   : > { %750 = vst.msk [vmem:[%s1090_s6 + $0x58] sm:$0xff] %vm228_vm0, %v774_v36 }
  0x38   : > { %v596_v46 = vmul.f32 %v951_v0, %v857_v39 }
  0x3a   : > { %v604_v52 = vadd.f32 %v958_v4, %v596_v46 }
  0x3d   : > { %406 = vrot.lane.b32.xlu1 %v390_v43, %s906_s29  ;;  %346 = vrot.lane.b32.xlu0 %v1034_v47, %s905_s25  ;;  %v776_v43 = vld [vmem:[%s988_s28 + $0x78] sm:$0xff] }
  0x3e   : > { %408 = vrot.lane.b32.xlu2 %v391_v48, %s906_s29  ;;  %752 = vst.msk [vmem:[%s1090_s6 + $0x78] sm:$0xff] %vm228_vm0, %v776_v43  ;;  %v603_v48 = vadd.f32 %v958_v4, %v595_v44 }
  0x45   : > { %412 = vrot.lane.b32.xlu1 %v393_v54, %s906_s29  ;;  %410 = vrot.lane.b32.xlu0 %v392_v55, %s906_s29  ;;  %v598_v54 = vmul.f32 %v951_v0, %v861_v49  ;;  %v597_v55 = vmul.f32 %v951_v0, %v860_v50 }
  0x46   : > { %414 = vrot.lane.b32.xlu2 %v394_v58, %s906_s29 }
  0x47   : > { %v606_v59 = vadd.f32 %v958_v4, %v598_v54  ;;  %v605_v60 = vadd.f32 %v958_v4, %v597_v55 }
  0x4d   : > { %418 = vrot.lane.b32.xlu1 %v396_v1, %s906_s29  ;;  %416 = vrot.lane.b32.xlu0 %v395_v2, %s906_s29  ;;  %v869_v1 = vunpack.c.h.bf16 %v884_v56  ;;  %v601_v2 = vmul.f32 %v951_v0, %v868_v61 }
  0x4e   : > { %420 = vrot.lane.b32.xlu2 %v397_v7, %s906_s29 }
  0x4f   : > { %v602_v5 = vmul.f32 %v951_v0, %v869_v1  ;;  %v609_v9 = vadd.f32 %v958_v4, %v601_v2 }
  0x51   : > { %v610_v0 = vadd.f32 %v958_v4, %v602_v5 }
  0x55   : > { %500 = vrot.lane.b32.xlu1 %v483_v13, %s905_s25  ;;  %498 = vrot.lane.b32.xlu0 %v482_v14, %s905_s25 }
  0x56   : > { %502 = vrot.lane.b32.xlu2 %v484_v17, %s905_s25 }
  0x5d   : > { %506 = vrot.lane.b32.xlu1 %v486_v23, %s905_s25  ;;  %504 = vrot.lane.b32.xlu0 %v485_v24, %s905_s25 }
  0x5e   : > { %508 = vrot.lane.b32.xlu2 %v487_v27, %s905_s25 }
  0x65   : > { %512 = vrot.lane.b32.xlu1 %v489_v34, %s905_s25  ;;  %510 = vrot.lane.b32.xlu0 %v488_v35, %s905_s25 }
  0x66   : > { %546 = vrot.lane.b32.xlu2 %v769_v38, %s905_s25 }
  0x6d   : > { %550 = vrot.lane.b32.xlu1 %v771_v40, %s905_s25  ;;  %548 = vrot.lane.b32.xlu0 %v770_v41, %s905_s25 }
  0x6e   : > { %552 = vrot.lane.b32.xlu2 %v772_v37, %s905_s25 }
  0x70   : > { %v292_v31 = vpop.permute.xlu2 %291 }
  0x71   : > { %312 = vst.msk [vmem:[%s1090_s6 + $0x40] sm:$0xff] %vm307_vm1, %v292_v31 }
  0x75   : > { %556 = vrot.lane.b32.xlu1 %v774_v36, %s905_s25  ;;  %554 = vrot.lane.b32.xlu0 %v773_v32, %s905_s25 }
  0x76   : > { %558 = vrot.lane.b32.xlu2 %v775_v42, %s905_s25 }
  0x78   : > { %v294_v47 = vpop.permute.xlu2 %293 }
  0x79   : > { %313 = vst.msk [vmem:[%s1090_s6 + $0x50] sm:$0xff] %vm307_vm1, %v294_v47 }
  0x7d   : > { %619 = vrot.lane.b32.xlu1 %v603_v48, %s906_s29  ;;  %560 = vrot.lane.b32.xlu0 %v776_v43, %s905_s25 }
  0x7e   : > { %621 = vrot.lane.b32.xlu2 %v604_v52, %s906_s29 }
  0x80   : > { %v333_v58 = vpop.permute.xlu2 %332 }
  0x85   : > { %625 = vrot.lane.b32.xlu1 %v606_v59, %s906_s29  ;;  %623 = vrot.lane.b32.xlu0 %v605_v60, %s906_s29 }
  0x86   : > { %627 = vrot.lane.b32.xlu2 %v607_v63, %s906_s29 }
  0x87   : > { %v288_v6 = vpop.permute.xlu1 %287  ;;  %v284_v7 = vpop.permute.xlu0 %283 }
  0x88   : > { %310 = vst.msk [vmem:[%s1090_s6 + $0x20] sm:$0xff] %vm307_vm1, %v288_v6  ;;  %v339_v8 = vpop.permute.xlu2 %338 }
  0x89   : > { %308 = vst.msk [vmem:[%s1090_s6] sm:$0xff] %vm307_vm1, %v284_v7 }
  0x8a   : > { %357 = vst.msk [vmem:[%s1090_s6] sm:$0xff] %vm356_vm2, %v333_v58 }
  0x8d   : > { %631 = vrot.lane.b32.xlu1 %v609_v9, %s906_s29  ;;  %629 = vrot.lane.b32.xlu0 %v608_v10, %s906_s29 }
  0x8e   : > { %633 = vrot.lane.b32.xlu2 %v610_v0, %s906_s29 }
  0x8f   : > { %v290_v11 = vpop.permute.xlu1 %289  ;;  %v286_v12 = vpop.permute.xlu0 %285 }
  0x90   : > { %311 = vst.msk [vmem:[%s1090_s6 + $0x30] sm:$0xff] %vm307_vm1, %v290_v11  ;;  %v345_v13 = vpop.permute.xlu2 %344 }
  0x91   : > { %309 = vst.msk [vmem:[%s1090_s6 + $0x10] sm:$0xff] %vm307_vm1, %v286_v12 }
  0x92   : > { %360 = vst.msk [vmem:[%s1090_s6 + $0x30] sm:$0xff] %vm356_vm2, %v339_v8 }
  0x97   : > { %v298_v4 = vpop.permute.xlu1 %297  ;;  %v296_v14 = vpop.permute.xlu0 %295 }
  0x98   : > { %315 = vst.msk [vmem:[%s1090_s6 + $0x70] sm:$0xff] %vm307_vm1, %v298_v4  ;;  %v409_v15 = vpop.permute.xlu2 %408 }
  0x99   : > { %314 = vst.msk [vmem:[%s1090_s6 + $0x60] sm:$0xff] %vm307_vm1, %v296_v14 }
  0x9a   : > { %363 = vst.msk [vmem:[%s1090_s6 + $0x60] sm:$0xff] %vm356_vm2, %v345_v13 }
  0x9f   : > { %v337_v16 = vpop.permute.xlu1 %336  ;;  %v335_v17 = vpop.permute.xlu0 %334 }
  0xa0   : > { %359 = vst.msk [vmem:[%s1090_s6 + $0x20] sm:$0xff] %vm356_vm2, %v337_v16  ;;  %v415_v18 = vpop.permute.xlu2 %414 }
  0xa1   : > { %358 = vst.msk [vmem:[%s1090_s6 + $0x10] sm:$0xff] %vm356_vm2, %v335_v17 }
  0xa2   : > { %432 = vst.msk [vmem:[%s1090_s6 + $0x10] sm:$0xff] %vm430_vm3, %v409_v15 }
  0xa7   : > { %v343_v19 = vpop.permute.xlu1 %342  ;;  %v341_v20 = vpop.permute.xlu0 %340 }
  0xa8   : > { %362 = vst.msk [vmem:[%s1090_s6 + $0x50] sm:$0xff] %vm356_vm2, %v343_v19  ;;  %v421_v21 = vpop.permute.xlu2 %420 }
  0xa9   : > { %361 = vst.msk [vmem:[%s1090_s6 + $0x40] sm:$0xff] %vm356_vm2, %v341_v20 }
  0xaa   : > { %435 = vst.msk [vmem:[%s1090_s6 + $0x40] sm:$0xff] %vm430_vm3, %v415_v18 }
  0xaf   : > { %v407_v22 = vpop.permute.xlu1 %406  ;;  %v347_v23 = vpop.permute.xlu0 %346 }
  0xb0   : > { %431 = vst.msk [vmem:[%s1090_s6] sm:$0xff] %vm430_vm3, %v407_v22  ;;  %v503_v24 = vpop.permute.xlu2 %502 }
  0xb1   : > { %364 = vst.msk [vmem:[%s1090_s6 + $0x70] sm:$0xff] %vm356_vm2, %v347_v23 }
  0xb2   : > { %438 = vst.msk [vmem:[%s1090_s6 + $0x70] sm:$0xff] %vm430_vm3, %v421_v21 }
  0xb3   : > { %763 = vst.msk [vmem:[%s1090_s6 + $0x28] sm:$0xff] %vm307_vm1, %v503_v24 }
  0xb7   : > { %v413_v25 = vpop.permute.xlu1 %412  ;;  %v411_v26 = vpop.permute.xlu0 %410 }
  0xb8   : > { %434 = vst.msk [vmem:[%s1090_s6 + $0x30] sm:$0xff] %vm430_vm3, %v413_v25  ;;  %v509_v27 = vpop.permute.xlu2 %508 }
  0xb9   : > { %433 = vst.msk [vmem:[%s1090_s6 + $0x20] sm:$0xff] %vm430_vm3, %v411_v26 }
  0xba   : > { %766 = vst.msk [vmem:[%s1090_s6 + $0x58] sm:$0xff] %vm307_vm1, %v509_v27 }
  0xbf   : > { %v419_v28 = vpop.permute.xlu1 %418  ;;  %v417_v29 = vpop.permute.xlu0 %416 }
  0xc0   : > { %437 = vst.msk [vmem:[%s1090_s6 + $0x60] sm:$0xff] %vm430_vm3, %v419_v28  ;;  %v547_v34 = vpop.permute.xlu2 %546 }
  0xc1   : > { %436 = vst.msk [vmem:[%s1090_s6 + $0x50] sm:$0xff] %vm430_vm3, %v417_v29 }
  0xc7   : > { %v501_v35 = vpop.permute.xlu1 %500  ;;  %v499_v38 = vpop.permute.xlu0 %498 }
  0xc8   : > { %762 = vst.msk [vmem:[%s1090_s6 + $0x18] sm:$0xff] %vm307_vm1, %v501_v35  ;;  %v553_v40 = vpop.permute.xlu2 %552 }
  0xc9   : > { %761 = vst.msk [vmem:[%s1090_s6 + $0x8] sm:$0xff] %vm307_vm1, %v499_v38 }
  0xca   : > { %777 = vst.msk [vmem:[%s1090_s6 + $0x8] sm:$0xff] %vm356_vm2, %v547_v34 }
  0xcf   : > { %v507_v41 = vpop.permute.xlu1 %506  ;;  %v505_v37 = vpop.permute.xlu0 %504 }
  0xd0   : > { %765 = vst.msk [vmem:[%s1090_s6 + $0x48] sm:$0xff] %vm307_vm1, %v507_v41  ;;  %v559_v30 = vpop.permute.xlu2 %558 }
  0xd1   : > { %764 = vst.msk [vmem:[%s1090_s6 + $0x38] sm:$0xff] %vm307_vm1, %v505_v37 }
  0xd2   : > { %780 = vst.msk [vmem:[%s1090_s6 + $0x38] sm:$0xff] %vm356_vm2, %v553_v40 }
  0xd7   : > { %v513_v31 = vpop.permute.xlu1 %512  ;;  %v511_v32 = vpop.permute.xlu0 %510 }
  0xd8   : > { %768 = vst.msk [vmem:[%s1090_s6 + $0x78] sm:$0xff] %vm307_vm1, %v513_v31  ;;  %v622_v33 = vpop.permute.xlu2 %621 }
  0xd9   : > { %767 = vst.msk [vmem:[%s1090_s6 + $0x68] sm:$0xff] %vm307_vm1, %v511_v32 }
  0xda   : > { %783 = vst.msk [vmem:[%s1090_s6 + $0x68] sm:$0xff] %vm356_vm2, %v559_v30 }
  0xdf   : > { %v551_v36 = vpop.permute.xlu1 %550  ;;  %v549_v39 = vpop.permute.xlu0 %548 }
  0xe0   : > { %779 = vst.msk [vmem:[%s1090_s6 + $0x28] sm:$0xff] %vm356_vm2, %v551_v36  ;;  %v628_v42 = vpop.permute.xlu2 %627 }
  0xe1   : > { %778 = vst.msk [vmem:[%s1090_s6 + $0x18] sm:$0xff] %vm356_vm2, %v549_v39 }
  0xe2   : > { %794 = vst.msk [vmem:[%s1090_s6 + $0x18] sm:$0xff] %vm430_vm3, %v622_v33 }
  0xe7   : > { %v557_v43 = vpop.permute.xlu1 %556  ;;  %v555_v44 = vpop.permute.xlu0 %554 }
  0xe8   : > { %782 = vst.msk [vmem:[%s1090_s6 + $0x58] sm:$0xff] %vm356_vm2, %v557_v43  ;;  %v634_v45 = vpop.permute.xlu2 %633 }
  0xe9   : > { %781 = vst.msk [vmem:[%s1090_s6 + $0x48] sm:$0xff] %vm356_vm2, %v555_v44 }
  0xea   : > { %797 = vst.msk [vmem:[%s1090_s6 + $0x48] sm:$0xff] %vm430_vm3, %v628_v42 }
  0xef   : > { %v620_v46 = vpop.permute.xlu1 %619  ;;  %v561_v47 = vpop.permute.xlu0 %560 }
  0xf0   : > { %793 = vst.msk [vmem:[%s1090_s6 + $0x8] sm:$0xff] %vm430_vm3, %v620_v46 }
  0xf1   : > { %784 = vst.msk [vmem:[%s1090_s6 + $0x78] sm:$0xff] %vm356_vm2, %v561_v47 }
  0xf2   : > { %800 = vst.msk [vmem:[%s1090_s6 + $0x78] sm:$0xff] %vm430_vm3, %v634_v45 }
  0xf7   : > { %v626_v48 = vpop.permute.xlu1 %625  ;;  %v624_v49 = vpop.permute.xlu0 %623 }
  0xf8   : > { %796 = vst.msk [vmem:[%s1090_s6 + $0x38] sm:$0xff] %vm430_vm3, %v626_v48 }
  0xf9   : > { %795 = vst.msk [vmem:[%s1090_s6 + $0x28] sm:$0xff] %vm430_vm3, %v624_v49 }
  0xff   : > { %v632_v50 = vpop.permute.xlu1 %631  ;;  %v630_v51 = vpop.permute.xlu0 %629 }
 0x100   : > { %799 = vst.msk [vmem:[%s1090_s6 + $0x68] sm:$0xff] %vm430_vm3, %v632_v50 }
 0x101   : > { %798 = vst.msk [vmem:[%s1090_s6 + $0x58] sm:$0xff] %vm430_vm3, %v630_v51 }
 0x102 PF: > { %s14_s15 = sadd.s32 1, %s903_s15  }
 0x103   : > { %p11_p4 = scmp.ge.s32.totalorder %s14_s15, 4  }
 0x105   :  { %13 = sbr.rel (!%p11_p4) target bundleno = 1 (0x1), region = 74 }

// kernel: unet_innermost_forward.2
= control target key start
LH: loop header
LB: loop body
LE: loop exit
PB: predicated region body
PF: predicated region fallthrough
CT: control target
= control target key end

     0   :  { %s4787_s18 = smov 0   ;;  %s6517_s0 = inlined_call_operand.vmem [shape: f32[2,4,9,9,4], index: 0, kind: input, shape index: {}]   ;;  %s6518_s1 = inlined_call_operand.vmem [shape: bf16[4,16,8], index: 1, kind: input, shape index: {}]   ;;  %s6519_s2 = inlined_call_operand.vmem [shape: bf16[4,32,4], index: 2, kind: input, shape index: {}]   ;;  %s6520_s3 = inlined_call_operand.vmem [shape: bf16[2,4,8,8,4], index: 3, kind: output, shape index: {0}]   ;;  %s6521_s4 = inlined_call_operand.vmem [shape: f32[2,1,4], index: 4, kind: output, shape index: {1}]   ;;  %s6522_s5 = inlined_call_operand.vmem [shape: f32[2,1,4], index: 5, kind: output, shape index: {2}]  }
   0x1 LB: > { %s4449_s19 = sadd.s32 4294967295, %s4749_s18   ;;  %p4453_p0 = scmp.ge.s32.totalorder %s4749_s18, 1  ;;  %s4749_s18 = sphi %s4787_s18, %s16_s18  }
   0x2   : > { %p192_p1 = scmp.lt.s32.totalorder %s4749_s18, 3 }
   0x4   : > { %p193_p2 = pnand %p4453_p0, %p192_p1 }
   0x6   : > { %196 = sbr.rel (%p193_p2) target bundleno = 1002 (0x3ea), region = 32 }
   0xb   : > { %p226_p3 = scmp.lt.s32.totalorder %s4449_s19, 1  ;;  %s4751_s24 = smov 8  }
   0xc   : > { %s4752_s25 = smov 4   ;;  %s4753_s26 = smov 12  }
   0xd   : > { %s6571_s19 = smov (!%p226_p3, %s4449_s19), 1  ;;  %s4755_s10 = smov 16  }
   0xe   : > { %s4728_s20 = smul.u32 576, %s6571_s19  ;;  %s4756_s11 = smov 24  }
   0xf   : > { %s241_s14 = scalar_lea.vmem %s6522_s5, %s6571_s19 }
  0x10   : > { %s4801_s23 = scalar_lea.vmem %s6517_s0, %s4728_s20 }
  0x11   : > { %v245_v0 = vld [vmem:[%s4801_s23 + $0x10] sm:$0xff]  ;;  %v246_v1 = vld [vmem:[%s4801_s23 + $0x18] sm:$0x1]  ;;  %v247_v2 = vld [vmem:[%s4801_s23 + $0x20] sm:$0xff] }
  0x12   : > { %vm263_vm0 = vcmp.ge.f32.partialorder %v245_v0, 0.0  ;;  %vm264_vm1 = vcmp.ge.f32.partialorder %v246_v1, 0.0  ;;  %v281_v3 = vmul.f32 0.2, %v245_v0  ;;  %v282_v4 = vmul.f32 0.2, %v246_v1 }
  0x13   : > { %v248_v5 = vld [vmem:[%s4801_s23 + $0x28] sm:$0x1]  ;;  %vm265_vm2 = vcmp.ge.f32.partialorder %v247_v2, 0.0  ;;  %v283_v6 = vmul.f32 0.2, %v247_v2  ;;  %v243_v7 = vld [vmem:[%s4801_s23] sm:$0xff] }
  0x14   : > { %v299_v8 = vsel %vm263_vm0, %v245_v0, %v281_v3  ;;  %v300_v9 = vsel %vm264_vm1, %v246_v1, %v282_v4  ;;  %vm266_vm3 = vcmp.ge.f32.partialorder %v248_v5, 0.0  ;;  %v284_v10 = vmul.f32 0.2, %v248_v5  ;;  %v244_v11 = vld [vmem:[%s4801_s23 + $0x8] sm:$0x1]  ;;  %v251_v15 = vld [vmem:[%s4801_s23 + $0x40] sm:$0xff] }
  0x15   : > { %v4809_v12 = vpack.c.bf16 %v299_v8, %v299_v8  ;;  %v318_v13 = vpack.c.bf16 %v300_v9, %v300_v9  ;;  %v301_v14 = vsel %vm265_vm2, %v247_v2, %v283_v6  ;;  %vm261_vm4 = vcmp.ge.f32.partialorder %v243_v7, 0.0  ;;  %v252_v16 = vld [vmem:[%s4801_s23 + $0x48] sm:$0x1]  ;;  %v249_v26 = vld [vmem:[%s4801_s23 + $0x30] sm:$0xff]  ;;  %v250_v27 = vld [vmem:[%s4801_s23 + $0x38] sm:$0x1] }
  0x16   : > { %v302_v17 = vsel %vm266_vm3, %v248_v5, %v284_v10  ;;  %v4813_v18 = vpack.c.bf16 %v301_v14, %v301_v14  ;;  %vm262_vm5 = vcmp.ge.f32.partialorder %v244_v11, 0.0  ;;  %v279_v19 = vmul.f32 0.2, %v243_v7  ;;  %v253_v53 = vld [vmem:[%s4801_s23 + $0x50] sm:$0xff]  ;;  %v254_v54 = vld [vmem:[%s4801_s23 + $0x58] sm:$0x1] }
  0x17   : > { %v351_v20 = vunpack.c.l.b16 %v4809_v12  ;;  %v352_v21 = vunpack.c.l.b16 %v318_v13  ;;  %v320_v22 = vpack.c.bf16 %v302_v17, %v302_v17  ;;  %v280_v23 = vmul.f32 0.2, %v244_v11  ;;  %v257_v63 = vld [vmem:[%s4801_s23 + $0x70] sm:$0xff]  ;;  %v258_v2 = vld [vmem:[%s4801_s23 + $0x78] sm:$0x1]  ;;  %v255_v14 = vld [vmem:[%s4801_s23 + $0x60] sm:$0xff] }
  0x18   : > { %v4817_v24 = vunpack.c.l.b16 %v4813_v18  ;;  %v297_v25 = vsel %vm261_vm4, %v243_v7, %v279_v19  ;;  %vm269_vm6 = vcmp.ge.f32.partialorder %v251_v15, 0.0  ;;  %vm270_vm7 = vcmp.ge.f32.partialorder %v252_v16, 0.0 }
  0x19   : > { %v447_v28 = vpack.c.b16 %v351_v20, %v351_v20  ;;  %v4821_v29 = vpack.c.b16 %v352_v21, %v351_v20  ;;  %v354_v30 = vunpack.c.l.b16 %v320_v22  ;;  %v298_v31 = vsel %vm262_vm5, %v244_v11, %v280_v23 }
  0x1a   : > { %v4823_v32 = vpack.c.bf16 %v297_v25, %v297_v25  ;;  %v316_v33 = vpack.c.bf16 %v298_v31, %v298_v31  ;;  %v287_v34 = vmul.f32 0.2, %v251_v15  ;;  %v288_v35 = vmul.f32 0.2, %v252_v16  ;;  %v256_v25 = vld [vmem:[%s4801_s23 + $0x68] sm:$0x1] }
  0x1b   : > { %455 = vrot.lane.b32.xlu2 %v447_v28, %s4751_s24  ;;  %v367_v36 = vpack.c.b16 %v354_v30, %v4817_v24  ;;  %vm267_vm8 = vcmp.ge.f32.partialorder %v249_v26, 0.0  ;;  %vm268_vm9 = vcmp.ge.f32.partialorder %v250_v27, 0.0  ;;  %v285_v37 = vmul.f32 0.2, %v249_v26 }
  0x1c   : > { %v349_v38 = vunpack.c.l.b16 %v4823_v32  ;;  %v350_v39 = vunpack.c.l.b16 %v316_v33  ;;  %v305_v40 = vsel %vm269_vm6, %v251_v15, %v287_v34  ;;  %v306_v41 = vsel %vm270_vm7, %v252_v16, %v288_v35 }
  0x1d   : > { %v388_v42 = vshrl.u32 %v367_v36, 16  ;;  %v390_v43 = vshll.u32 %v367_v36, 16  ;;  %v4830_v44 = vpack.c.bf16 %v305_v40, %v305_v40  ;;  %v324_v45 = vpack.c.bf16 %v306_v41, %v306_v41 }
  0x1e   : > { %v365_v46 = vpack.c.b16 %v350_v39, %v349_v38  ;;  %v286_v47 = vmul.f32 0.2, %v250_v27  ;;  %v303_v48 = vsel %vm267_vm8, %v249_v26, %v285_v37  ;;  %v383_v58 = vshll.u32 %v4821_v29, 16 }
  0x1f   : > { %v392_v49 = vrot.slane %v390_v43, 1  ;;  %v4833_v50 = vunpack.c.l.b16 %v4830_v44  ;;  %v358_v51 = vunpack.c.l.b16 %v324_v45  ;;  %v4835_v52 = vpack.c.bf16 %v303_v48, %v303_v48 }
  0x20   : > { %v374_v55 = vshrl.u32 %v365_v46, 16  ;;  %v376_v56 = vshll.u32 %v365_v46, 16  ;;  %v304_v57 = vsel %vm268_vm9, %v250_v27, %v286_v47  ;;  %v381_v1 = vshrl.u32 %v4821_v29, 16 }
  0x21   : > { %v4841_v59 = vor.u32 %v392_v49, %v388_v42  ;;  %v369_v60 = vpack.c.b16 %v358_v51, %v4833_v50  ;;  %v322_v61 = vpack.c.bf16 %v304_v57, %v304_v57  ;;  %v4845_v62 = vunpack.c.l.b16 %v4835_v52 }
  0x22   : > { %v378_v0 = vrot.slane %v376_v56, 1  ;;  %vm271_vm10 = vcmp.ge.f32.partialorder %v253_v53, 0.0  ;;  %vm272_vm11 = vcmp.ge.f32.partialorder %v254_v54, 0.0  ;;  %v289_v6 = vmul.f32 0.2, %v253_v53 }
  0x23   : > { %433 = vrot.lane.b32.xlu1 %v4841_v59, %s4752_s25  ;;  %v402_v3 = vshrl.u32 %v369_v60, 16  ;;  %v404_v4 = vshll.u32 %v369_v60, 16  ;;  %v356_v5 = vunpack.c.l.b16 %v322_v61  ;;  %v385_v8 = vrot.slane %v383_v58, 1 }
  0x24   : > { %v379_v7 = vor.u32 %v378_v0, %v374_v55  ;;  %v290_v9 = vmul.f32 0.2, %v254_v54  ;;  %vm275_vm12 = vcmp.ge.f32.partialorder %v257_v63, 0.0  ;;  %v307_v13 = vsel %vm271_vm10, %v253_v53, %v289_v6 }
  0x25   : > { %v406_v10 = vrot.slane %v404_v4, 1  ;;  %v368_v11 = vpack.c.b16 %v356_v5, %v4845_v62  ;;  %vm276_vm13 = vcmp.ge.f32.partialorder %v258_v2, 0.0  ;;  %v4856_v16 = vpack.c.bf16 %v307_v13, %v307_v13  ;;  %v259_v4 = vld [vmem:[%s4801_s23 + $0x80] sm:$0xff] }
  0x26   : > { %429 = vrot.lane.b32.xlu0 %v379_v7, %s4752_s25  ;;  %v308_v15 = vsel %vm272_vm11, %v254_v54, %v290_v9  ;;  %v293_v17 = vmul.f32 0.2, %v257_v63  ;;  %v294_v19 = vmul.f32 0.2, %v258_v2  ;;  %vm273_vm14 = vcmp.ge.f32.partialorder %v255_v14, 0.0  ;;  %v4461_v7 = vld [vmem:[%s4801_s23 + $0xb0] sm:$0xff] }
  0x27   : > { %v4858_v20 = vor.u32 %v406_v10, %v402_v3  ;;  %v395_v21 = vshrl.u32 %v368_v11, 16  ;;  %v397_v22 = vshll.u32 %v368_v11, 16  ;;  %v326_v23 = vpack.c.bf16 %v308_v15, %v308_v15  ;;  %v4462_v9 = vld [vmem:[%s4801_s23 + $0xb8] sm:$0x1]  ;;  %v4459_v15 = vld [vmem:[%s4801_s23 + $0xa0] sm:$0xff] }
  0x28   : > { %v4862_v26 = vunpack.c.l.b16 %v4856_v16  ;;  %v311_v27 = vsel %vm275_vm12, %v257_v63, %v293_v17  ;;  %v312_v28 = vsel %vm276_vm13, %v258_v2, %v294_v19  ;;  %v4869_v34 = vor.u32 %v385_v8, %v381_v1  ;;  %v260_v1 = vld [vmem:[%s4801_s23 + $0x88] sm:$0x1] }
  0x29   : > { %437 = vrot.lane.b32.xlu2 %v4858_v20, %s4752_s25  ;;  %v399_v29 = vrot.slane %v397_v22, 1  ;;  %v360_v30 = vunpack.c.l.b16 %v326_v23  ;;  %v4867_v31 = vpack.c.bf16 %v311_v27, %v311_v27  ;;  %v330_v33 = vpack.c.bf16 %v312_v28, %v312_v28  ;;  %v4460_v17 = vld [vmem:[%s4801_s23 + $0xa8] sm:$0x1] }
  0x2a   : > { %vm274_vm15 = vcmp.ge.f32.partialorder %v256_v25, 0.0  ;;  %v291_v35 = vmul.f32 0.2, %v255_v14  ;;  %v292_v36 = vmul.f32 0.2, %v256_v25  ;;  %v450_v2 = vpack.c.b16 %v4833_v50, %v4833_v50 }
  0x2b   : > { %v4871_v37 = vor.u32 %v399_v29, %v395_v21  ;;  %v370_v38 = vpack.c.b16 %v360_v30, %v4862_v26  ;;  %v363_v39 = vunpack.c.l.b16 %v4867_v31  ;;  %v364_v40 = vunpack.c.l.b16 %v330_v33 }
  0x2c   : > { %v309_v41 = vsel %vm273_vm14, %v255_v14, %v291_v35  ;;  %v310_v42 = vsel %vm274_vm15, %v256_v25, %v292_v36  ;;  %v449_v5 = vpack.c.b16 %v4845_v62, %v4845_v62  ;;  %v296_v6 = vmul.f32 0.2, %v260_v1 }
  0x2d   : > { %435 = vrot.lane.b32.xlu1 %v4871_v37, %s4752_s25  ;;  %v409_v43 = vshrl.u32 %v370_v38, 16  ;;  %v411_v45 = vshll.u32 %v370_v38, 16  ;;  %v372_v46 = vpack.c.b16 %v364_v40, %v363_v39  ;;  %v4877_v47 = vpack.c.bf16 %v309_v41, %v309_v41  ;;  %v4458_v40 = vld [vmem:[%s4801_s23 + $0x98] sm:$0x1]  ;;  %v4493_v41 = vld [vmem:[%s4801_s23 + $0x120] sm:$0xff] }
  0x2e   : > { %431 = vrot.lane.b32.xlu0 %v4869_v34, %s4752_s25  ;;  %v328_v48 = vpack.c.bf16 %v310_v42, %v310_v42  ;;  %vm278_vm0 = vcmp.ge.f32.partialorder %v260_v1, 0.0  ;;  %v295_v8 = vmul.f32 0.2, %v259_v4  ;;  %vm277_vm1 = vcmp.ge.f32.partialorder %v259_v4, 0.0 }
  0x2f   : > { %v413_v49 = vrot.slane %v411_v45, 1  ;;  %v423_v51 = vshrl.u32 %v372_v46, 16  ;;  %v425_v53 = vshll.u32 %v372_v46, 16  ;;  %v361_v54 = vunpack.c.l.b16 %v4877_v47  ;;  %v4494_v45 = vld [vmem:[%s4801_s23 + $0x128] sm:$0x1] }
  0x30   : > { %v362_v55 = vunpack.c.l.b16 %v328_v48  ;;  %v314_v50 = vsel %vm278_vm0, %v260_v1, %v296_v6  ;;  %v599_v10 = vmul.f32 0.2, %v4461_v7  ;;  %v448_v62 = vpack.c.b16 %v4817_v24, %v4817_v24 }
  0x31   : > { %v4882_v56 = vor.u32 %v413_v49, %v409_v43  ;;  %v427_v57 = vrot.slane %v425_v53, 1  ;;  %vm581_vm2 = vcmp.ge.f32.partialorder %v4461_v7, 0.0  ;;  %v600_v11 = vmul.f32 0.2, %v4462_v9 }
  0x32   : > { %v371_v58 = vpack.c.b16 %v362_v55, %v361_v54  ;;  %v453_v13 = vpack.c.b16 %v363_v39, %v363_v39  ;;  %v313_v14 = vsel %vm277_vm1, %v259_v4, %v295_v8  ;;  %vm582_vm3 = vcmp.ge.f32.partialorder %v4462_v9, 0.0  ;;  %v4457_v39 = vld [vmem:[%s4801_s23 + $0x90] sm:$0xff] }
  0x33   : > { %439 = vrot.lane.b32.xlu2 %v4882_v56, %s4752_s25  ;;  %v4886_v60 = vor.u32 %v427_v57, %v423_v51  ;;  %v332_v19 = vpack.c.bf16 %v314_v50, %v314_v50  ;;  %v452_v21 = vpack.c.b16 %v361_v54, %v361_v54  ;;  %v617_v22 = vsel %vm581_vm2, %v4461_v7, %v599_v10  ;;  %v4465_v55 = vld [vmem:[%s4801_s23 + $0xd0] sm:$0xff]  ;;  %v4466_v57 = vld [vmem:[%s4801_s23 + $0xd8] sm:$0x1]  ;;  %v4464_v50 = vld [vmem:[%s4801_s23 + $0xc8] sm:$0x1] }
  0x34   : > { %v416_v61 = vshrl.u32 %v371_v58, 16  ;;  %v418_v63 = vshll.u32 %v371_v58, 16  ;;  %v331_v23 = vpack.c.bf16 %v313_v14, %v313_v14  ;;  %v618_v25 = vsel %vm582_vm3, %v4462_v9, %v600_v11  ;;  %v4463_v9 = vld [vmem:[%s4801_s23 + $0xc0] sm:$0xff] }
  0x35   : > { %443 = vrot.lane.b32.xlu1 %v4886_v60, %s4752_s25  ;;  %v597_v27 = vmul.f32 0.2, %v4459_v15  ;;  %v598_v28 = vmul.f32 0.2, %v4460_v17  ;;  %vm579_vm4 = vcmp.ge.f32.partialorder %v4459_v15, 0.0  ;;  %vm580_vm5 = vcmp.ge.f32.partialorder %v4460_v17, 0.0 }
  0x36   : > { %v420_v0 = vrot.slane %v418_v63, 1  ;;  %v472_v24 = vunpack.c.l.b16 %v332_v19  ;;  %v4910_v29 = vpack.c.bf16 %v617_v22, %v617_v22  ;;  %v636_v30 = vpack.c.bf16 %v618_v25, %v618_v25 }
  0x37   : > { %v451_v33 = vpack.c.b16 %v4862_v26, %v4862_v26  ;;  %v446_v35 = vunpack.c.l.b16 %v331_v23  ;;  %v615_v36 = vsel %vm579_vm4, %v4459_v15, %v597_v27  ;;  %v616_v38 = vsel %vm580_vm5, %v4460_v17, %v598_v28 }
  0x38   : > { %v4893_v3 = vor.u32 %v420_v0, %v416_v61  ;;  %6539 = vst [vmem:[#allocation3_spill] sm:$0xff] %v4910_v29  ;;  %v4919_v43 = vunpack.c.l.b16 %v4910_v29  ;;  %v670_v46 = vunpack.c.l.b16 %v636_v30  ;;  %v4922_v48 = vpack.c.bf16 %v615_v36, %v615_v36 }
  0x39   : > { %v473_v42 = vpack.c.b16 %v472_v24, %v446_v35  ;;  %v634_v49 = vpack.c.bf16 %v616_v38, %v616_v38  ;;  %vm577_vm6 = vcmp.ge.f32.partialorder %v4457_v39, 0.0  ;;  %v595_v26 = vmul.f32 0.2, %v4457_v39 }
  0x3a   : > { %441 = vrot.lane.b32.xlu0 %v4893_v3, %s4752_s25  ;;  %v596_v51 = vmul.f32 0.2, %v4458_v40  ;;  %v1044_v53 = vmul.f32 0.2, %v4493_v41  ;;  %vm578_vm7 = vcmp.ge.f32.partialorder %v4458_v40, 0.0  ;;  %v454_v58 = vpack.c.b16 %v446_v35, %v446_v35 }
  0x3b   : > { %461 = vrot.lane.b32.xlu2 %v450_v2, %s4751_s24  ;;  %v1045_v54 = vmul.f32 0.2, %v4494_v45  ;;  %vm1026_vm8 = vcmp.ge.f32.partialorder %v4493_v41, 0.0  ;;  %vm1027_vm9 = vcmp.ge.f32.partialorder %v4494_v45, 0.0  ;;  %v477_v61 = vshll.u32 %v473_v42, 16 }
  0x3c   : > { %v683_v63 = vpack.c.b16 %v670_v46, %v4919_v43  ;;  %v4933_v0 = vunpack.c.l.b16 %v4922_v48  ;;  %v668_v1 = vunpack.c.l.b16 %v634_v49  ;;  %v614_v2 = vsel %vm578_vm7, %v4458_v40, %v596_v51  ;;  %v4496_v40 = vld [vmem:[%s4801_s23 + $0x138] sm:$0x1]  ;;  %v4521_v49 = vld [vmem:[%s4801_s23 + $0x1b0] sm:$0xff] }
  0x3d   : > { %459 = vrot.lane.b32.xlu1 %v449_v5, %s4751_s24  ;;  %v603_v4 = vmul.f32 0.2, %v4465_v55  ;;  %v604_v5 = vmul.f32 0.2, %v4466_v57  ;;  %v1062_v6 = vsel %vm1026_vm8, %v4493_v41, %v1044_v53  ;;  %v1063_v7 = vsel %vm1027_vm9, %v4494_v45, %v1045_v54 }
  0x3e   : > { %vm585_vm10 = vcmp.ge.f32.partialorder %v4465_v55, 0.0  ;;  %vm586_vm11 = vcmp.ge.f32.partialorder %v4466_v57, 0.0  ;;  %v475_v8 = vshrl.u32 %v473_v42, 16  ;;  %v4939_v10 = vpack.c.b16 %v668_v1, %v4933_v0  ;;  %v4498_v1 = vld [vmem:[%s4801_s23 + $0x148] sm:$0x1] }
  0x3f   : > { %v632_v11 = vpack.c.bf16 %v614_v2, %v614_v2  ;;  %v1081_v14 = vpack.c.bf16 %v1063_v7, %v1063_v7  ;;  %v621_v15 = vsel %vm585_vm10, %v4465_v55, %v603_v4  ;;  %v622_v17 = vsel %vm586_vm11, %v4466_v57, %v604_v5  ;;  %v4497_v57 = vld [vmem:[%s4801_s23 + $0x140] sm:$0xff] }
  0x40   : > { %v706_v19 = vshll.u32 %v683_v63, 16  ;;  %v602_v22 = vmul.f32 0.2, %v4464_v50  ;;  %vm583_vm12 = vcmp.ge.f32.partialorder %v4463_v9, 0.0  ;;  %vm584_vm13 = vcmp.ge.f32.partialorder %v4464_v50, 0.0 }
  0x41   : > { %v666_v25 = vunpack.c.l.b16 %v632_v11  ;;  %v4951_v27 = vpack.c.bf16 %v621_v15, %v621_v15  ;;  %v640_v28 = vpack.c.bf16 %v622_v17, %v622_v17  ;;  %v704_v35 = vshrl.u32 %v683_v63, 16 }
  0x42   : > { %457 = vrot.lane.b32.xlu0 %v448_v62, %s4751_s24  ;;  %v708_v36 = vrot.slane %v706_v19, 1  ;;  %v697_v41 = vshrl.u32 %v4939_v10, 16  ;;  %v1047_v63 = vmul.f32 0.2, %v4496_v40  ;;  %vm1029_vm15 = vcmp.ge.f32.partialorder %v4496_v40, 0.0 }
  0x43   : > { %467 = vrot.lane.b32.xlu2 %v453_v13, %s4751_s24  ;;  %v4944_v13 = vpack.c.bf16 %v1062_v6, %v1062_v6  ;;  %6540 = vst [vmem:[#allocation4_spill] sm:$0xff] %v4951_v27  ;;  %v4959_v45 = vunpack.c.l.b16 %v4951_v27  ;;  %v674_v46 = vunpack.c.l.b16 %v640_v28  ;;  %vm1415_vm0 = vcmp.ge.f32.partialorder %v4521_v49, 0.0 }
  0x44   : > { %vm1031_vm2 = vcmp.ge.f32.partialorder %v4498_v1, 0.0  ;;  %vm1030_vm3 = vcmp.ge.f32.partialorder %v4497_v57, 0.0 }
  0x45   : > { %465 = vrot.lane.b32.xlu1 %v452_v21, %s4751_s24  ;;  %v601_v21 = vmul.f32 0.2, %v4463_v9  ;;  %v1114_v30 = vunpack.c.l.b16 %v4944_v13  ;;  %v685_v4 = vpack.c.b16 %v674_v46, %v4959_v45 }
  0x47   : > { %v619_v38 = vsel %vm583_vm12, %v4463_v9, %v601_v21  ;;  %v1048_v9 = vmul.f32 0.2, %v4497_v57  ;;  %v720_v19 = vshll.u32 %v685_v4, 16 }
  0x48   : > { %v4965_v54 = vpack.c.bf16 %v619_v38, %v619_v38 }
  0x4a   : > { %463 = vrot.lane.b32.xlu0 %v451_v33, %s4751_s24  ;;  %v1115_v33 = vunpack.c.l.b16 %v1081_v14  ;;  %6541 = vst [vmem:[#allocation5_spill] sm:$0xff] %v4965_v54  ;;  %v4976_v6 = vunpack.c.l.b16 %v4965_v54 }
  0x4b   : > { %483 = vrot.lane.b32.xlu2 %v4841_v59, %s4753_s26  ;;  %v613_v59 = vsel %vm577_vm6, %v4457_v39, %v595_v26  ;;  %v620_v39 = vsel %vm584_vm13, %v4464_v50, %v602_v22  ;;  %v4522_v26 = vld [vmem:[%s4801_s23 + $0x1b8] sm:$0x1] }
  0x4c   : > { %v4941_v62 = vpack.c.bf16 %v613_v59, %v613_v59  ;;  %v1130_v53 = vpack.c.b16 %v1115_v33, %v1114_v30  ;;  %v638_v55 = vpack.c.bf16 %v620_v39, %v620_v39  ;;  %v1433_v59 = vmul.f32 0.2, %v4521_v49 }
  0x4d   : > { %481 = vrot.lane.b32.xlu1 %v4869_v34, %s4753_s26  ;;  %v479_v34 = vrot.slane %v477_v61, 1  ;;  %v1434_v2 = vmul.f32 0.2, %v4522_v26  ;;  %vm1416_vm1 = vcmp.ge.f32.partialorder %v4522_v26, 0.0  ;;  %v718_v33 = vshrl.u32 %v685_v4, 16 }
  0x4e   : > { %v665_v23 = vunpack.c.l.b16 %v4941_v62  ;;  %v1141_v5 = vshll.u32 %v1130_v53, 16  ;;  %v672_v7 = vunpack.c.l.b16 %v638_v55  ;;  %v1451_v11 = vsel %vm1415_vm0, %v4521_v49, %v1433_v59  ;;  %v4523_v49 = vld [vmem:[%s4801_s23 + $0x1c0] sm:$0xff] }
  0x4f   : > { %v480_v24 = vor.u32 %v479_v34, %v475_v8  ;;  %v1049_v8 = vmul.f32 0.2, %v4498_v1  ;;  %v1065_v34 = vsel %vm1029_vm15, %v4496_v40, %v1047_v63  ;;  %v1139_v17 = vshrl.u32 %v1130_v53, 16 }
  0x50   : > { %v681_v42 = vpack.c.b16 %v666_v25, %v665_v23  ;;  %v684_v21 = vpack.c.b16 %v672_v7, %v4976_v6  ;;  %v1083_v23 = vpack.c.bf16 %v1065_v34, %v1065_v34  ;;  %v1143_v28 = vrot.slane %v1141_v5, 1  ;;  %v4525_v5 = vld [vmem:[%s4801_s23 + $0x1d0] sm:$0xff] }
  0x51   : > { %v1067_v25 = vsel %vm1031_vm2, %v4498_v1, %v1049_v8  ;;  %v1435_v59 = vmul.f32 0.2, %v4523_v49  ;;  %vm1417_vm4 = vcmp.ge.f32.partialorder %v4523_v49, 0.0  ;;  %vm1419_vm7 = vcmp.ge.f32.partialorder %v4525_v5, 0.0 }
  0x52   : > { %469 = vrot.lane.b32.xlu0 %v454_v58, %s4751_s24  ;;  %v4969_v58 = vor.u32 %v708_v36, %v704_v35  ;;  %v690_v14 = vshrl.u32 %v681_v42, 16  ;;  %v722_v35 = vrot.slane %v720_v19, 1  ;;  %v1085_v36 = vpack.c.bf16 %v1067_v25, %v1067_v25 }
  0x53   : > { %489 = vrot.lane.b32.xlu2 %v4882_v56, %s4753_s26  ;;  %v699_v56 = vshll.u32 %v4939_v10, 16  ;;  %v713_v38 = vshll.u32 %v684_v21, 16  ;;  %v1117_v40 = vunpack.c.l.b16 %v1083_v23  ;;  %v711_v55 = vshrl.u32 %v684_v21, 16 }
  0x54   : > { %v1119_v53 = vunpack.c.l.b16 %v1085_v36 }
  0x55   : > { %487 = vrot.lane.b32.xlu1 %v4858_v20, %s4753_s26  ;;  %v4495_v20 = vld [vmem:[%s4801_s23 + $0x130] sm:$0xff]  ;;  %v701_v51 = vrot.slane %v699_v56, 1  ;;  %v4987_v56 = vpack.c.bf16 %v1451_v11, %v1451_v11  ;;  %v1453_v11 = vsel %vm1417_vm4, %v4523_v49, %v1435_v59  ;;  %vm497_vm4 = vcmask 31744  }
  0x56   : > { %v1046_v61 = vmul.f32 0.2, %v4495_v20  ;;  %vm1028_vm14 = vcmp.ge.f32.partialorder %v4495_v20, 0.0  ;;  %v5010_v23 = vpack.c.bf16 %v1453_v11, %v1453_v11 }
  0x57   : > { %v4978_v10 = vor.u32 %v701_v51, %v697_v41  ;;  %v1144_v41 = vor.u32 %v1143_v28, %v1139_v17  ;;  %v4997_v51 = vor.u32 %v722_v35, %v718_v33 }
  0x58   : > { %v1064_v50 = vsel %vm1028_vm14, %v4495_v20, %v1046_v61 }
  0x59   : > { %v4983_v22 = vpack.c.bf16 %v1064_v50, %v1064_v50 }
  0x5a   : > { %485 = vrot.lane.b32.xlu0 %v4871_v37, %s4753_s26  ;;  %v692_v37 = vshll.u32 %v681_v42, 16  ;;  %v1503_v42 = vunpack.c.l.b16 %v4987_v56 }
  0x5b   : > { %495 = vrot.lane.b32.xlu2 %v480_v24, %s4753_s26  ;;  %v1066_v24 = vsel %vm1030_vm3, %v4497_v57, %v1048_v9  ;;  %v1116_v20 = vunpack.c.l.b16 %v4983_v22  ;;  %v715_v57 = vrot.slane %v713_v38, 1 }
  0x5c   : > { %v694_v15 = vrot.slane %v692_v37, 1  ;;  %v4991_v39 = vpack.c.bf16 %v1066_v24, %v1066_v24  ;;  %v4526_v37 = vld [vmem:[%s4801_s23 + $0x1d8] sm:$0x1] }
  0x5d   : > { %493 = vrot.lane.b32.xlu1 %v4886_v60, %s4753_s26  ;;  %v1452_v60 = vsel %vm1416_vm1, %v4522_v26, %v1434_v2  ;;  %v4524_v26 = vld [vmem:[%s4801_s23 + $0x1c8] sm:$0x1]  ;;  %v1131_v63 = vpack.c.b16 %v1117_v40, %v1116_v20  ;;  %v5006_v7 = vor.u32 %v715_v57, %v711_v55  ;;  %v1438_v50 = vmul.f32 0.2, %v4526_v37  ;;  %v4499_v55 = vld [vmem:[%s4801_s23 + $0x150] sm:$0xff] }
  0x5e   : > { %v1470_v30 = vpack.c.bf16 %v1452_v60, %v1452_v60  ;;  %v1118_v61 = vunpack.c.l.b16 %v4991_v39  ;;  %v1436_v2 = vmul.f32 0.2, %v4524_v26  ;;  %vm1418_vm5 = vcmp.ge.f32.partialorder %v4524_v26, 0.0  ;;  %v4500_v57 = vld [vmem:[%s4801_s23 + $0x158] sm:$0x1] }
  0x5f   : > { %v1148_v9 = vshll.u32 %v1131_v63, 16  ;;  %vm1420_vm6 = vcmp.ge.f32.partialorder %v4526_v37, 0.0  ;;  %v1146_v17 = vshrl.u32 %v1131_v63, 16  ;;  %v1051_v59 = vmul.f32 0.2, %v4500_v57 }
  0x60   : > { %v1504_v46 = vunpack.c.l.b16 %v1470_v30  ;;  %v1132_v4 = vpack.c.b16 %v1119_v53, %v1118_v61  ;;  %v1213_v8 = vpack.c.b16 %v1118_v61, %v1118_v61  ;;  %v1454_v60 = vsel %vm1418_vm5, %v4524_v26, %v1436_v2 }
  0x61   : > { %v1150_v21 = vrot.slane %v1148_v9, 1  ;;  %v1472_v25 = vpack.c.bf16 %v1454_v60, %v1454_v60  ;;  %v1456_v28 = vsel %vm1420_vm6, %v4526_v37, %v1438_v50  ;;  %vm1032_vm8 = vcmp.ge.f32.partialorder %v4499_v55, 0.0  ;;  %v4501_v50 = vld [vmem:[%s4801_s23 + $0x160] sm:$0xff] }
  0x62   : > { %491 = vrot.lane.b32.xlu0 %v4893_v3, %s4753_s26  ;;  %v695_v3 = vor.u32 %v694_v15, %v690_v14  ;;  %v1519_v1 = vpack.c.b16 %v1504_v46, %v1503_v42  ;;  %v1437_v14 = vmul.f32 0.2, %v4525_v5  ;;  %v1212_v15 = vpack.c.b16 %v1116_v20, %v1116_v20 }
  0x63   : > { %749 = vrot.lane.b32.xlu2 %v4969_v58, %s4752_s25  ;;  %v1155_v19 = vshll.u32 %v1132_v4, 16  ;;  %v1153_v33 = vshrl.u32 %v1132_v4, 16  ;;  %v1474_v36 = vpack.c.bf16 %v1456_v28, %v1456_v28  ;;  %v1151_v38 = vor.u32 %v1150_v21, %v1146_v17 }
  0x64   : > { %v1530_v34 = vshll.u32 %v1519_v1, 16  ;;  %v1528_v24 = vshrl.u32 %v1519_v1, 16  ;;  %v1505_v20 = vunpack.c.l.b16 %v5010_v23  ;;  %v1506_v40 = vunpack.c.l.b16 %v1472_v25 }
  0x65   : > { %747 = vrot.lane.b32.xlu1 %v4978_v10, %s4752_s25  ;;  %v1157_v35 = vrot.slane %v1155_v19, 1  ;;  %v1508_v26 = vunpack.c.l.b16 %v1474_v36  ;;  %v1050_v1 = vmul.f32 0.2, %v4499_v55  ;;  %vm1033_vm9 = vcmp.ge.f32.partialorder %v4500_v57, 0.0 }
  0x66   : > { %v1532_v30 = vrot.slane %v1530_v34, 1  ;;  %v1520_v53 = vpack.c.b16 %v1506_v40, %v1505_v20  ;;  %v1601_v4 = vpack.c.b16 %v1505_v20, %v1505_v20  ;;  %v1069_v9 = vsel %vm1033_vm9, %v4500_v57, %v1051_v59  ;;  %v4502_v34 = vld [vmem:[%s4801_s23 + $0x168] sm:$0x1]  ;;  %v4529_v59 = vld [vmem:[%s4801_s23 + $0x1f0] sm:$0xff] }
  0x67   : > { %v5019_v49 = vor.u32 %v1157_v35, %v1153_v33  ;;  %v1087_v17 = vpack.c.bf16 %v1069_v9, %v1069_v9  ;;  %v1052_v19 = vmul.f32 0.2, %v4501_v50  ;;  %v1053_v21 = vmul.f32 0.2, %v4502_v34 }
  0x68   : > { %v1537_v2 = vshll.u32 %v1520_v53, 16  ;;  %v1535_v11 = vshrl.u32 %v1520_v53, 16  ;;  %vm1034_vm10 = vcmp.ge.f32.partialorder %v4501_v50, 0.0  ;;  %vm1035_vm11 = vcmp.ge.f32.partialorder %v4502_v34, 0.0 }
  0x69   : > { %v1121_v33 = vunpack.c.l.b16 %v1087_v17  ;;  %v1070_v35 = vsel %vm1034_vm10, %v4501_v50, %v1052_v19  ;;  %v1071_v36 = vsel %vm1035_vm11, %v4502_v34, %v1053_v21  ;;  %v1441_v50 = vmul.f32 0.2, %v4529_v59 }
  0x6a   : > { %745 = vrot.lane.b32.xlu0 %v695_v3, %s4752_s25  ;;  %v1455_v3 = vsel %vm1419_vm7, %v4525_v5, %v1437_v14  ;;  %v1539_v60 = vrot.slane %v1537_v2, 1  ;;  %v5044_v20 = vpack.c.bf16 %v1070_v35, %v1070_v35  ;;  %v1089_v40 = vpack.c.bf16 %v1071_v36, %v1071_v36  ;;  %v4530_v2 = vld [vmem:[%s4801_s23 + $0x1f8] sm:$0x1] }
  0x6b   : > { %1194 = vrot.lane.b32.xlu2 %v1144_v41, %s4752_s25  ;;  %v1533_v41 = vor.u32 %v1532_v30, %v1528_v24  ;;  %v5015_v42 = vpack.c.bf16 %v1455_v3, %v1455_v3  ;;  %v763_v30 = vpack.c.b16 %v4933_v0, %v4933_v0  ;;  %v1442_v34 = vmul.f32 0.2, %v4530_v2 }
  0x6c   : > { %v1540_v24 = vor.u32 %v1539_v60, %v1535_v11  ;;  %6542 = vst [vmem:[#allocation6_spill] sm:$0xff] %v5044_v20  ;;  %vm1423_vm14 = vcmp.ge.f32.partialorder %v4529_v59, 0.0  ;;  %vm1424_vm15 = vcmp.ge.f32.partialorder %v4530_v2, 0.0  ;;  %vm522_vm5 = vcmask 64512  }
  0x6d   : > { %753 = vrot.lane.b32.xlu1 %v4997_v51, %s4752_s25  ;;  %v1507_v61 = vunpack.c.l.b16 %v5015_v42  ;;  %vm539_vm6 = vcmask 97280   ;;  %vm898_vm11 = vcmask 130048  }
  0x6f   : > { %v1521_v63 = vpack.c.b16 %v1508_v26, %v1507_v61  ;;  %v1602_v37 = vpack.c.b16 %v1507_v61, %v1507_v61  ;;  %v4528_v26 = vld [vmem:[%s4801_s23 + $0x1e8] sm:$0x1]  ;;  %v5053_v61 = vunpack.c.l.b16 %v5044_v20 }
  0x70   : > { %v1440_v57 = vmul.f32 0.2, %v4528_v26  ;;  %vm1422_vm13 = vcmp.ge.f32.partialorder %v4528_v26, 0.0 }
  0x71   : > { %v1544_v5 = vshll.u32 %v1521_v63, 16  ;;  %v1542_v25 = vshrl.u32 %v1521_v63, 16  ;;  %v1123_v63 = vunpack.c.l.b16 %v1089_v40 }
  0x72   : > { %751 = vrot.lane.b32.xlu0 %v5006_v7, %s4752_s25 }
  0x73   : > { %1222 = vrot.lane.b32.xlu2 %v1213_v8, %s4751_s24  ;;  %v1068_v8 = vsel %vm1032_vm8, %v4499_v55, %v1050_v1  ;;  %v1546_v28 = vrot.slane %v1544_v5, 1  ;;  %v1134_v5 = vpack.c.b16 %v1123_v63, %v5053_v61 }
  0x75   : > { %1220 = vrot.lane.b32.xlu1 %v1212_v15, %s4751_s24  ;;  %v5017_v46 = vpop.permute.xlu2 %455  ;;  %v5034_v15 = vpack.c.bf16 %v1068_v8, %v1068_v8  ;;  %v1167_v36 = vshrl.u32 %v1134_v5, 16 }
  0x77   : > { %v1120_v3 = vunpack.c.l.b16 %v5034_v15 }
  0x79   : > { %v1133_v53 = vpack.c.b16 %v1121_v33, %v1120_v3  ;;  %v1214_v21 = vpack.c.b16 %v1120_v3, %v1120_v3 }
  0x7a   : > { %1196 = vrot.lane.b32.xlu0 %v1151_v38, %s4752_s25 }
  0x7b   : > { %1583 = vrot.lane.b32.xlu2 %v1533_v41, %s4752_s25  ;;  %v4527_v41 = vld [vmem:[%s4801_s23 + $0x1e0] sm:$0xff]  ;;  %v1162_v1 = vshll.u32 %v1133_v53, 16  ;;  %v1160_v8 = vshrl.u32 %v1133_v53, 16 }
  0x7c   : > { %v1439_v55 = vmul.f32 0.2, %v4527_v41  ;;  %vm1421_vm12 = vcmp.ge.f32.partialorder %v4527_v41, 0.0 }
  0x7d   : > { %1248 = vrot.lane.b32.xlu1 %v5019_v49, %s4753_s26  ;;  %v1164_v9 = vrot.slane %v1162_v1, 1  ;;  %v4503_v1 = vld [vmem:[%s4801_s23 + $0x170] sm:$0xff] }
  0x7e   : > { %vm1036_vm0 = vcmp.ge.f32.partialorder %v4503_v1, 0.0 }
  0x7f   : > { %v1165_v33 = vor.u32 %v1164_v9, %v1160_v8 }
  0x82   : > { %1246 = vrot.lane.b32.xlu0 %v1151_v38, %s4753_s26  ;;  %v5040_v38 = vor.u32 %v1546_v28, %v1542_v25  ;;  %v1169_v25 = vshll.u32 %v1134_v5, 16 }
  0x83   : > { %1611 = vrot.lane.b32.xlu2 %v1602_v37, %s4751_s24  ;;  %v5032_v14 = vpop.permute.xlu2 %437  ;;  %v1457_v37 = vsel %vm1421_vm12, %v4527_v41, %v1439_v55 }
  0x84   : > { %v5067_v17 = vpack.c.bf16 %v1457_v37, %v1457_v37  ;;  %v1171_v40 = vrot.slane %v1169_v25, 1 }
  0x85   : > { %1609 = vrot.lane.b32.xlu1 %v1601_v4, %s4751_s24  ;;  %v1458_v4 = vsel %vm1422_vm13, %v4528_v26, %v1440_v57 }
  0x86   : > { %v1476_v19 = vpack.c.bf16 %v1458_v4, %v1458_v4  ;;  %v5083_v55 = vor.u32 %v1171_v40, %v1167_v36  ;;  %v1054_v4 = vmul.f32 0.2, %v4503_v1 }
  0x88   : > { %v1510_v35 = vunpack.c.l.b16 %v1476_v19  ;;  %v1215_v19 = vpack.c.b16 %v5053_v61, %v5053_v61 }
  0x8a   : > { %1585 = vrot.lane.b32.xlu0 %v1540_v24, %s4752_s25 }
  0x8b   : > { %771 = vrot.lane.b32.xlu2 %v763_v30, %s4751_s24  ;;  %v1460_v30 = vsel %vm1424_vm15, %v4530_v2, %v1442_v34 }
  0x8d   : > { %v5048_v0 = vpop.permute.xlu2 %439  ;;  %1637 = vrot.lane.b32.xlu1 %v5040_v38, %s4753_s26 }
  0x92   : > { %1635 = vrot.lane.b32.xlu0 %v1540_v24, %s4753_s26  ;;  %v1459_v24 = vsel %vm1423_vm14, %v4529_v59, %v1441_v50  ;;  %v4504_v59 = vld [vmem:[%s4801_s23 + $0x178] sm:$0x1] }
  0x93   : > { %799 = vrot.lane.b32.xlu2 %v4969_v58, %s4753_s26  ;;  %v764_v58 = vpack.c.b16 %v4919_v43, %v4919_v43  ;;  %v5076_v41 = vpack.c.bf16 %v1459_v24, %v1459_v24  ;;  %v1478_v43 = vpack.c.bf16 %v1460_v30, %v1460_v30  ;;  %v1055_v5 = vmul.f32 0.2, %v4504_v59 }
  0x94   : > { %vm1037_vm1 = vcmp.ge.f32.partialorder %v4504_v59, 0.0 }
  0x95   : > { %v5061_v11 = vpop.permute.xlu2 %461  ;;  %797 = vrot.lane.b32.xlu1 %v4978_v10, %s4753_s26  ;;  %v5065_v60 = vpop.permute.xlu1 %433  ;;  %v1509_v10 = vunpack.c.l.b16 %v5067_v17  ;;  %6543 = vst [vmem:[#allocation7_spill] sm:$0xff] %v5076_v41  ;;  %v5086_v57 = vunpack.c.l.b16 %v5076_v41  ;;  %v1512_v63 = vunpack.c.l.b16 %v1478_v43 }
  0x97   : > { %v1522_v26 = vpack.c.b16 %v1510_v35, %v1509_v10  ;;  %v1523_v8 = vpack.c.b16 %v1512_v63, %v5086_v57  ;;  %v1603_v24 = vpack.c.b16 %v1509_v10, %v1509_v10 }
  0x98   : > { %v5071_v28 = vpop.permute.xlu0 %429 }
  0x99   : > { %v1551_v2 = vshll.u32 %v1522_v26, 16  ;;  %v1549_v50 = vshrl.u32 %v1522_v26, 16  ;;  %v1558_v30 = vshll.u32 %v1523_v8, 16  ;;  %v1556_v40 = vshrl.u32 %v1523_v8, 16 }
  0x9a   : > { %773 = vrot.lane.b32.xlu0 %v764_v58, %s4751_s24  ;;  %v1072_v58 = vsel %vm1036_vm0, %v4503_v1, %v1054_v4  ;;  %v4532_v4 = vld [vmem:[%s4801_s23 + $0x208] sm:$0x1] }
  0x9b   : > { %1224 = vrot.lane.b32.xlu2 %v1214_v21, %s4751_s24  ;;  %v1553_v34 = vrot.slane %v1551_v2, 1  ;;  %v1073_v21 = vsel %vm1037_vm1, %v4504_v59, %v1055_v5  ;;  %v1560_v43 = vrot.slane %v1558_v30, 1  ;;  %v4531_v2 = vld [vmem:[%s4801_s23 + $0x200] sm:$0xff]  ;;  %vm1426_vm3 = vcmp.ge.f32.partialorder %v4532_v4, 0.0 }
  0x9c   : > { %v1091_v36 = vpack.c.bf16 %v1073_v21, %v1073_v21  ;;  %v1443_v8 = vmul.f32 0.2, %v4531_v2  ;;  %vm1425_vm2 = vcmp.ge.f32.partialorder %v4531_v2, 0.0 }
  0x9d   : > { %v5078_v3 = vpop.permute.xlu2 %467  ;;  %1200 = vrot.lane.b32.xlu1 %v1165_v33, %s4752_s25  ;;  %v1554_v35 = vor.u32 %v1553_v34, %v1549_v50  ;;  %v5119_v59 = vor.u32 %v1560_v43, %v1556_v40  ;;  %v1444_v50 = vmul.f32 0.2, %v4532_v4  ;;  %v766_v40 = vpack.c.b16 %v4959_v45, %v4959_v45  ;;  %v4467_v43 = vld [vmem:[%s4801_s23 + $0xe0] sm:$0xff] }
  0x9e   : > { %v1125_v63 = vunpack.c.l.b16 %v1091_v36  ;;  %v1461_v21 = vsel %vm1425_vm2, %v4531_v2, %v1443_v8  ;;  %v4506_v36 = vld [vmem:[%s4801_s23 + $0x188] sm:$0x1]  ;;  %v605_v45 = vmul.f32 0.2, %v4467_v43  ;;  %vm587_vm9 = vcmp.ge.f32.partialorder %v4467_v43, 0.0 }
  0x9f   : > { %v5081_v53 = vpop.permute.xlu1 %435  ;;  %v1462_v30 = vsel %vm1426_vm3, %v4532_v4, %v1444_v50  ;;  %v1057_v8 = vmul.f32 0.2, %v4506_v36  ;;  %vm1039_vm8 = vcmp.ge.f32.partialorder %v4506_v36, 0.0 }
  0xa0   : > { %v432_v37 = vpop.permute.xlu0 %431  ;;  %v1480_v4 = vpack.c.bf16 %v1462_v30, %v1462_v30 }
  0xa2   : > { %1198 = vrot.lane.b32.xlu0 %v5019_v49, %s4752_s25  ;;  %v4700_v49 = vld [vmem:[%s6518_s1] sm:$0xff] }
  0xa3   : > { %1252 = vrot.lane.b32.xlu2 %v5083_v55, %s4753_s26  ;;  %985 = vmatpush.bf16.msra.mxu1 %v4700_v49 }
  0xa5   : > { %v5095_v9 = vpop.permute.xlu2 %483  ;;  %1250 = vrot.lane.b32.xlu1 %v1165_v33, %s4753_s26  ;;  %v5105_v33 = vpack.c.bf16 %v1072_v58, %v1072_v58  ;;  %v1604_v58 = vpack.c.b16 %v5086_v57, %v5086_v57  ;;  %v5143_v57 = vpack.c.bf16 %v1461_v21, %v1461_v21 }
  0xa7   : > { %v5103_v25 = vpop.permute.xlu1 %443  ;;  %6544 = vst [vmem:[#allocation8_spill] sm:$0xff] %v5105_v33  ;;  %v5115_v10 = vunpack.c.l.b16 %v5105_v33 }
  0xa8   : > { %6545 = vst [vmem:[#allocation9_spill] sm:$0xff] %v5143_v57 }
  0xa9   : > { %v1135_v5 = vpack.c.b16 %v1125_v63, %v5115_v10  ;;  %v4468_v63 = vld [vmem:[%s4801_s23 + $0xe8] sm:$0x1] }
  0xaa   : > { %1226 = vrot.lane.b32.xlu0 %v1215_v19, %s4751_s24  ;;  %v606_v33 = vmul.f32 0.2, %v4468_v63  ;;  %vm588_vm10 = vcmp.ge.f32.partialorder %v4468_v63, 0.0 }
  0xab   : > { %1613 = vrot.lane.b32.xlu2 %v1603_v24, %s4751_s24  ;;  %v1176_v19 = vshll.u32 %v1135_v5, 16  ;;  %v4505_v24 = vld [vmem:[%s4801_s23 + $0x180] sm:$0xff]  ;;  %v1174_v27 = vshrl.u32 %v1135_v5, 16 }
  0xac   : > { %v5109_v61 = vpop.permute.xlu0 %441  ;;  %vm1038_vm7 = vcmp.ge.f32.partialorder %v4505_v24, 0.0  ;;  %v1056_v2 = vmul.f32 0.2, %v4505_v24  ;;  %v624_v20 = vsel %vm588_vm10, %v4468_v63, %v606_v33  ;;  %v4534_v33 = vld [vmem:[%s4801_s23 + $0x218] sm:$0x1] }
  0xad   : > { %v5111_v26 = vpop.permute.xlu2 %489  ;;  %1589 = vrot.lane.b32.xlu1 %v1554_v35, %s4752_s25  ;;  %v1178_v41 = vrot.slane %v1176_v19, 1  ;;  %vm1428_vm12 = vcmp.ge.f32.partialorder %v4534_v33, 0.0 }
  0xaf   : > { %v5117_v1 = vpop.permute.xlu1 %459  ;;  %v1179_v21 = vor.u32 %v1178_v41, %v1174_v27 }
  0xb2   : > { %1587 = vrot.lane.b32.xlu0 %v5040_v38, %s4752_s25 }
  0xb3   : > { %1641 = vrot.lane.b32.xlu2 %v5119_v59, %s4753_s26 }
  0xb4   : > { %v458_v34 = vpop.permute.xlu0 %457 }
  0xb5   : > { %v5128_v49 = vpop.permute.xlu2 %495  ;;  %1639 = vrot.lane.b32.xlu1 %v1554_v35, %s4753_s26  ;;  %v503_v35 = vsel %vm497_vm4, %v4809_v12, %v432_v37  ;;  %v500_v12 = vsel %vm497_vm4, %v4823_v32, %v5071_v28  ;;  %v1514_v32 = vunpack.c.l.b16 %v1480_v4  ;;  %v1075_v28 = vsel %vm1039_vm8, %v4506_v36, %v1057_v8  ;;  %v4533_v4 = vld [vmem:[%s4801_s23 + $0x210] sm:$0xff] }
  0xb6   : > { %v526_v50 = vsel %vm522_vm5, %v503_v35, %v458_v34  ;;  %v765_v34 = vpack.c.b16 %v4976_v6, %v4976_v6  ;;  %v524_v35 = vsel %vm522_vm5, %v500_v12, %v5017_v46  ;;  %v1445_v12 = vmul.f32 0.2, %v4533_v4 }
  0xb7   : > { %v5133_v38 = vpop.permute.xlu1 %465  ;;  %v543_v19 = vsel %vm539_vm6, %v526_v50, %v5095_v9  ;;  %v1093_v9 = vpack.c.bf16 %v1075_v28, %v1075_v28  ;;  %vm1427_vm13 = vcmp.ge.f32.partialorder %v4533_v4, 0.0 }
  0xb8   : > { %v949_v54 = vunpack.c.l.b16 %v543_v19 }
  0xba   : > { %1615 = vrot.lane.b32.xlu0 %v1604_v58, %s4751_s24  ;;  %v1074_v58 = vsel %vm1038_vm7, %v4505_v24, %v1056_v2  ;;  %v642_v24 = vpack.c.bf16 %v624_v20, %v624_v20  ;;  %v1127_v2 = vunpack.c.l.b16 %v1093_v9 }
  0xbb   : > { %801 = vrot.lane.b32.xlu2 %v5006_v7, %s4753_s26  ;;  %v5160_v7 = vunpack.c.l.b16 %v5143_v57  ;;  %v5168_v29 = vpack.c.bf16 %v1074_v58, %v1074_v58 }
  0xbc   : > { %v5152_v37 = vpop.permute.xlu0 %463  ;;  %v676_v50 = vunpack.c.l.b16 %v642_v24 }
  0xbd   : > { %v5154_v5 = vpop.permute.xlu2 %749  ;;  %777 = vrot.lane.b32.xlu1 %v766_v40, %s4751_s24  ;;  %v623_v40 = vsel %vm587_vm9, %v4467_v43, %v605_v45  ;;  %v1524_v27 = vpack.c.b16 %v1514_v32, %v5160_v7  ;;  %v1126_v63 = vunpack.c.l.b16 %v5168_v29  ;;  %v509_v45 = vsel %vm497_vm4, %v4835_v52, %v5081_v53 }
  0xbe   : > { %v5172_v41 = vpack.c.bf16 %v623_v40, %v623_v40  ;;  %v530_v52 = vsel %vm522_vm5, %v509_v45, %v5061_v11  ;;  %v1463_v40 = vsel %vm1427_vm13, %v4533_v4, %v1445_v12 }
  0xbf   : > { %v482_v30 = vpop.permute.xlu1 %481  ;;  %v1565_v8 = vshll.u32 %v1524_v27, 16  ;;  %v1563_v19 = vshrl.u32 %v1524_v27, 16 }
  0xc0   : > { %v541_v6 = vsel %vm539_vm6, %v524_v35, %v482_v30  ;;  %v5186_v20 = vunpack.c.l.b16 %v5172_v41  ;;  %v506_v30 = vsel %vm497_vm4, %v4813_v18, %v5065_v60 }
  0xc1   : > { %v948_v57 = vunpack.c.l.b16 %v541_v6  ;;  %v1567_v58 = vrot.slane %v1565_v8, 1  ;;  %v528_v53 = vsel %vm522_vm5, %v506_v30, %v5117_v1  ;;  %v4469_v6 = vld [vmem:[%s4801_s23 + $0xf0] sm:$0xff] }
  0xc2   : > { %775 = vrot.lane.b32.xlu0 %v765_v34, %s4751_s24  ;;  %v1136_v34 = vpack.c.b16 %v1127_v2, %v1126_v63  ;;  %v686_v32 = vpack.c.b16 %v676_v50, %v5186_v20  ;;  %v607_v2 = vmul.f32 0.2, %v4469_v6  ;;  %vm589_vm14 = vcmp.ge.f32.partialorder %v4469_v6, 0.0 }
  0xc3   : > { %1204 = vrot.lane.b32.xlu2 %v1179_v21, %s4752_s25  ;;  %v956_v46 = vpack.c.b16 %v949_v54, %v948_v57  ;;  %v1446_v54 = vmul.f32 0.2, %v4534_v33  ;;  %v5210_v11 = vor.u32 %v1567_v58, %v1563_v19  ;;  %v4508_v19 = vld [vmem:[%s4801_s23 + $0x198] sm:$0x1] }
  0xc4   : > { %v5176_v36 = vpop.permute.xlu0 %469  ;;  %v1183_v18 = vshll.u32 %v1136_v34, 16  ;;  %v727_v24 = vshll.u32 %v686_v32, 16  ;;  %v1181_v4 = vshrl.u32 %v1136_v34, 16  ;;  %v625_v12 = vsel %vm589_vm14, %v4469_v6, %v607_v2 }
  0xc5   : > { %v5178_v43 = vpop.permute.xlu2 %1194  ;;  %1202 = vrot.lane.b32.xlu1 %v5083_v55, %s4752_s25  ;;  %4489 = vmatmul.msk.bf16.vlgmr.msra.gmra.mxu1 %vm898_vm11, %v956_v46  ;;  %v1217_v55 = vpack.c.b16 %v1126_v63, %v1126_v63  ;;  %v1464_v28 = vsel %vm1428_vm12, %v4534_v33, %v1446_v54  ;;  %v5214_v63 = vpack.c.bf16 %v1463_v40, %v1463_v40  ;;  %v1059_v40 = vmul.f32 0.2, %v4508_v19 }
  0xc6   : > { %v1482_v60 = vpack.c.bf16 %v1464_v28, %v1464_v28  ;;  %v1185_v8 = vrot.slane %v1183_v18, 1  ;;  %v4470_v28 = vld [vmem:[%s4801_s23 + $0xf8] sm:$0x1]  ;;  %vm1041_vm1 = vcmp.ge.f32.partialorder %v4508_v19, 0.0 }
  0xc7   : > { %v488_v57 = vpop.permute.xlu1 %487  ;;  %v1515_v45 = vunpack.c.l.b16 %v5214_v63  ;;  %vm590_vm15 = vcmp.ge.f32.partialorder %v4470_v28, 0.0 }
  0xc8   : > { %v547_v35 = vsel %vm539_vm6, %v530_v52, %v488_v57  ;;  %v1516_v50 = vunpack.c.l.b16 %v1482_v60  ;;  %v729_v57 = vrot.slane %v727_v24, 1  ;;  %v5227_v34 = vor.u32 %v1185_v8, %v1181_v4  ;;  %v4702_v52 = vld [vmem:[%s6518_s1 + $0x10] sm:$0xff] }
  0xc9   : > { %v951_v1 = vunpack.c.l.b16 %v547_v35  ;;  %v5233_v35 = vpack.c.bf16 %v625_v12, %v625_v12  ;;  %1366 = vmatpush.bf16.msra.mxu2 %v4702_v52  ;;  %v512_v60 = vsel %vm497_vm4, %v4830_v44, %v5032_v14  ;;  %v1606_v24 = vpack.c.b16 %v1515_v45, %v1515_v45 }
  0xca   : > { %803 = vrot.lane.b32.xlu0 %v4997_v51, %s4753_s26  ;;  %v1077_v4 = vsel %vm1041_vm1, %v4508_v19, %v1059_v40  ;;  %v532_v44 = vsel %vm522_vm5, %v512_v60, %v5152_v37  ;;  %v4535_v60 = vld [vmem:[%s4801_s23 + $0x220] sm:$0xff]  ;;  %vm1787_vm1 = vcmask 57344  }
  0xcb   : > { %1254 = vrot.lane.b32.xlu2 %v1179_v21, %s4753_s26  ;;  %v1216_v21 = vpack.c.b16 %v5115_v10, %v5115_v10  ;;  %v725_v10 = vshrl.u32 %v686_v32, 16  ;;  %v1525_v32 = vpack.c.b16 %v1516_v50, %v1515_v45  ;;  %v1095_v12 = vpack.c.bf16 %v1077_v4, %v1077_v4 }
  0xcc   : > { %v486_v51 = vpop.permute.xlu0 %485  ;;  %v549_v37 = vsel %vm539_vm6, %v532_v44, %v5111_v26  ;;  %vm1429_vm7 = vcmp.ge.f32.partialorder %v4535_v60, 0.0 }
  0xcd   : > { %v545_v9 = vsel %vm539_vm6, %v528_v53, %v486_v51  ;;  %v5205_v27 = vpop.permute.xlu2 %1222  ;;  %1230 = vrot.lane.b32.xlu1 %v1217_v55, %s4751_s24  ;;  %v4507_v55 = vld [vmem:[%s4801_s23 + $0x190] sm:$0xff]  ;;  %v608_v53 = vmul.f32 0.2, %v4470_v28  ;;  %v5235_v6 = vor.u32 %v729_v57, %v725_v10  ;;  %v1570_v57 = vshrl.u32 %v1525_v32, 16 }
  0xce   : > { %v950_v46 = vunpack.c.l.b16 %v545_v9  ;;  %v1058_v51 = vmul.f32 0.2, %v4507_v55  ;;  %vm1040_vm0 = vcmp.ge.f32.partialorder %v4507_v55, 0.0  ;;  %v1129_v40 = vunpack.c.l.b16 %v1095_v12 }
  0xcf   : > { %v5212_v33 = vpop.permute.xlu1 %493 }
  0xd0   : > { %v957_v54 = vpack.c.b16 %v951_v1, %v950_v46  ;;  %v1572_v1 = vshll.u32 %v1525_v32, 16  ;;  %v5248_v46 = vunpack.c.l.b16 %v5233_v35  ;;  %v1076_v2 = vsel %vm1040_vm0, %v4507_v55, %v1058_v51 }
  0xd1   : > { %v1605_v55 = vpack.c.b16 %v5160_v7, %v5160_v7  ;;  %vm1785_vm0 = vcmask 60416  }
  0xd2   : > { %1228 = vrot.lane.b32.xlu0 %v1216_v21, %s4751_s24  ;;  %v515_v21 = vsel %vm497_vm4, %v4856_v16, %v5048_v0  ;;  %v4509_v0 = vld [vmem:[%s4801_s23 + $0x1a0] sm:$0xff]  ;;  %v1574_v45 = vrot.slane %v1572_v1, 1  ;;  %v4510_v1 = vld [vmem:[%s4801_s23 + $0x1a8] sm:$0x1] }
  0xd3   : > { %1593 = vrot.lane.b32.xlu2 %v5210_v11, %s4752_s25  ;;  %v534_v50 = vsel %vm522_vm5, %v515_v21, %v5133_v38  ;;  %v5264_v38 = vpack.c.bf16 %v1076_v2, %v1076_v2  ;;  %v1060_v52 = vmul.f32 0.2, %v4509_v0  ;;  %vm1042_vm2 = vcmp.ge.f32.partialorder %v4509_v0, 0.0  ;;  %v4536_v21 = vld [vmem:[%s4801_s23 + $0x228] sm:$0x1] }
  0xd4   : > { %v492_v58 = vpop.permute.xlu0 %491  ;;  %v5274_v51 = vor.u32 %v1574_v45, %v1570_v57  ;;  %v518_v2 = vsel %vm497_vm4, %v4877_v47, %v5109_v61  ;;  %v1061_v44 = vmul.f32 0.2, %v4510_v1  ;;  %vm1043_vm3 = vcmp.ge.f32.partialorder %v4510_v1, 0.0 }
  0xd5   : > { %v5223_v30 = vpop.permute.xlu2 %1583  ;;  %1591 = vrot.lane.b32.xlu1 %v5119_v59, %s4752_s25  ;;  %4490 = vmatmul.msk.bf16.gmra.mxu1 %vm898_vm11, %v957_v54  ;;  %v626_v59 = vsel %vm590_vm15, %v4470_v28, %v608_v53  ;;  %v551_v16 = vsel %vm539_vm6, %v534_v50, %v492_v58  ;;  %v767_v58 = vpack.c.b16 %v5186_v20, %v5186_v20  ;;  %v952_v53 = vunpack.c.l.b16 %v549_v37  ;;  %v4703_v50 = vld [vmem:[%s6518_s1 + $0x18] sm:$0xff] }
  0xd6   : > { %v644_v18 = vpack.c.bf16 %v626_v59, %v626_v59  ;;  %v953_v19 = vunpack.c.l.b16 %v551_v16  ;;  %v5277_v26 = vunpack.c.l.b16 %v5264_v38  ;;  %v1078_v20 = vsel %vm1042_vm2, %v4509_v0, %v1060_v52  ;;  %1755 = vmatpush.bf16.msra.mxu3 %v4703_v50 }
  0xd7   : > { %v5237_v9 = vpop.permute.xlu1 %747  ;;  %v1096_v16 = vpack.c.bf16 %v1078_v20, %v1078_v20  ;;  %v1447_v0 = vmul.f32 0.2, %v4535_v60  ;;  %vm1430_vm8 = vcmp.ge.f32.partialorder %v4536_v21, 0.0  ;;  %v1079_v61 = vsel %vm1043_vm3, %v4510_v1, %v1061_v44 }
  0xd8   : > { %v678_v8 = vunpack.c.l.b16 %v644_v18  ;;  %v958_v7 = vpack.c.b16 %v953_v19, %v952_v53  ;;  %v521_v45 = vsel %vm497_vm4, %v4867_v31, %v5103_v25  ;;  %v1097_v12 = vpack.c.bf16 %v1079_v61, %v1079_v61  ;;  %v4472_v61 = vld [vmem:[%s4801_s23 + $0x108] sm:$0x1] }
  0xd9   : > { %v538_v37 = vsel %vm522_vm5, %v521_v45, %v5176_v36  ;;  %v1465_v52 = vsel %vm1429_vm7, %v4535_v60, %v1447_v0  ;;  %v4701_v60 = vld [vmem:[%s6518_s1 + $0x8] sm:$0xff]  ;;  %v4538_v0 = vld [vmem:[%s4801_s23 + $0x238] sm:$0x1]  ;;  %vm592_vm10 = vcmp.ge.f32.partialorder %v4472_v61, 0.0  ;;  %vm1793_vm2 = vsmask.f32 256 }
  0xda   : > { %1256 = vrot.lane.b32.xlu0 %v5227_v34, %s4753_s26  ;;  %v687_v10 = vpack.c.b16 %v678_v8, %v5248_v46  ;;  %v1137_v8 = vpack.c.b16 %v1129_v40, %v5277_v26  ;;  %v1237_v53 = vunpack.c.l.b16 %v1097_v12  ;;  %v555_v31 = vsel %vm539_vm6, %v538_v37, %v5128_v49  ;;  %918 = vmatpush.bf16.msra.mxu0 %v4701_v60  ;;  %vm5478_vm7 = vmand %vm1787_vm1, %vm1793_vm2 }
  0xdb   : > { %755 = vrot.lane.b32.xlu2 %v5235_v6, %s4752_s25  ;;  %v768_v49 = vpack.c.b16 %v5248_v46, %v5248_v46  ;;  %v955_v1 = vunpack.c.l.b16 %v555_v31  ;;  %v610_v37 = vmul.f32 0.2, %v4472_v61  ;;  %vm1432_vm12 = vcmp.ge.f32.partialorder %v4538_v0, 0.0 }
  0xdc   : > { %v5257_v14 = vpop.permute.xlu0 %745  ;;  %v734_v32 = vshll.u32 %v687_v10, 16  ;;  %v732_v59 = vshrl.u32 %v687_v10, 16  ;;  %v1448_v10 = vmul.f32 0.2, %v4536_v21  ;;  %v1190_v19 = vshll.u32 %v1137_v8, 16 }
  0xdd   : > { %v5261_v54 = vpop.permute.xlu2 %1611  ;;  %1619 = vrot.lane.b32.xlu1 %v1606_v24, %s4751_s24  ;;  %vm1825_vm3 = vsmask.f32 7938 }
  0xde   : > { %v736_v18 = vrot.slane %v734_v32, 1  ;;  %v1466_v32 = vsel %vm1430_vm8, %v4536_v21, %v1448_v10  ;;  %v1192_v20 = vrot.slane %v1190_v19, 1  ;;  %v1218_v21 = vpack.c.b16 %v5277_v26, %v5277_v26  ;;  %v4471_v10 = vld [vmem:[%s4801_s23 + $0x100] sm:$0xff]  ;;  %vm5486_vm8 = vmand %vm1787_vm1, %vm1825_vm3 }
  0xdf   : > { %v5272_v28 = vpop.permute.xlu1 %753  ;;  %v609_v12 = vmul.f32 0.2, %v4471_v10  ;;  %vm591_vm9 = vcmp.ge.f32.partialorder %v4471_v10, 0.0 }
  0xe0   : > { %v5298_v47 = vor.u32 %v736_v18, %v732_v59  ;;  %v1484_v59 = vpack.c.bf16 %v1466_v32, %v1466_v32  ;;  %v4537_v32 = vld [vmem:[%s4801_s23 + $0x230] sm:$0xff] }
  0xe1   : > { %vm1431_vm13 = vcmp.ge.f32.partialorder %v4537_v32, 0.0 }
  0xe2   : > { %1617 = vrot.lane.b32.xlu0 %v1605_v55, %s4751_s24  ;;  %v536_v55 = vsel %vm522_vm5, %v518_v2, %v5078_v3  ;;  %v1188_v3 = vshrl.u32 %v1137_v8, 16  ;;  %v1518_v44 = vunpack.c.l.b16 %v1484_v59 }
  0xe3   : > { %779 = vrot.lane.b32.xlu2 %v767_v58, %s4751_s24  ;;  %v5309_v58 = vunpack.c.l.b16 %v1096_v16  ;;  %v553_v40 = vsel %vm539_vm6, %v536_v55, %v5212_v33  ;;  %v5324_v33 = vpack.c.bf16 %v1465_v52, %v1465_v52  ;;  %v1264_v16 = vsel %vm497_vm4, %v4944_v13, %v5178_v43 }
  0xe4   : > { %v5283_v24 = vpop.permute.xlu0 %751  ;;  %v954_v18 = vunpack.c.l.b16 %v553_v40  ;;  %v1193_v50 = vor.u32 %v1192_v20, %v1188_v3  ;;  %v627_v40 = vsel %vm591_vm9, %v4471_v10, %v609_v12  ;;  %vm5543_vm9 = vmand %vm1785_vm0, %vm1825_vm3 }
  0xe5   : > { %v5289_v4 = vpop.permute.xlu2 %771  ;;  %1645 = vrot.lane.b32.xlu1 %v5274_v51, %s4753_s26  ;;  %4491 = vmatmul.msk.bf16.gmra.mxu1 %vm898_vm11, %v958_v7  ;;  %v1238_v36 = vpack.c.b16 %v1237_v53, %v5309_v58  ;;  %v5337_v46 = vunpack.c.l.b16 %v5324_v33  ;;  %v1450_v53 = vmul.f32 0.2, %v4538_v0  ;;  %v5353_v3 = vpack.c.bf16 %v627_v40, %v627_v40 }
  0xe6   : > { %v959_v26 = vpack.c.b16 %v955_v1, %v954_v18 }
  0xe7   : > { %v1221_v57 = vpop.permute.xlu1 %1220  ;;  %v1526_v43 = vpack.c.b16 %v1518_v44, %v5337_v46  ;;  %v1468_v60 = vsel %vm1432_vm12, %v4538_v0, %v1450_v53  ;;  %vm2921_vm12 = vsmask.f32 7440 }
  0xe8   : > { %v1287_v55 = vsel %vm522_vm5, %v1264_v16, %v1221_v57 }
  0xe9   : > { %v1577_v44 = vshrl.u32 %v1526_v43, 16 }
  0xea   : > { %1643 = vrot.lane.b32.xlu0 %v5210_v11, %s4753_s26 }
  0xeb   : > { %807 = vrot.lane.b32.xlu2 %v5298_v47, %s4753_s26 }
  0xec   : > { %v1197_v25 = vpop.permute.xlu0 %1196 }
  0xed   : > { %v1267_v11 = vsel %vm497_vm4, %v4983_v22, %v1197_v25  ;;  %v5320_v7 = vpop.permute.xlu2 %799  ;;  %805 = vrot.lane.b32.xlu1 %v5235_v6, %s4753_s26  ;;  %v1242_v6 = vshll.u32 %v1238_v36, 16  ;;  %v628_v25 = vsel %vm592_vm10, %v4472_v61, %v610_v37  ;;  %v1607_v61 = vpack.c.b16 %v5337_v46, %v5337_v46  ;;  %v4473_v46 = vld [vmem:[%s4801_s23 + $0x110] sm:$0xff] }
  0xee   : > { %v1289_v2 = vsel %vm522_vm5, %v1267_v11, %v5205_v27  ;;  %v1240_v27 = vshrl.u32 %v1238_v36, 16  ;;  %v1449_v11 = vmul.f32 0.2, %v4537_v32  ;;  %v646_v59 = vpack.c.bf16 %v628_v25, %v628_v25 }
  0xef   : > { %v1249_v22 = vpop.permute.xlu1 %1248  ;;  %v1244_v45 = vrot.slane %v1242_v6, 1  ;;  %vm593_vm14 = vcmp.ge.f32.partialorder %v4473_v46, 0.0  ;;  %vm2920_vm10 = vsmask.f32 3328 }
  0xf0   : > { %v1305_v8 = vsel %vm539_vm6, %v1289_v2, %v1249_v22  ;;  %v5358_v22 = vunpack.c.l.b16 %v5353_v3  ;;  %v1467_v6 = vsel %vm1431_vm13, %v4537_v32, %v1449_v11  ;;  %v1486_v2 = vpack.c.bf16 %v1468_v60, %v1468_v60  ;;  %v4474_v60 = vld [vmem:[%s4801_s23 + $0x118] sm:$0x1]  ;;  %vm5896_vm13 = vmor %vm2920_vm10, %vm2921_vm12 }
  0xf1   : > { %v1330_v19 = vunpack.c.l.b16 %v1305_v8  ;;  %v1245_v20 = vor.u32 %v1244_v45, %v1240_v27  ;;  %v1485_v0 = vpack.c.bf16 %v1467_v6, %v1467_v6  ;;  %v612_v6 = vmul.f32 0.2, %v4474_v60 }
  0xf2   : > { %781 = vrot.lane.b32.xlu0 %v768_v49, %s4751_s24  ;;  %v1579_v49 = vshll.u32 %v1526_v43, 16  ;;  %v1626_v45 = vunpack.c.l.b16 %v1486_v2  ;;  %vm594_vm15 = vcmp.ge.f32.partialorder %v4474_v60, 0.0 }
  0xf3   : > { %1232 = vrot.lane.b32.xlu2 %v1218_v21, %s4751_s24  ;;  %v680_v21 = vunpack.c.l.b16 %v646_v59 }
  0xf4   : > { %v1247_v52 = vpop.permute.xlu0 %1246  ;;  %v1581_v16 = vrot.slane %v1579_v49, 1 }
  0xf5   : > { %v1303_v13 = vsel %vm539_vm6, %v1287_v55, %v1247_v52  ;;  %1208 = vrot.lane.b32.xlu1 %v1193_v50, %s4752_s25  ;;  %4492 = vmatmul.msk.bf16.gmra.mxu1 %vm898_vm11, %v959_v26  ;;  %v5355_v57 = vpop.permute.xlu2 %1224  ;;  %v688_v26 = vpack.c.b16 %v680_v21, %v5358_v22  ;;  %v1600_v55 = vunpack.c.l.b16 %v1485_v0 }
  0xf6   : > { %v1329_v31 = vunpack.c.l.b16 %v1303_v13  ;;  %v5377_v12 = vor.u32 %v1581_v16, %v1577_v44  ;;  %v630_v16 = vsel %vm594_vm15, %v4474_v60, %v612_v6  ;;  %vm2427_vm15 = vcmask 27648  }
  0xf7   : > { %v1610_v36 = vpop.permute.xlu1 %1609  ;;  %v741_v37 = vshll.u32 %v688_v26, 16  ;;  %v1627_v32 = vpack.c.b16 %v1626_v45, %v1600_v55  ;;  %v739_v43 = vshrl.u32 %v688_v26, 16  ;;  %v1608_v44 = vpack.c.b16 %v1600_v55, %v1600_v55 }
  0xf8   : > { %v1337_v18 = vpack.c.b16 %v1330_v19, %v1329_v31  ;;  %v611_v31 = vmul.f32 0.2, %v4473_v46 }
  0xf9   : > { %v743_v53 = vrot.slane %v741_v37, 1  ;;  %v1629_v21 = vshrl.u32 %v1627_v32, 16 }
  0xfa   : > { %1206 = vrot.lane.b32.xlu0 %v5227_v34, %s4752_s25  ;;  %4517 = vmatmul.msk.bf16.vlgmr.msra.gmra.mxu2 %vm898_vm11, %v1337_v18  ;;  %v1219_v34 = vpack.c.b16 %v5309_v58, %v5309_v58  ;;  %v1653_v58 = vsel %vm497_vm4, %v4987_v56, %v5223_v30  ;;  %v815_v56 = vsel %vm497_vm4, %v4941_v62, %v5257_v14 }
  0xfb   : > { %1260 = vrot.lane.b32.xlu2 %v1245_v20, %s4753_s26  ;;  %v838_v11 = vsel %vm522_vm5, %v815_v56, %v5289_v4  ;;  %v744_v20 = vor.u32 %v743_v53, %v739_v43  ;;  %v629_v18 = vsel %vm593_vm14, %v4473_v46, %v611_v31  ;;  %v818_v62 = vsel %vm497_vm4, %v4922_v48, %v5237_v9 }
  0xfc   : > { %v1586_v1 = vpop.permute.xlu0 %1585  ;;  %v647_v2 = vpack.c.bf16 %v629_v18, %v629_v18  ;;  %v769_v48 = vpack.c.b16 %v5358_v22, %v5358_v22  ;;  %v648_v9 = vpack.c.bf16 %v630_v16, %v630_v16  ;;  %vm2377_vm14 = vcmask 261120  }
  0xfd   : > { %v1656_v8 = vsel %vm497_vm4, %v5010_v23, %v1586_v1  ;;  %1258 = vrot.lane.b32.xlu1 %v1193_v50, %s4753_s26  ;;  %v5374_v23 = vpop.permute.xlu2 %1252 }
  0xfe   : > { %v1678_v27 = vsel %vm522_vm5, %v1656_v8, %v5261_v54  ;;  %v1676_v54 = vsel %vm522_vm5, %v1653_v58, %v1610_v36  ;;  %v1631_v36 = vshll.u32 %v1627_v32, 16 }
  0xff   : > { %v1638_v10 = vpop.permute.xlu1 %1637 }
 0x100   : > { %v1694_v50 = vsel %vm539_vm6, %v1678_v27, %v1638_v10  ;;  %v1633_v4 = vrot.slane %v1631_v36, 1  ;;  %v788_v27 = vunpack.c.l.b16 %v648_v9 }
 0x101   : > { %v1719_v19 = vunpack.c.l.b16 %v1694_v50 }
 0x102   : > { %1234 = vrot.lane.b32.xlu0 %v1219_v34, %s4751_s24  ;;  %v1634_v10 = vor.u32 %v1633_v4, %v1629_v21 }
 0x103   : > { %1621 = vrot.lane.b32.xlu2 %v1607_v61, %s4751_s24  ;;  %v762_v61 = vunpack.c.l.b16 %v647_v2 }
 0x104   : > { %v1636_v52 = vpop.permute.xlu0 %1635 }
 0x105   : > { %v1692_v13 = vsel %vm539_vm6, %v1676_v54, %v1636_v52  ;;  %1597 = vrot.lane.b32.xlu1 %v5377_v12, %s4752_s25  ;;  %v1614_v49 = vpop.permute.xlu2 %1613  ;;  %v770_v43 = vpack.c.b16 %v762_v61, %v762_v61 }
 0x106   : > { %v1718_v40 = vunpack.c.l.b16 %v1692_v13 }
 0x107   : > { %v798_v25 = vpop.permute.xlu1 %797 }
 0x108   : > { %v1726_v30 = vpack.c.b16 %v1719_v19, %v1718_v40  ;;  %v854_v59 = vsel %vm539_vm6, %v838_v11, %v798_v25 }
 0x109   : > { %v880_v1 = vunpack.c.l.b16 %v854_v59 }
 0x10a   : > { %1595 = vrot.lane.b32.xlu0 %v5274_v51, %s4752_s25  ;;  %4545 = vmatmul.msk.bf16.vlgmr.msra.gmra.mxu3 %vm898_vm11, %v1726_v30 }
 0x10b   : > { %759 = vrot.lane.b32.xlu2 %v744_v20, %s4752_s25 }
 0x10c   : > { %v774_v14 = vpop.permute.xlu0 %773 }
 0x10d   : > { %v840_v51 = vsel %vm522_vm5, %v818_v62, %v774_v14  ;;  %757 = vrot.lane.b32.xlu1 %v5298_v47, %s4752_s25  ;;  %v789_v47 = vpack.c.b16 %v788_v27, %v762_v61  ;;  %v1642_v45 = vpop.permute.xlu2 %1641  ;;  %v6548_v27 = vld [vmem:[#allocation6_spill] sm:$0xff] }
 0x10e   : > { %v856_v8 = vsel %vm539_vm6, %v840_v51, %v5320_v7  ;;  %v6547_v51 = vld [vmem:[#allocation5_spill] sm:$0xff] }
 0x10f   : > { %v881_v26 = vunpack.c.l.b16 %v856_v8  ;;  %v1201_v34 = vpop.permute.xlu1 %1200  ;;  %v793_v50 = vshll.u32 %v789_v47, 16  ;;  %v791_v55 = vshrl.u32 %v789_v47, 16  ;;  %v824_v2 = vsel %vm497_vm4, %v6547_v51, %v5283_v24 }
 0x110   : > { %v1273_v52 = vsel %vm497_vm4, %v5034_v15, %v1201_v34 }
 0x111   : > { %v888_v0 = vpack.c.b16 %v881_v26, %v880_v1  ;;  %v795_v58 = vrot.slane %v793_v50, 1 }
 0x112   : > { %1623 = vrot.lane.b32.xlu0 %v1608_v44, %s4751_s24 }
 0x113   : > { %4481 = vmatmul.msk.bf16.vlgmr.msra.gmra.mxu0 %vm898_vm11, %v888_v0  ;;  %783 = vrot.lane.b32.xlu2 %v769_v48, %s4751_s24  ;;  %v796_v54 = vor.u32 %v795_v58, %v791_v55 }
 0x114   : > { %v1199_v7 = vpop.permute.xlu0 %1198 }
 0x115   : > { %1649 = vrot.lane.b32.xlu1 %v1634_v10, %s4753_s26  ;;  %v1270_v22 = vsel %vm497_vm4, %v4991_v39, %v1199_v7  ;;  %v802_v53 = vpop.permute.xlu2 %801 }
 0x116   : > { %v1291_v46 = vsel %vm522_vm5, %v1270_v22, %v5355_v57 }
 0x117   : > { %v1251_v37 = vpop.permute.xlu1 %1250 }
 0x118   : > { %v1307_v19 = vsel %vm539_vm6, %v1291_v46, %v1251_v37 }
 0x119   : > { %v1331_v13 = vunpack.c.l.b16 %v1307_v19 }
 0x11a   : > { %1647 = vrot.lane.b32.xlu0 %v5377_v12, %s4753_s26 }
 0x11b   : > { %811 = vrot.lane.b32.xlu2 %v796_v54, %s4753_s26 }
 0x11c   : > { %v1227_v32 = vpop.permute.xlu0 %1226 }
 0x11d   : > { %v1293_v39 = vsel %vm522_vm5, %v1273_v52, %v1227_v32  ;;  %809 = vrot.lane.b32.xlu1 %v744_v20, %s4753_s26  ;;  %v1205_v30 = vpop.permute.xlu2 %1204 }
 0x11e   : > { %v1309_v57 = vsel %vm539_vm6, %v1293_v39, %v5374_v23  ;;  %v6550_v39 = vld [vmem:[#allocation9_spill] sm:$0xff] }
 0x11f   : > { %v1332_v40 = vunpack.c.l.b16 %v1309_v57  ;;  %v1590_v12 = vpop.permute.xlu1 %1589 }
 0x120   : > { %v1662_v23 = vsel %vm497_vm4, %v5067_v17, %v1590_v12 }
 0x121   : > { %v1338_v31 = vpack.c.b16 %v1332_v40, %v1331_v13 }
 0x122   : > { %785 = vrot.lane.b32.xlu0 %v770_v43, %s4751_s24 }
 0x123   : > { %4518 = vmatmul.msk.bf16.gmra.mxu2 %vm898_vm11, %v1338_v31  ;;  %v6551_v31 = vld [vmem:[#allocation7_spill] sm:$0xff] }
 0x124   : > { %v1588_v25 = vpop.permute.xlu0 %1587 }
 0x125   : > { %v1659_v15 = vsel %vm497_vm4, %v5015_v42, %v1588_v25  ;;  %v1255_v4 = vpop.permute.xlu2 %1254 }
 0x126   : > { %v1680_v36 = vsel %vm522_vm5, %v1659_v15, %v1614_v49  ;;  %v6546_v49 = vld [vmem:[#allocation3_spill] sm:$0xff] }
 0x127   : > { %v1640_v56 = vpop.permute.xlu1 %1639  ;;  %v821_v6 = vsel %vm497_vm4, %v6546_v49, %v5154_v5 }
 0x128   : > { %v1696_v11 = vsel %vm539_vm6, %v1680_v36, %v1640_v56  ;;  %v4754_v36 = vmov 0  }
 0x129   : > { %v1720_v59 = vunpack.c.l.b16 %v1696_v11  ;;  %1786 = vst.msk [vmem:[#allocation2] sm:$0xf] %vm1785_vm0, %v4754_v36 }
 0x12a   : > { %1788 = vst.msk [vmem:[#allocation2 + $0x4] sm:$0x1] %vm1787_vm1, %v4754_v36 }
 0x12b   : > { %1790 = vst.msk [vmem:[#allocation2 + $0x48] sm:$0xf] %vm1785_vm0, %v4754_v36 }
 0x12c   : > { %v1616_v20 = vpop.permute.xlu0 %1615  ;;  %1791 = vst.msk [vmem:[#allocation2 + $0x4c] sm:$0x1] %vm1787_vm1, %v4754_v36 }
 0x12d   : > { %v1682_v18 = vsel %vm522_vm5, %v1662_v23, %v1616_v20  ;;  %v1594_v26 = vpop.permute.xlu2 %1593 }
 0x12e   : > { %v1698_v60 = vsel %vm539_vm6, %v1682_v18, %v1642_v45  ;;  %v6549_v45 = vld [vmem:[#allocation8_spill] sm:$0xff]  ;;  %v1668_v57 = vsel %vm497_vm4, %v6550_v39, %v1594_v26 }
 0x12f   : > { %v1721_v62 = vunpack.c.l.b16 %v1698_v60  ;;  %v778_v14 = vpop.permute.xlu1 %777  ;;  %v1279_v50 = vsel %vm497_vm4, %v6549_v45, %v1205_v30 }
 0x130   : > { %v844_v44 = vsel %vm522_vm5, %v824_v2, %v778_v14  ;;  %v2504_v36 = vld [vmem:[#allocation2] sm:$0xe] }
 0x131   : > { %v1727_v21 = vpack.c.b16 %v1721_v62, %v1720_v59  ;;  %v6552_v59 = vld [vmem:[#allocation4_spill] sm:$0xff] }
 0x132   : > { %v827_v18 = vsel %vm497_vm4, %v6552_v59, %v5272_v28 }
 0x133   : > { %4546 = vmatmul.msk.bf16.gmra.mxu3 %vm898_vm11, %v1727_v21 }
 0x134   : > { %v776_v42 = vpop.permute.xlu0 %775 }
 0x135   : > { %v842_v17 = vsel %vm522_vm5, %v821_v6, %v776_v42  ;;  %v756_v61 = vpop.permute.xlu2 %755  ;;  %v1795_v6 = vld [vmem:[#allocation2] sm:$0x1] }
 0x136   : > { %v858_v8 = vsel %vm539_vm6, %v842_v17, %v802_v53  ;;  %v830_v42 = vsel %vm497_vm4, %v5172_v41, %v756_v61  ;;  %v1796_v2 = vsel %vm5478_vm7, 0, %v1795_v6 }
 0x137   : > { %v1203_v1 = vpop.permute.xlu1 %1202  ;;  %v882_v48 = vunpack.c.l.b16 %v858_v8  ;;  %1797 = vst [vmem:[#allocation2] sm:$0x1] %v1796_v2 }
 0x138   : > { %v1276_v47 = vsel %vm497_vm4, %v6548_v27, %v1203_v1  ;;  %v1827_v1 = vld [vmem:[#allocation2 + $0x4] sm:$0x1] }
 0x139   : > { %v1828_v8 = vsel %vm5486_vm8, 0, %v1827_v1 }
 0x13a   : > { %1829 = vst [vmem:[#allocation2 + $0x4] sm:$0x1] %v1828_v8 }
 0x13c   : > { %v804_v16 = vpop.permute.xlu0 %803 }
 0x13d   : > { %v860_v34 = vsel %vm539_vm6, %v844_v44, %v804_v16  ;;  %v780_v32 = vpop.permute.xlu2 %779 }
 0x13e   : > { %v883_v9 = vunpack.c.l.b16 %v860_v34  ;;  %v846_v62 = vsel %vm522_vm5, %v827_v18, %v780_v32 }
 0x13f   : > { %v1231_v0 = vpop.permute.xlu1 %1230 }
 0x140   : > { %v889_v10 = vpack.c.b16 %v883_v9, %v882_v48  ;;  %v1297_v37 = vsel %vm522_vm5, %v1279_v50, %v1231_v0  ;;  %v4551_v9 = vld [vmem:[#allocation2] sm:$0xf] }
 0x142   : > { %4482 = vmatmul.msk.bf16.gmra.mxu0 %vm898_vm11, %v889_v10  ;;  %v4704_v10 = vld [vmem:[#allocation2] sm:$0x10] }
 0x143   : > { %v4552_v61 = vor.u32 %v4704_v10, %v4551_v9 }
 0x144   : > { %v1229_v5 = vpop.permute.xlu0 %1228 }
 0x145   : > { %v1295_v7 = vsel %vm522_vm5, %v1276_v47, %v1229_v5  ;;  %v808_v12 = vpop.permute.xlu2 %807  ;;  %v2079_v47 = vshll.u32 %v4552_v61, 16 }
 0x146   : > { %v1311_v22 = vsel %vm539_vm6, %v1295_v7, %v1255_v4  ;;  %v2077_v7 = vshrl.u32 %v4552_v61, 16 }
 0x147   : > { %v1592_v24 = vpop.permute.xlu1 %1591  ;;  %v1333_v46 = vunpack.c.l.b16 %v1311_v22  ;;  %v2081_v45 = vrot.slane %v2079_v47, 1 }
 0x148   : > { %v1665_v25 = vsel %vm497_vm4, %v6551_v31, %v1592_v24  ;;  %v1833_v31 = vld [vmem:[#allocation2 + $0x14] sm:$0x1] }
 0x14c   : > { %v1257_v55 = vpop.permute.xlu0 %1256 }
 0x14d   : > { %v1313_v58 = vsel %vm539_vm6, %v1297_v37, %v1257_v55  ;;  %v1233_v21 = vpop.permute.xlu2 %1232 }
 0x14e   : > { %v1334_v54 = vunpack.c.l.b16 %v1313_v58  ;;  %v1798_v58 = vld [vmem:[#allocation2 + $0x8] sm:$0x1] }
 0x14f   : > { %v1620_v19 = vpop.permute.xlu1 %1619 }
 0x150   : > { %v1339_v52 = vpack.c.b16 %v1334_v54, %v1333_v46  ;;  %v1686_v53 = vsel %vm522_vm5, %v1668_v57, %v1620_v19  ;;  %v1822_v46 = vld [vmem:[#allocation2 + $0x48] sm:$0x1]  ;;  %v2082_v54 = vor.u32 %v2081_v45, %v2077_v7 }
 0x151   : > { %v1823_v32 = vsel %vm5478_vm7, 0, %v1822_v46 }
 0x152   : > { %4519 = vmatmul.msk.bf16.gmra.mxu2 %vm898_vm11, %v1339_v52  ;;  %v1799_v52 = vsel %vm5478_vm7, 0, %v1798_v58  ;;  %2132 = vrot.lane.b32.xlu0 %v2082_v54, %s4751_s24  ;;  %1824 = vst [vmem:[#allocation2 + $0x48] sm:$0x1] %v1823_v32 }
 0x153   : > { %1800 = vst [vmem:[#allocation2 + $0x8] sm:$0x1] %v1799_v52 }
 0x154   : > { %v1618_v13 = vpop.permute.xlu0 %1617 }
 0x155   : > { %v1684_v15 = vsel %vm522_vm5, %v1665_v25, %v1618_v13  ;;  %v1261_v48 = vpop.permute.xlu2 %1260 }
 0x157   : > { %v1646_v43 = vpop.permute.xlu1 %1645 }
 0x158   : > { %v1702_v40 = vsel %vm539_vm6, %v1686_v53, %v1646_v43 }
 0x159   : > { %v1723_v56 = vunpack.c.l.b16 %v1702_v40 }
 0x15c   : > { %v1644_v30 = vpop.permute.xlu0 %1643 }
 0x15d   : > { %v1700_v11 = vsel %vm539_vm6, %v1684_v15, %v1644_v30  ;;  %v1622_v39 = vpop.permute.xlu2 %1621  ;;  %v5517_v30 = vld [vmem:[#allocation2 + $0x4] sm:$0x1] }
 0x15e   : > { %v1722_v23 = vunpack.c.l.b16 %v1700_v11  ;;  %v2553_v11 = vunpack.c.l.b16 %v5517_v30 }
 0x15f   : > { %v806_v20 = vpop.permute.xlu1 %805 }
 0x160   : > { %v1728_v60 = vpack.c.b16 %v1723_v56, %v1722_v23  ;;  %v862_v14 = vsel %vm539_vm6, %v846_v62, %v806_v20  ;;  %v1834_v56 = vsel %vm5486_vm8, 0, %v1833_v31  ;;  %v2584_v23 = vunpack.c.l.b16 %v2504_v36 }
 0x161   : > { %v884_v17 = vunpack.c.l.b16 %v862_v14  ;;  %1835 = vst [vmem:[#allocation2 + $0x14] sm:$0x1] %v1834_v56 }
 0x162   : > { %4547 = vmatmul.msk.bf16.gmra.mxu3 %vm898_vm11, %v1728_v60  ;;  %v2592_v59 = vpack.c.b16 %v2553_v11, %v2584_v23  ;;  %v1804_v23 = vld [vmem:[#allocation2 + $0x18] sm:$0x1] }
 0x164   : > { %v782_v49 = vpop.permute.xlu0 %781  ;;  %v2603_v62 = vshll.u32 %v2592_v59, 16 }
 0x165   : > { %v848_v51 = vsel %vm522_vm5, %v830_v42, %v782_v49  ;;  %v760_v25 = vpop.permute.xlu2 %759  ;;  %v2601_v49 = vshrl.u32 %v2592_v59, 16 }
 0x166   : > { %v864_v41 = vsel %vm539_vm6, %v848_v51, %v808_v12  ;;  %v1801_v12 = vld [vmem:[#allocation2 + $0x10] sm:$0x1]  ;;  %v2605_v6 = vrot.slane %v2603_v62, 1  ;;  %v836_v47 = vsel %vm497_vm4, %v5353_v3, %v760_v25 }
 0x167   : > { %v885_v44 = vunpack.c.l.b16 %v864_v41  ;;  %v1209_v16 = vpop.permute.xlu1 %1208  ;;  %v1802_v15 = vsel %vm5478_vm7, 0, %v1801_v12 }
 0x168   : > { %v1285_v50 = vsel %vm497_vm4, %v5264_v38, %v1209_v16  ;;  %1803 = vst [vmem:[#allocation2 + $0x10] sm:$0x1] %v1802_v15 }
 0x169   : > { %v890_v26 = vpack.c.b16 %v885_v44, %v884_v17  ;;  %v2606_v17 = vor.u32 %v2605_v6, %v2601_v49 }
 0x16b   : > { %4483 = vmatmul.msk.bf16.gmra.mxu0 %vm898_vm11, %v890_v26  ;;  %2656 = vrot.lane.b32.xlu0 %v2606_v17, %s4751_s24 }
 0x16c   : > { %v1207_v34 = vpop.permute.xlu0 %1206 }
 0x16d   : > { %v1282_v0 = vsel %vm497_vm4, %v5168_v29, %v1207_v34  ;;  %v1830_v29 = vld [vmem:[#allocation2 + $0xc] sm:$0x1]  ;;  %v784_v1 = vpop.permute.xlu2 %783 }
 0x16e   : > { %v1299_v27 = vsel %vm522_vm5, %v1282_v0, %v1233_v21  ;;  %v1831_v13 = vsel %vm5486_vm8, 0, %v1830_v29 }
 0x16f   : > { %v1259_v5 = vpop.permute.xlu1 %1258  ;;  %1832 = vst [vmem:[#allocation2 + $0xc] sm:$0x1] %v1831_v13 }
 0x170   : > { %v1315_v24 = vsel %vm539_vm6, %v1299_v27, %v1259_v5 }
 0x171   : > { %v1335_v37 = vunpack.c.l.b16 %v1315_v24 }
 0x174   : > { %v1235_v22 = vpop.permute.xlu0 %1234 }
 0x175   : > { %v1301_v55 = vsel %vm522_vm5, %v1285_v50, %v1235_v22  ;;  %v812_v27 = vpop.permute.xlu2 %811 }
 0x176   : > { %v1317_v19 = vsel %vm539_vm6, %v1301_v55, %v1261_v48 }
 0x177   : > { %v1336_v38 = vunpack.c.l.b16 %v1317_v19  ;;  %v1598_v57 = vpop.permute.xlu1 %1597 }
 0x178   : > { %v1674_v18 = vsel %vm497_vm4, %v5324_v33, %v1598_v57  ;;  %v987_v33 = vpop.f32.mrf.mxu1 }
 0x179   : > { %v1340_v43 = vpack.c.b16 %v1336_v38, %v1335_v37 }
 0x17b   : > { %4520 = vmatmul.msk.bf16.gmra.mxu2 %vm898_vm11, %v1340_v43  ;;  %v1956_v43 = vld [vmem:[#allocation2 + $0x8] sm:$0xf] }
 0x17c   : > { %v1596_v53 = vpop.permute.xlu0 %1595 }
 0x17d   : > { %v1671_v21 = vsel %vm497_vm4, %v5214_v63, %v1596_v53  ;;  %v1368_v26 = vpop.f32.mrf.mxu2  ;;  %v1959_v53 = vld [vmem:[#allocation2 + $0xc] sm:$0x1] }
 0x17e   : > { %v1688_v2 = vsel %vm522_vm5, %v1671_v21, %v1622_v39  ;;  %v1965_v21 = vld [vmem:[#allocation2 + $0x14] sm:$0x1] }
 0x17f   : > { %v758_v40 = vpop.permute.xlu1 %757 }
 0x180   : > { %v833_v44 = vsel %vm497_vm4, %v5233_v35, %v758_v40  ;;  %v989_v55 = vpop.f32.mrf.mxu1 }
 0x181   : > { %v850_v9 = vsel %vm522_vm5, %v833_v44, %v784_v1 }
 0x184   : > { %v1624_v20 = vpop.permute.xlu0 %1623 }
 0x185   : > { %v1690_v14 = vsel %vm522_vm5, %v1674_v18, %v1624_v20  ;;  %v1370_v19 = vpop.f32.mrf.mxu2  ;;  %v1836_v20 = vld [vmem:[#allocation2 + $0x1c] sm:$0x1] }
 0x186   : > { %v1837_v62 = vsel %vm5486_vm8, 0, %v1836_v20 }
 0x187   : > { %v1650_v60 = vpop.permute.xlu1 %1649  ;;  %1838 = vst [vmem:[#allocation2 + $0x1c] sm:$0x1] %v1837_v62 }
 0x188   : > { %v1706_v42 = vsel %vm539_vm6, %v1690_v14, %v1650_v60  ;;  %v1805_v60 = vsel %vm5478_vm7, 0, %v1804_v23  ;;  %v1962_v14 = vld [vmem:[#allocation2 + $0x10] sm:$0xf] }
 0x189   : > { %v1725_v51 = vunpack.c.l.b16 %v1706_v42  ;;  %1806 = vst [vmem:[#allocation2 + $0x18] sm:$0x1] %v1805_v60 }
 0x18c   : > { %v1648_v8 = vpop.permute.xlu0 %1647 }
 0x18d   : > { %v1704_v41 = vsel %vm539_vm6, %v1688_v2, %v1648_v8  ;;  %v1757_v10 = vpop.f32.mrf.mxu3 }
 0x18e   : > { %v1724_v16 = vunpack.c.l.b16 %v1704_v41 }
 0x18f   : > { %v810_v63 = vpop.permute.xlu1 %809 }
 0x190   : > { %v920_v34 = vpop.f32.mrf.mxu0  ;;  %v1729_v48 = vpack.c.b16 %v1725_v51, %v1724_v16  ;;  %v866_v5 = vsel %vm539_vm6, %v850_v9, %v810_v63 }
 0x191   : > { %v988_v0 = vadd.f32 %v987_v33, %v920_v34  ;;  %v886_v7 = vunpack.c.l.b16 %v866_v5 }
 0x192   : > { %4548 = vmatmul.msk.bf16.gmra.mxu3 %vm898_vm11, %v1729_v48 }
 0x193   : > { %v1388_v61 = vadd.f32 %v1368_v26, %v988_v0 }
 0x194   : > { %v786_v24 = vpop.permute.xlu0 %785 }
 0x195   : > { %v1777_v35 = vadd.f32 %v1757_v10, %v1388_v61  ;;  %v852_v45 = vsel %vm522_vm5, %v836_v47, %v786_v24  ;;  %v1759_v3 = vpop.f32.mrf.mxu3 }
 0x196   : > { %v868_v50 = vsel %vm539_vm6, %v852_v45, %v812_v27  ;;  %vm2324_vm6 = vcmask 195584  }
 0x197   : > { %v1857_v22 = vmax.f32 %v1777_v35, 0.0  ;;  %v887_v37 = vunpack.c.l.b16 %v868_v50 }
 0x198   : > { %v922_v58 = vpop.f32.mrf.mxu0 }
 0x199   : > { %v1865_v46 = vpack.c.bf16 %v1857_v22, %v1857_v22  ;;  %v990_v29 = vadd.f32 %v989_v55, %v922_v58  ;;  %v891_v54 = vpack.c.b16 %v887_v37, %v886_v7 }
 0x19b   : > { %v1874_v52 = vshrl.u32 %v1865_v46, 16  ;;  %v1389_v32 = vadd.f32 %v1370_v19, %v990_v29  ;;  %4484 = vmatmul.msk.bf16.gmra.mxu0 %vm898_vm11, %v891_v54  ;;  %v1877_v38 = vshll.u32 %v1865_v46, 16 }
 0x19d   : > { %v1876_v13 = vrot.slane %v1874_v52, 7  ;;  %v1778_v39 = vadd.f32 %v1759_v3, %v1389_v32 }
 0x19f   : > { %v1879_v40 = vor.u32 %v1877_v38, %v1876_v13  ;;  %v1880_v12 = vrot.slane %v1876_v13, 4  ;;  %v1858_v31 = vmax.f32 %v1778_v39, 0.0 }
 0x1a1   : > { %v1957_v25 = vsel %vm5543_vm9, %v1879_v40, %v1956_v43  ;;  %v1960_v15 = vsel %vm5478_vm7, %v1880_v12, %v1959_v53  ;;  %v1866_v56 = vpack.c.bf16 %v1858_v31, %v1858_v31  ;;  %v1807_v31 = vld [vmem:[#allocation2 + $0x20] sm:$0x1] }
 0x1a2   : > { %1958 = vst [vmem:[#allocation2 + $0x8] sm:$0xf] %v1957_v25 }
 0x1a3   : > { %1961 = vst [vmem:[#allocation2 + $0xc] sm:$0x1] %v1960_v15  ;;  %v1882_v36 = vshrl.u32 %v1866_v56, 16  ;;  %v1885_v18 = vshll.u32 %v1866_v56, 16  ;;  %v1839_v56 = vld [vmem:[#allocation2 + $0x24] sm:$0x1] }
 0x1a5   : > { %v1884_v59 = vrot.slane %v1882_v36, 7 }
 0x1a7   : > { %v1887_v42 = vor.u32 %v1885_v18, %v1884_v59  ;;  %v1888_v49 = vrot.slane %v1884_v59, 4  ;;  %v1808_v59 = vsel %vm5478_vm7, 0, %v1807_v31  ;;  %v1840_v18 = vsel %vm5486_vm8, 0, %v1839_v56 }
 0x1a8   : > { %1809 = vst [vmem:[#allocation2 + $0x20] sm:$0x1] %v1808_v59 }
 0x1a9   : > { %v1963_v6 = vsel %vm5543_vm9, %v1887_v42, %v1962_v14  ;;  %v1966_v1 = vsel %vm5478_vm7, %v1888_v49, %v1965_v21  ;;  %v2512_v17 = vld [vmem:[#allocation2 + $0x8] sm:$0xf]  ;;  %1841 = vst [vmem:[#allocation2 + $0x24] sm:$0x1] %v1840_v18 }
 0x1aa   : > { %v2020_v51 = vld [vmem:[#allocation2 + $0x8] sm:$0xf]  ;;  %1964 = vst [vmem:[#allocation2 + $0x10] sm:$0xf] %v1963_v6  ;;  %v2513_v8 = vld [vmem:[#allocation2 + $0xc] sm:$0x1]  ;;  %v2688_v41 = vunpack.c.l.b16 %v2512_v17 }
 0x1ab   : > { %v2528_v2 = vld [vmem:[#allocation2 + $0x8] sm:$0xe]  ;;  %v5559_v33 = vunpack.c.l.b16 %v2020_v51  ;;  %1967 = vst [vmem:[#allocation2 + $0x14] sm:$0x1] %v1966_v1  ;;  %v2689_v63 = vunpack.c.l.b16 %v2513_v8  ;;  %v4716_v26 = vld [vmem:[#allocation2 + $0x8] sm:$0x10] }
 0x1ac   : > { %v2736_v44 = vunpack.c.l.b16 %v2528_v2  ;;  %v4619_v16 = vld [vmem:[#allocation2 + $0x8] sm:$0xf]  ;;  %v4705_v0 = vld [vmem:[#allocation2 + $0x8] sm:$0x10] }
 0x1ad   : > { %v4555_v34 = vld [vmem:[#allocation2 + $0x8] sm:$0xf]  ;;  %v2164_v48 = vpack.c.b16 %v5559_v33, %v5559_v33  ;;  %v4620_v9 = vor.u32 %v4716_v26, %v4619_v16  ;;  %v5563_v10 = vld [vmem:[#allocation2 + $0xc] sm:$0x1]  ;;  %v2704_v61 = vpack.c.b16 %v2689_v63, %v2688_v41  ;;  %v992_v41 = vpop.f32.mrf.mxu1 }
 0x1ae   : > { %v3674_v5 = vld [vmem:[#allocation2 + $0x8] sm:$0xe]  ;;  %v2744_v27 = vpack.c.b16 %v2689_v63, %v2736_v44  ;;  %v4556_v47 = vor.u32 %v4705_v0, %v4555_v34  ;;  %v3723_v24 = vunpack.c.l.b16 %v5563_v10  ;;  %v5566_v35 = vld [vmem:[#allocation2 + $0xc] sm:$0x1] }
 0x1af   : > { %v2505_v7 = vld [vmem:[#allocation2 + $0x8] sm:$0xe]  ;;  %2172 = vrot.lane.b32.xlu2 %v2164_v48, %s4755_s10  ;;  %v3250_v45 = vshll.u32 %v4620_v9, 16  ;;  %v3754_v50 = vunpack.c.l.b16 %v3674_v5  ;;  %2712 = vrot.lane.b32.xlu1 %v2704_v61, %s4755_s10  ;;  %v2555_v55 = vunpack.c.l.b16 %v5566_v35  ;;  %v3248_v32 = vshrl.u32 %v4620_v9, 16  ;;  %v1373_v48 = vpop.f32.mrf.mxu2 }
 0x1b0   : > { %v2755_v22 = vshll.u32 %v2744_v27, 16  ;;  %v2086_v37 = vshll.u32 %v4556_v47, 16  ;;  %v2585_v29 = vunpack.c.l.b16 %v2505_v7  ;;  %v2753_v54 = vshrl.u32 %v2744_v27, 16 }
 0x1b1   : > { %v3252_v58 = vrot.slane %v3250_v45, 1  ;;  %v3762_v46 = vpack.c.b16 %v3723_v24, %v3754_v50  ;;  %v2084_v13 = vshrl.u32 %v4556_v47, 16  ;;  %v2021_v38 = vld [vmem:[#allocation2 + $0x10] sm:$0xf] }
 0x1b2   : > { %v2757_v19 = vrot.slane %v2755_v22, 1  ;;  %v2088_v52 = vrot.slane %v2086_v37, 1  ;;  %v2593_v43 = vpack.c.b16 %v2555_v55, %v2585_v29  ;;  %v4623_v40 = vld [vmem:[#allocation2 + $0x10] sm:$0xf]  ;;  %v4717_v12 = vld [vmem:[#allocation2 + $0x10] sm:$0x10]  ;;  %v5577_v36 = vunpack.c.l.b16 %v2021_v38 }
 0x1b3   : > { %v3773_v39 = vshll.u32 %v3762_v46, 16  ;;  %v3253_v53 = vor.u32 %v3252_v58, %v3248_v32  ;;  %v4624_v20 = vor.u32 %v4717_v12, %v4623_v40  ;;  %v5584_v60 = vld [vmem:[#allocation2 + $0x14] sm:$0x1]  ;;  %v3675_v62 = vld [vmem:[#allocation2 + $0x10] sm:$0xe]  ;;  %v3771_v42 = vshrl.u32 %v3762_v46, 16 }
 0x1b4   : > { %v2758_v3 = vor.u32 %v2757_v19, %v2753_v54  ;;  %v2089_v25 = vor.u32 %v2088_v52, %v2084_v13  ;;  %v2610_v15 = vshll.u32 %v2593_v43, 16  ;;  %v2165_v21 = vpack.c.b16 %v5577_v36, %v5577_v36  ;;  %v4559_v2 = vld [vmem:[#allocation2 + $0x10] sm:$0xf]  ;;  %v4706_v8 = vld [vmem:[#allocation2 + $0x10] sm:$0x10] }
 0x1b5   : > { %v3775_v23 = vrot.slane %v3773_v39, 1  ;;  %v2608_v49 = vshrl.u32 %v2593_v43, 16  ;;  %v3257_v6 = vshll.u32 %v4624_v20, 16  ;;  %v3725_v1 = vunpack.c.l.b16 %v5584_v60  ;;  %v2514_v16 = vld [vmem:[#allocation2 + $0x10] sm:$0xf] }
 0x1b6   : > { %2808 = vrot.lane.b32.xlu0 %v2758_v3, %s4756_s11  ;;  %v2612_v14 = vrot.slane %v2610_v15, 1  ;;  %v3755_v17 = vunpack.c.l.b16 %v3675_v62  ;;  %v2515_v63 = vld [vmem:[#allocation2 + $0x14] sm:$0x1]  ;;  %v3682_v26 = vld [vmem:[#allocation2 + $0x10] sm:$0xf]  ;;  %v4560_v27 = vor.u32 %v4706_v8, %v4559_v2  ;;  %v2690_v7 = vunpack.c.l.b16 %v2514_v16  ;;  %v1762_v22 = vpop.f32.mrf.mxu3 }
 0x1b7   : > { %3303 = vrot.lane.b32.xlu2 %v3253_v53, %s4751_s24  ;;  %2134 = vrot.lane.b32.xlu1 %v2089_v25, %s4751_s24  ;;  %v3776_v51 = vor.u32 %v3775_v23, %v3771_v42  ;;  %v3683_v34 = vld [vmem:[#allocation2 + $0x14] sm:$0x1]  ;;  %v3259_v0 = vrot.slane %v3257_v6, 1  ;;  %v3191_v61 = vld [vmem:[#allocation2 + $0x10] sm:$0xf]  ;;  %v2691_v45 = vunpack.c.l.b16 %v2515_v63  ;;  %v3255_v37 = vshrl.u32 %v4624_v20, 16  ;;  %v994_v25 = vpop.f32.mrf.mxu1 }
 0x1b8   : > { %v2613_v44 = vor.u32 %v2612_v14, %v2608_v49  ;;  %v3763_v5 = vpack.c.b16 %v3725_v1, %v3755_v17  ;;  %v3199_v50 = vld [vmem:[#allocation2 + $0x14] sm:$0x1]  ;;  %v3858_v58 = vunpack.c.l.b16 %v3682_v26  ;;  %v3859_v46 = vunpack.c.l.b16 %v3683_v34  ;;  %v3698_v29 = vld [vmem:[#allocation2 + $0x10] sm:$0xe]  ;;  %v1968_v8 = vld [vmem:[#allocation2 + $0x18] sm:$0xf] }
 0x1b9   : > { %v3327_v19 = vunpack.c.l.b16 %v3191_v61  ;;  %v2529_v52 = vld [vmem:[#allocation2 + $0x10] sm:$0xe]  ;;  %v3260_v32 = vor.u32 %v3259_v0, %v3255_v37  ;;  %v2093_v13 = vshll.u32 %v4560_v27, 16  ;;  %v3367_v38 = vunpack.c.l.b16 %v3199_v50  ;;  %v2029_v14 = vld [vmem:[#allocation2 + $0x14] sm:$0x1] }
 0x1ba   : > { %v3780_v3 = vshll.u32 %v3763_v5, 16  ;;  %v2705_v43 = vpack.c.b16 %v2691_v45, %v2690_v7  ;;  %v3906_v53 = vunpack.c.l.b16 %v3698_v29  ;;  %v3874_v40 = vpack.c.b16 %v3859_v46, %v3858_v58 }
 0x1bb   : > { %v2737_v12 = vunpack.c.l.b16 %v2529_v52  ;;  %v2095_v23 = vrot.slane %v2093_v13, 1  ;;  %v3375_v20 = vpack.c.b16 %v3367_v38, %v3327_v19  ;;  %v3778_v42 = vshrl.u32 %v3763_v5, 16  ;;  %v1810_v5 = vld [vmem:[#allocation2 + $0x28] sm:$0x1] }
 0x1bc   : > { %v3782_v56 = vrot.slane %v3780_v3, 1  ;;  %v3914_v62 = vpack.c.b16 %v3859_v46, %v3906_v53  ;;  %v2091_v49 = vshrl.u32 %v4560_v27, 16  ;;  %v2197_v63 = vunpack.c.l.b16 %v2029_v14  ;;  %v1842_v27 = vld [vmem:[#allocation2 + $0x2c] sm:$0x1] }
 0x1bd   : > { %v2745_v6 = vpack.c.b16 %v2691_v45, %v2737_v12  ;;  %v3386_v16 = vshll.u32 %v3375_v20, 16  ;;  %v3335_v61 = vpack.c.b16 %v3327_v19, %v3327_v19  ;;  %v1843_v46 = vsel %vm5486_vm8, 0, %v1842_v27 }
 0x1be   : > { %2174 = vrot.lane.b32.xlu0 %v2165_v21, %s4755_s10  ;;  %v1375_v21 = vpop.f32.mrf.mxu2  ;;  %v1764_v2 = vpop.f32.mrf.mxu3  ;;  %v3925_v0 = vshll.u32 %v3914_v62, 16  ;;  %v2205_v58 = vpack.c.b16 %v2197_v63, %v5577_v36  ;;  %1844 = vst [vmem:[#allocation2 + $0x2c] sm:$0x1] %v1843_v46  ;;  %v3923_v38 = vshrl.u32 %v3914_v62, 16 }
 0x1bf   : > { %3826 = vrot.lane.b32.xlu2 %v3776_v51, %s4751_s24  ;;  %2658 = vrot.lane.b32.xlu1 %v2613_v44, %s4751_s24  ;;  %v925_v9 = vpop.f32.mrf.mxu0  ;;  %v2096_v44 = vor.u32 %v2095_v23, %v2091_v49  ;;  %v3388_v37 = vrot.slane %v3386_v16, 1 }
 0x1c0   : > { %v993_v47 = vadd.f32 %v992_v41, %v925_v9  ;;  %v3783_v41 = vor.u32 %v3782_v56, %v3778_v42  ;;  %v3927_v52 = vrot.slane %v3925_v0, 1 }
 0x1c2   : > { %v1390_v54 = vadd.f32 %v1373_v48, %v993_v47  ;;  %v1971_v48 = vld [vmem:[#allocation2 + $0x1c] sm:$0x1]  ;;  %v2762_v47 = vshll.u32 %v2745_v6, 16  ;;  %v3928_v12 = vor.u32 %v3927_v52, %v3923_v38 }
 0x1c4   : > { %v1779_v39 = vadd.f32 %v1762_v22, %v1390_v54  ;;  %v1811_v22 = vsel %vm5478_vm7, 0, %v1810_v5  ;;  %v2764_v3 = vrot.slane %v2762_v47, 1  ;;  %v1813_v47 = vld [vmem:[#allocation2 + $0x30] sm:$0x1]  ;;  %v1845_v5 = vld [vmem:[#allocation2 + $0x34] sm:$0x1] }
 0x1c5   : > { %1812 = vst [vmem:[#allocation2 + $0x28] sm:$0x1] %v1811_v22  ;;  %v1846_v46 = vsel %vm5486_vm8, 0, %v1845_v5 }
 0x1c6   : > { %3305 = vrot.lane.b32.xlu0 %v3260_v32, %s4751_s24  ;;  %v1859_v31 = vmax.f32 %v1779_v39, 0.0  ;;  %v3384_v32 = vshrl.u32 %v3375_v20, 16  ;;  %v2760_v39 = vshrl.u32 %v2745_v6, 16  ;;  %1847 = vst [vmem:[#allocation2 + $0x34] sm:$0x1] %v1846_v46 }
 0x1c7   : > { %2714 = vrot.lane.b32.xlu2 %v2705_v43, %s4755_s10  ;;  %3882 = vrot.lane.b32.xlu1 %v3874_v40, %s4755_s10  ;;  %v927_v15 = vpop.f32.mrf.mxu0  ;;  %v2222_v43 = vshll.u32 %v2205_v58, 16 }
 0x1c8   : > { %v1867_v59 = vpack.c.bf16 %v1859_v31, %v1859_v31  ;;  %v995_v18 = vadd.f32 %v994_v25, %v927_v15  ;;  %v3389_v36 = vor.u32 %v3388_v37, %v3384_v32  ;;  %v1974_v31 = vld [vmem:[#allocation2 + $0x20] sm:$0xf]  ;;  %v1977_v25 = vld [vmem:[#allocation2 + $0x24] sm:$0x1]  ;;  %v2765_v15 = vor.u32 %v2764_v3, %v2760_v39 }
 0x1c9   : > { %v2224_v20 = vrot.slane %v2222_v43, 1 }
 0x1ca   : > { %v1890_v17 = vshrl.u32 %v1867_v59, 16  ;;  %v1391_v51 = vadd.f32 %v1375_v21, %v995_v18  ;;  %v1893_v34 = vshll.u32 %v1867_v59, 16 }
 0x1cc   : > { %v1892_v26 = vrot.slane %v1890_v17, 7  ;;  %v1780_v9 = vadd.f32 %v1764_v2, %v1391_v51  ;;  %v2220_v51 = vshrl.u32 %v2205_v58, 16 }
 0x1ce   : > { %3828 = vrot.lane.b32.xlu0 %v3783_v41, %s4751_s24  ;;  %v1895_v7 = vor.u32 %v1893_v34, %v1892_v26  ;;  %v1896_v45 = vrot.slane %v1892_v26, 4  ;;  %v1860_v50 = vmax.f32 %v1780_v9, 0.0 }
 0x1cf   : > { %2136 = vrot.lane.b32.xlu2 %v2096_v44, %s4751_s24  ;;  %3343 = vrot.lane.b32.xlu1 %v3335_v61, %s4755_s10  ;;  %v2028_v44 = vld [vmem:[#allocation2 + $0xc] sm:$0x1] }
 0x1d0   : > { %v1969_v29 = vsel %vm5543_vm9, %v1895_v7, %v1968_v8  ;;  %v1972_v54 = vsel %vm5478_vm7, %v1896_v45, %v1971_v48  ;;  %v1868_v19 = vpack.c.bf16 %v1860_v50, %v1860_v50  ;;  %v2225_v48 = vor.u32 %v2224_v20, %v2220_v51 }
 0x1d1   : > { %1970 = vst [vmem:[#allocation2 + $0x18] sm:$0xf] %v1969_v29  ;;  %v1814_v50 = vsel %vm5478_vm7, 0, %v1813_v47 }
 0x1d2   : > { %1973 = vst [vmem:[#allocation2 + $0x1c] sm:$0x1] %v1972_v54  ;;  %v1898_v13 = vshrl.u32 %v1868_v19, 16  ;;  %v1901_v40 = vshll.u32 %v1868_v19, 16  ;;  %v2196_v54 = vunpack.c.l.b16 %v2028_v44 }
 0x1d3   : > { %1815 = vst [vmem:[#allocation2 + $0x30] sm:$0x1] %v1814_v50 }
 0x1d4   : > { %v1900_v53 = vrot.slane %v1898_v13, 7  ;;  %v2204_v39 = vpack.c.b16 %v2196_v54, %v5559_v33 }
 0x1d5   : > { %v1378_v33 = vpop.f32.mrf.mxu2 }
 0x1d6   : > { %3439 = vrot.lane.b32.xlu0 %v3389_v36, %s4756_s11  ;;  %v1903_v56 = vor.u32 %v1901_v40, %v1900_v53  ;;  %v1904_v23 = vrot.slane %v1900_v53, 4 }
 0x1d7   : > { %3978 = vrot.lane.b32.xlu2 %v3928_v12, %s4756_s11  ;;  %2810 = vrot.lane.b32.xlu1 %v2765_v15, %s4756_s11 }
 0x1d8   : > { %v1975_v59 = vsel %vm5543_vm9, %v1903_v56, %v1974_v31  ;;  %v1978_v18 = vsel %vm5478_vm7, %v1904_v23, %v1977_v25  ;;  %v3684_v62 = vld [vmem:[#allocation2 + $0x18] sm:$0xf]  ;;  %v997_v23 = vpop.f32.mrf.mxu1 }
 0x1d9   : > { %v4563_v14 = vld [vmem:[#allocation2 + $0x18] sm:$0xf]  ;;  %1976 = vst [vmem:[#allocation2 + $0x20] sm:$0xf] %v1975_v59  ;;  %v3685_v42 = vld [vmem:[#allocation2 + $0x1c] sm:$0x1]  ;;  %v3860_v49 = vunpack.c.l.b16 %v3684_v62 }
 0x1da   : > { %v3192_v21 = vld [vmem:[#allocation2 + $0x18] sm:$0xf]  ;;  %v4707_v6 = vld [vmem:[#allocation2 + $0x18] sm:$0x10]  ;;  %1979 = vst [vmem:[#allocation2 + $0x24] sm:$0x1] %v1978_v18  ;;  %v3861_v2 = vunpack.c.l.b16 %v3685_v42 }
 0x1db   : > { %v3328_v17 = vunpack.c.l.b16 %v3192_v21  ;;  %v4564_v8 = vor.u32 %v4707_v6, %v4563_v14  ;;  %v3200_v41 = vld [vmem:[#allocation2 + $0x1c] sm:$0x1]  ;;  %v3699_v63 = vld [vmem:[#allocation2 + $0x18] sm:$0xe]  ;;  %v2215_v62 = vshll.u32 %v2204_v39, 16 }
 0x1dc   : > { %v3368_v16 = vunpack.c.l.b16 %v3200_v41  ;;  %v5616_v26 = vld [vmem:[#allocation2 + $0x1c] sm:$0x1]  ;;  %v3676_v34 = vld [vmem:[#allocation2 + $0x18] sm:$0xe]  ;;  %v3875_v9 = vpack.c.b16 %v3861_v2, %v3860_v49  ;;  %v3907_v61 = vunpack.c.l.b16 %v3699_v63  ;;  %v2506_v41 = vld [vmem:[#allocation2 + $0x10] sm:$0xe] }
 0x1dd   : > { %v2100_v0 = vshll.u32 %v4564_v8, 16  ;;  %v6536_v7 = vunpack.c.l.b16 %v5616_v26  ;;  %v3756_v45 = vunpack.c.l.b16 %v3676_v34  ;;  %v2098_v22 = vshrl.u32 %v4564_v8, 16 }
 0x1de   : > { %v3376_v27 = vpack.c.b16 %v3368_v16, %v3328_v17  ;;  %v3915_v58 = vpack.c.b16 %v3861_v2, %v3907_v61  ;;  %v3336_v43 = vpack.c.b16 %v3328_v17, %v3328_v17  ;;  %v5639_v17 = vld [vmem:[#allocation2 + $0x14] sm:$0x1]  ;;  %v2586_v61 = vunpack.c.l.b16 %v2506_v41  ;;  %v2507_v41 = vld [vmem:[#allocation2 + $0x18] sm:$0xe] }
 0x1df   : > { %3884 = vrot.lane.b32.xlu2 %v3875_v9, %s4755_s10  ;;  %v2102_v37 = vrot.slane %v2100_v0, 1  ;;  %2270 = vrot.lane.b32.xlu1 %v2225_v48, %s4756_s11  ;;  %v3764_v3 = vpack.c.b16 %v6536_v7, %v3756_v45  ;;  %v6533_v34 = vunpack.c.l.b16 %v5639_v17  ;;  %v2217_v9 = vrot.slane %v2215_v62, 1 }
 0x1e0   : > { %v3393_v29 = vshll.u32 %v3376_v27, 16  ;;  %v3932_v52 = vshll.u32 %v3915_v58, 16  ;;  %v3677_v13 = vld [vmem:[#allocation2 + $0x20] sm:$0xe]  ;;  %v3391_v36 = vshrl.u32 %v3376_v27, 16  ;;  %v3930_v20 = vshrl.u32 %v3915_v58, 16 }
 0x1e1   : > { %v2103_v19 = vor.u32 %v2102_v37, %v2098_v22  ;;  %v5628_v38 = vld [vmem:[#allocation2 + $0x24] sm:$0x1]  ;;  %v3757_v12 = vunpack.c.l.b16 %v3677_v13  ;;  %v3787_v25 = vshll.u32 %v3764_v3, 16  ;;  %v3686_v15 = vld [vmem:[#allocation2 + $0x20] sm:$0xf]  ;;  %v3785_v63 = vshrl.u32 %v3764_v3, 16  ;;  %v999_v22 = vpop.f32.mrf.mxu1 }
 0x1e2   : > { %v3395_v32 = vrot.slane %v3393_v29, 1  ;;  %v3934_v53 = vrot.slane %v3932_v52, 1  ;;  %v6537_v40 = vunpack.c.l.b16 %v5628_v38  ;;  %v5632_v56 = vld [vmem:[#allocation2 + $0x24] sm:$0x1]  ;;  %v4567_v59 = vld [vmem:[#allocation2 + $0x20] sm:$0xf]  ;;  %v3862_v42 = vunpack.c.l.b16 %v3686_v15 }
 0x1e3   : > { %2138 = vrot.lane.b32.xlu0 %v2103_v19, %s4751_s24  ;;  %v4708_v18 = vld [vmem:[#allocation2 + $0x20] sm:$0x10]  ;;  %v3863_v49 = vunpack.c.l.b16 %v5632_v56  ;;  %v3789_v2 = vrot.slane %v3787_v25, 1  ;;  %v2213_v45 = vshrl.u32 %v2204_v39, 16  ;;  %v2594_v29 = vpack.c.b16 %v6533_v34, %v2586_v61  ;;  %v1989_v61 = vld [vmem:[#allocation2 + $0x34] sm:$0x1] }
 0x1e4   : > { %v3396_v31 = vor.u32 %v3395_v32, %v3391_v36  ;;  %v3935_v21 = vor.u32 %v3934_v53, %v3930_v20  ;;  %v3765_v6 = vpack.c.b16 %v6537_v40, %v3757_v12  ;;  %v4568_v8 = vor.u32 %v4708_v18, %v4567_v59  ;;  %v1380_v32 = vpop.f32.mrf.mxu2  ;;  %v1980_v20 = vld [vmem:[#allocation2 + $0x28] sm:$0xf]  ;;  %v1983_v59 = vld [vmem:[#allocation2 + $0x2c] sm:$0x1]  ;;  %v2508_v57 = vld [vmem:[#allocation2 + $0x20] sm:$0xe] }
 0x1e5   : > { %v1767_v44 = vpop.f32.mrf.mxu3  ;;  %v3876_v48 = vpack.c.b16 %v3863_v49, %v3862_v42  ;;  %v3790_v5 = vor.u32 %v3789_v2, %v3785_v63  ;;  %v2218_v58 = vor.u32 %v2217_v9, %v2213_v45  ;;  %v2617_v12 = vshll.u32 %v2594_v29, 16  ;;  %v1848_v9 = vld [vmem:[#allocation2 + $0x3c] sm:$0x1] }
 0x1e6   : > { %v3794_v0 = vshll.u32 %v3765_v6, 16  ;;  %v2107_v27 = vshll.u32 %v4568_v8, 16  ;;  %v3792_v3 = vshrl.u32 %v3765_v6, 16  ;;  %v2105_v39 = vshrl.u32 %v4568_v8, 16  ;;  %v5656_v8 = vld [vmem:[#allocation2 + $0x1c] sm:$0x1] }
 0x1e7   : > { %3345 = vrot.lane.b32.xlu2 %v3336_v43, %s4755_s10  ;;  %3441 = vrot.lane.b32.xlu1 %v3396_v31, %s4756_s11  ;;  %v2619_v6 = vrot.slane %v2617_v12, 1  ;;  %v2615_v2 = vshrl.u32 %v2594_v29, 16 }
 0x1e8   : > { %v930_v14 = vpop.f32.mrf.mxu0  ;;  %v3796_v46 = vrot.slane %v3794_v0, 1  ;;  %v2109_v52 = vrot.slane %v2107_v27, 1  ;;  %v1986_v0 = vld [vmem:[#allocation2 + $0x30] sm:$0xf] }
 0x1e9   : > { %v998_v51 = vadd.f32 %v997_v23, %v930_v14  ;;  %v2620_v63 = vor.u32 %v2619_v6, %v2615_v2 }
 0x1ea   : > { %v3797_v53 = vor.u32 %v3796_v46, %v3792_v3  ;;  %v2110_v23 = vor.u32 %v2109_v52, %v2105_v39  ;;  %v2133_v39 = vpop.permute.xlu0 %2132 }
 0x1eb   : > { %3980 = vrot.lane.b32.xlu0 %v3935_v21, %s4756_s11  ;;  %v1392_v16 = vadd.f32 %v1378_v33, %v998_v51 }
 0x1ed   : > { %v1781_v47 = vadd.f32 %v1767_v44, %v1392_v16  ;;  %v1769_v43 = vpop.f32.mrf.mxu3 }
 0x1ef   : > { %3886 = vrot.lane.b32.xlu2 %v3876_v48, %s4755_s10  ;;  %v1861_v50 = vmax.f32 %v1781_v47, 0.0  ;;  %3830 = vrot.lane.b32.xlu1 %v3790_v5, %s4751_s24  ;;  %v1816_v48 = vld [vmem:[#allocation2 + $0x38] sm:$0x1]  ;;  %v1849_v5 = vsel %vm5486_vm8, 0, %v1848_v9 }
 0x1f0   : > { %v932_v37 = vpop.f32.mrf.mxu0  ;;  %v1817_v47 = vsel %vm5478_vm7, 0, %v1816_v48  ;;  %1850 = vst [vmem:[#allocation2 + $0x3c] sm:$0x1] %v1849_v5  ;;  %v1851_v48 = vld [vmem:[#allocation2 + $0x44] sm:$0x1] }
 0x1f1   : > { %v1869_v54 = vpack.c.bf16 %v1861_v50, %v1861_v50  ;;  %v1000_v19 = vadd.f32 %v999_v22, %v932_v37  ;;  %1818 = vst [vmem:[#allocation2 + $0x38] sm:$0x1] %v1817_v47  ;;  %v6535_v50 = vunpack.c.l.b16 %v5656_v8  ;;  %v2587_v22 = vunpack.c.l.b16 %v2507_v41 }
 0x1f3   : > { %2268 = vrot.lane.b32.xlu0 %v2218_v58, %s4756_s11  ;;  %v1906_v13 = vshrl.u32 %v1869_v54, 16  ;;  %v1393_v36 = vadd.f32 %v1380_v32, %v1000_v19  ;;  %v1909_v25 = vshll.u32 %v1869_v54, 16 }
 0x1f5   : > { %v1908_v31 = vrot.slane %v1906_v13, 7  ;;  %v1782_v15 = vadd.f32 %v1769_v43, %v1393_v36  ;;  %v2004_v36 = vld [vmem:[#allocation2] sm:$0xf] }
 0x1f7   : > { %3832 = vrot.lane.b32.xlu2 %v3797_v53, %s4751_s24  ;;  %v1911_v18 = vor.u32 %v1909_v25, %v1908_v31  ;;  %v1912_v62 = vrot.slane %v1908_v31, 4  ;;  %v1862_v33 = vmax.f32 %v1782_v15, 0.0  ;;  %2140 = vrot.lane.b32.xlu1 %v2110_v23, %s4751_s24  ;;  %v2595_v53 = vpack.c.b16 %v6535_v50, %v2587_v22  ;;  %v3700_v15 = vld [vmem:[#allocation2 + $0x20] sm:$0xe] }
 0x1f8   : > { %v2286_v23 = vsel %vm522_vm5, %v2004_v36, %v2133_v39  ;;  %v1002_v39 = vpop.f32.mrf.mxu1 }
 0x1f9   : > { %v1981_v14 = vsel %vm5543_vm9, %v1911_v18, %v1980_v20  ;;  %v1984_v21 = vsel %vm5478_vm7, %v1912_v62, %v1983_v59  ;;  %v1870_v42 = vpack.c.bf16 %v1862_v33, %v1862_v33  ;;  %v2624_v33 = vshll.u32 %v2595_v53, 16 }
 0x1fa   : > { %1982 = vst [vmem:[#allocation2 + $0x28] sm:$0xf] %v1981_v14  ;;  %v3908_v14 = vunpack.c.l.b16 %v3700_v15  ;;  %v2622_v22 = vshrl.u32 %v2595_v53, 16 }
 0x1fb   : > { %1985 = vst [vmem:[#allocation2 + $0x2c] sm:$0x1] %v1984_v21  ;;  %v1914_v51 = vshrl.u32 %v1870_v42, 16  ;;  %v1917_v16 = vshll.u32 %v1870_v42, 16 }
 0x1fc   : > { %v3916_v5 = vpack.c.b16 %v3863_v49, %v3908_v14 }
 0x1fd   : > { %v1916_v44 = vrot.slane %v1914_v51, 7 }
 0x1fe   : > { %v1383_v53 = vpop.f32.mrf.mxu2 }
 0x1ff   : > { %v1919_v27 = vor.u32 %v1917_v16, %v1916_v44  ;;  %v1920_v45 = vrot.slane %v1916_v44, 4  ;;  %2660 = vrot.lane.b32.xlu1 %v2620_v63, %s4751_s24  ;;  %v1819_v63 = vld [vmem:[#allocation2 + $0x40] sm:$0x1] }
 0x200   : > { %v1820_v9 = vsel %vm5478_vm7, 0, %v1819_v63 }
 0x201   : > { %v1987_v37 = vsel %vm5543_vm9, %v1919_v27, %v1986_v0  ;;  %v1990_v58 = vsel %vm5478_vm7, %v1920_v45, %v1989_v61  ;;  %v3688_v46 = vld [vmem:[#allocation2 + $0x28] sm:$0xf]  ;;  %v1852_v0 = vsel %vm5486_vm8, 0, %v1851_v48  ;;  %v2626_v61 = vrot.slane %v2624_v33, 1  ;;  %1821 = vst [vmem:[#allocation2 + $0x40] sm:$0x1] %v1820_v9  ;;  %v1004_v9 = vpop.f32.mrf.mxu1 }
 0x202   : > { %v4571_v29 = vld [vmem:[#allocation2 + $0x28] sm:$0xf]  ;;  %1988 = vst [vmem:[#allocation2 + $0x30] sm:$0xf] %v1987_v37  ;;  %v3689_v19 = vld [vmem:[#allocation2 + $0x2c] sm:$0x1]  ;;  %v3864_v52 = vunpack.c.l.b16 %v3688_v46 }
 0x203   : > { %v3701_v54 = vld [vmem:[#allocation2 + $0x28] sm:$0xe]  ;;  %v4709_v32 = vld [vmem:[#allocation2 + $0x28] sm:$0x10]  ;;  %1991 = vst [vmem:[#allocation2 + $0x34] sm:$0x1] %v1990_v58  ;;  %v3865_v13 = vunpack.c.l.b16 %v3689_v19 }
 0x204   : > { %v3909_v3 = vunpack.c.l.b16 %v3701_v54  ;;  %v4572_v43 = vor.u32 %v4709_v32, %v4571_v29  ;;  %v2519_v27 = vld [vmem:[#allocation2 + $0x24] sm:$0x1]  ;;  %1853 = vst [vmem:[#allocation2 + $0x44] sm:$0x1] %v1852_v0  ;;  %v2531_v45 = vld [vmem:[#allocation2 + $0x20] sm:$0xe]  ;;  %v2627_v29 = vor.u32 %v2626_v61, %v2622_v22 }
 0x205   : > { %v3877_v12 = vpack.c.b16 %v3865_v13, %v3864_v52  ;;  %v2695_v46 = vunpack.c.l.b16 %v2519_v27  ;;  %v3939_v19 = vshll.u32 %v3916_v5, 16  ;;  %v2739_v52 = vunpack.c.l.b16 %v2531_v45  ;;  %v2516_v32 = vld [vmem:[#allocation2 + $0x18] sm:$0xf]  ;;  %v2518_v33 = vld [vmem:[#allocation2 + $0x20] sm:$0xf] }
 0x206   : > { %v2114_v31 = vshll.u32 %v4572_v43, 16  ;;  %v3917_v25 = vpack.c.b16 %v3865_v13, %v3909_v3  ;;  %v2112_v20 = vshrl.u32 %v4572_v43, 16  ;;  %v5683_v3 = vld [vmem:[#allocation2 + $0x1c] sm:$0x1]  ;;  %v2692_v56 = vunpack.c.l.b16 %v2516_v32  ;;  %v5831_v35 = vld [vmem:[#allocation2 + $0x2c] sm:$0x1] }
 0x207   : > { %3888 = vrot.lane.b32.xlu0 %v3877_v12, %s4755_s10  ;;  %v2693_v49 = vunpack.c.l.b16 %v5683_v3  ;;  %v3941_v13 = vrot.slane %v3939_v19, 1  ;;  %v2747_v36 = vpack.c.b16 %v2695_v46, %v2739_v52  ;;  %v3937_v43 = vshrl.u32 %v3916_v5, 16 }
 0x208   : > { %v2116_v59 = vrot.slane %v2114_v31, 1  ;;  %v3946_v18 = vshll.u32 %v3917_v25, 16  ;;  %v3944_v6 = vshrl.u32 %v3917_v25, 16 }
 0x209   : > { %v2173_v62 = vpop.permute.xlu2 %2172  ;;  %v4575_v2 = vld [vmem:[#allocation2 + $0x30] sm:$0xf]  ;;  %v2706_v25 = vpack.c.b16 %v2693_v49, %v2692_v56  ;;  %v3942_v15 = vor.u32 %v3941_v13, %v3937_v43  ;;  %v2774_v48 = vshrl.u32 %v2747_v36, 16 }
 0x20a   : > { %v5673_v21 = vsel %vm898_vm11, %v2286_v23, %v2173_v62  ;;  %v2117_v42 = vor.u32 %v2116_v59, %v2112_v20  ;;  %v3948_v51 = vrot.slane %v3946_v18, 1  ;;  %v4710_v41 = vld [vmem:[#allocation2 + $0x30] sm:$0x10]  ;;  %v2776_v23 = vshll.u32 %v2747_v36, 16  ;;  %v4627_v20 = vld [vmem:[#allocation2 + $0x18] sm:$0xf] }
 0x20b   : > { %v4576_v16 = vor.u32 %v4710_v41, %v4575_v2  ;;  %v4718_v59 = vld [vmem:[#allocation2 + $0x18] sm:$0x10]  ;;  %v2694_v41 = vunpack.c.l.b16 %v2518_v33 }
 0x20c   : > { %2142 = vrot.lane.b32.xlu2 %v2117_v42, %s4751_s24  ;;  %v3949_v44 = vor.u32 %v3948_v51, %v3944_v6  ;;  %v4628_v42 = vor.u32 %v4718_v59, %v4627_v20  ;;  %v5694_v51 = vpop.permute.xlu0 %2656  ;;  %v2778_v2 = vrot.slane %v2776_v23, 1 }
 0x20d   : > { %v2121_v47 = vshll.u32 %v4576_v16, 16  ;;  %v2119_v37 = vshrl.u32 %v4576_v16, 16  ;;  %v3202_v16 = vld [vmem:[#allocation2 + $0x2c] sm:$0x1] }
 0x20e   : > { %3984 = vrot.lane.b32.xlu1 %v3949_v44, %s4756_s11  ;;  %v3194_v44 = vld [vmem:[#allocation2 + $0x28] sm:$0xf]  ;;  %v3264_v61 = vshll.u32 %v4628_v42, 16  ;;  %v3370_v5 = vunpack.c.l.b16 %v3202_v16  ;;  %v3262_v33 = vshrl.u32 %v4628_v42, 16 }
 0x20f   : > { %v2123_v58 = vrot.slane %v2121_v47, 1  ;;  %v5696_v47 = vunpack.c.l.b16 %v3194_v44 }
 0x210   : > { %v3266_v36 = vrot.slane %v3264_v61, 1 }
 0x211   : > { %v2124_v54 = vor.u32 %v2123_v58, %v2119_v37  ;;  %v5690_v18 = vpop.permute.xlu2 %3303  ;;  %v2779_v37 = vor.u32 %v2778_v2, %v2774_v48  ;;  %v2707_v58 = vpack.c.b16 %v2695_v46, %v2694_v41  ;;  %v5707_v46 = vld [vmem:[#allocation2 + $0x2c] sm:$0x1] }
 0x212   : > { %v6530_v2 = vunpack.c.l.b16 %v5707_v46 }
 0x213   : > { %2144 = vrot.lane.b32.xlu0 %v2124_v54, %s4751_s24  ;;  %v1385_v54 = vpop.f32.mrf.mxu2 }
 0x214   : > { %2662 = vrot.lane.b32.xlu2 %v2627_v29, %s4751_s24  ;;  %v3193_v29 = vld [vmem:[#allocation2 + $0x20] sm:$0xf] }
 0x215   : > { %v1772_v62 = vpop.f32.mrf.mxu3  ;;  %v5704_v13 = vunpack.c.l.b16 %v3193_v29 }
 0x218   : > { %v935_v12 = vpop.f32.mrf.mxu0 }
 0x219   : > { %v1003_v31 = vadd.f32 %v1002_v39, %v935_v12  ;;  %v5702_v32 = vpop.permute.xlu2 %3826  ;;  %v3378_v39 = vpack.c.b16 %v3370_v5, %v5696_v47 }
 0x21b   : > { %v1394_v14 = vadd.f32 %v1383_v53, %v1003_v31  ;;  %3982 = vrot.lane.b32.xlu0 %v3942_v15, %s4756_s11  ;;  %v3678_v31 = vld [vmem:[#allocation2 + $0x28] sm:$0xe]  ;;  %v1995_v15 = vld [vmem:[#allocation2 + $0x3c] sm:$0x1] }
 0x21c   : > { %2716 = vrot.lane.b32.xlu2 %v2706_v25, %s4755_s10  ;;  %v1992_v25 = vld [vmem:[#allocation2 + $0x38] sm:$0xf]  ;;  %v3758_v41 = vunpack.c.l.b16 %v3678_v31 }
 0x21d   : > { %v1783_v6 = vadd.f32 %v1772_v62, %v1394_v14  ;;  %v1774_v56 = vpop.f32.mrf.mxu3  ;;  %v3337_v14 = vpack.c.b16 %v5704_v13, %v5704_v13 }
 0x21e   : > { %v3766_v5 = vpack.c.b16 %v6530_v2, %v3758_v41 }
 0x21f   : > { %v1863_v63 = vmax.f32 %v1783_v6, 0.0  ;;  %v3407_v6 = vshll.u32 %v3378_v39, 16 }
 0x220   : > { %v937_v0 = vpop.f32.mrf.mxu0 }
 0x221   : > { %v1871_v27 = vpack.c.bf16 %v1863_v63, %v1863_v63  ;;  %v5698_v45 = vpop.permute.xlu1 %2712  ;;  %v1005_v22 = vadd.f32 %v1004_v9, %v937_v0  ;;  %v3267_v9 = vor.u32 %v3266_v36, %v3262_v33  ;;  %v2488_v0 = vld [vmem:[#allocation2] sm:$0xf]  ;;  %v3409_v61 = vrot.slane %v3407_v6, 1  ;;  %v2001_v36 = vld [vmem:[#allocation2 + $0x44] sm:$0x1] }
 0x223   : > { %v1922_v19 = vshrl.u32 %v1871_v27, 16  ;;  %v1395_v52 = vadd.f32 %v1385_v54, %v1005_v22  ;;  %2718 = vrot.lane.b32.xlu0 %v2707_v58, %s4755_s10  ;;  %v1925_v53 = vshll.u32 %v1871_v27, 16  ;;  %v2023_v27 = vld [vmem:[#allocation2 + $0x20] sm:$0xf]  ;;  %v2031_v22 = vld [vmem:[#allocation2 + $0x24] sm:$0x1] }
 0x224   : > { %2814 = vrot.lane.b32.xlu2 %v2779_v37, %s4756_s11  ;;  %v2552_v37 = vunpack.c.l.b16 %v2488_v0  ;;  %v3405_v54 = vshrl.u32 %v3378_v39, 16  ;;  %v3801_v39 = vshll.u32 %v3766_v5, 16 }
 0x225   : > { %v1924_v43 = vrot.slane %v1922_v19, 7  ;;  %v1784_v12 = vadd.f32 %v1774_v56, %v1395_v52  ;;  %v3679_v19 = vld [vmem:[#allocation2 + $0x30] sm:$0xe]  ;;  %v5724_v52 = vpop.permute.xlu2 %2714  ;;  %v1998_v56 = vld [vmem:[#allocation2 + $0x40] sm:$0xf] }
 0x226   : > { %v3759_v33 = vunpack.c.l.b16 %v3679_v19  ;;  %v3799_v19 = vshrl.u32 %v3766_v5, 16  ;;  %v4725_v5 = vld [vmem:[%s6519_s2 + $0x28] sm:$0xff] }
 0x227   : > { %v1927_v23 = vor.u32 %v1925_v53, %v1924_v43  ;;  %v1928_v20 = vrot.slane %v1924_v43, 4  ;;  %v1864_v59 = vmax.f32 %v1784_v12, 0.0  ;;  %v5726_v43 = vld [vmem:[#allocation2 + $0x34] sm:$0x1]  ;;  %3566 = vmatpush.bf16.msrb.mxu2 %v4725_v5 }
 0x228   : > { %v5709_v62 = vpop.permute.xlu0 %2808 }
 0x229   : > { %v1993_v44 = vsel %vm5543_vm9, %v1927_v23, %v1992_v25  ;;  %v1996_v16 = vsel %vm5478_vm7, %v1928_v20, %v1995_v15  ;;  %v1872_v63 = vpack.c.bf16 %v1864_v59, %v1864_v59  ;;  %v5718_v48 = vpop.permute.xlu1 %2134  ;;  %v5730_v25 = vunpack.c.l.b16 %v2023_v27  ;;  %v2530_v23 = vld [vmem:[#allocation2 + $0x18] sm:$0xe] }
 0x22a   : > { %1994 = vst [vmem:[#allocation2 + $0x38] sm:$0xf] %v1993_v44  ;;  %v2199_v15 = vunpack.c.l.b16 %v2031_v22  ;;  %v3410_v20 = vor.u32 %v3409_v61, %v3405_v54  ;;  %v3338_v59 = vpack.c.b16 %v5696_v47, %v5696_v47  ;;  %v2738_v47 = vunpack.c.l.b16 %v2530_v23 }
 0x22b   : > { %1997 = vst [vmem:[#allocation2 + $0x3c] sm:$0x1] %v1996_v16  ;;  %v1930_v42 = vshrl.u32 %v1872_v63, 16  ;;  %3307 = vrot.lane.b32.xlu0 %v3267_v9, %s4751_s24  ;;  %v1933_v29 = vshll.u32 %v1872_v63, 16  ;;  %v2022_v16 = vld [vmem:[#allocation2 + $0x18] sm:$0xf]  ;;  %v6531_v9 = vunpack.c.l.b16 %v5726_v43  ;;  %v2588_v54 = vunpack.c.l.b16 %v2508_v57 }
 0x22c   : > { %3347 = vrot.lane.b32.xlu2 %v3337_v14, %s4755_s10  ;;  %v2568_v14 = vpack.c.b16 %v2553_v11, %v2552_v37  ;;  %v5745_v11 = vld [vmem:[#allocation2 + $0x24] sm:$0x1]  ;;  %v5747_v4 = vunpack.c.l.b16 %v2022_v16  ;;  %v3803_v27 = vrot.slane %v3801_v39, 1  ;;  %v3658_v16 = vld [vmem:[#allocation2 + $0x8] sm:$0xf] }
 0x22d   : > { %v1932_v58 = vrot.slane %v1930_v42, 7  ;;  %v5750_v42 = vpack.c.b16 %v2199_v15, %v5730_v25  ;;  %v3767_v37 = vpack.c.b16 %v6531_v9, %v3759_v33  ;;  %v4631_v33 = vld [vmem:[#allocation2 + $0x20] sm:$0xf]  ;;  %v2509_v57 = vld [vmem:[#allocation2 + $0x28] sm:$0xe] }
 0x22e   : > { %v2826_v61 = vsel %vm522_vm5, %v2568_v14, %v5694_v51  ;;  %v5763_v51 = vpop.permute.xlu2 %2136  ;;  %v2166_v15 = vpack.c.b16 %v5747_v4, %v5747_v4  ;;  %v4719_v14 = vld [vmem:[#allocation2 + $0x20] sm:$0x10] }
 0x22f   : > { %v1935_v53 = vor.u32 %v1933_v29, %v1932_v58  ;;  %v1936_v12 = vrot.slane %v1932_v58, 4  ;;  %v5758_v58 = vpack.c.b16 %v2693_v49, %v2738_v47  ;;  %v6532_v29 = vunpack.c.l.b16 %v5745_v11  ;;  %v4715_v49 = vld [vmem:[%s6519_s2 + $0x18] sm:$0xff] }
 0x230   : > { %v5728_v31 = vpop.permute.xlu0 %2174  ;;  %v2236_v3 = vshll.u32 %v5750_v42, 16  ;;  %v3808_v39 = vshll.u32 %v3767_v37, 16  ;;  %3082 = vmatpush.bf16.msrb.mxu1 %v4715_v49  ;;  %v5794_v47 = vor.u32 %v4719_v14, %v4631_v33  ;;  %v2589_v33 = vunpack.c.l.b16 %v2509_v57 }
 0x231   : > { %v1999_v6 = vsel %vm5543_vm9, %v1935_v53, %v1998_v56  ;;  %v2002_v41 = vsel %vm5478_vm7, %v1936_v12, %v2001_v36  ;;  %v5740_v44 = vpop.permute.xlu1 %2658  ;;  %v4579_v63 = vld [vmem:[#allocation2 + $0x38] sm:$0xf]  ;;  %v2849_v53 = vsel %vm898_vm11, %v2826_v61, %v5698_v45  ;;  %v3201_v61 = vld [vmem:[#allocation2 + $0x24] sm:$0x1]  ;;  %v2767_v14 = vshrl.u32 %v5758_v58, 16 }
 0x232   : > { %2000 = vst [vmem:[#allocation2 + $0x40] sm:$0xf] %v1999_v6  ;;  %v4711_v0 = vld [vmem:[#allocation2 + $0x38] sm:$0x10]  ;;  %v5778_v45 = vsel %vm2324_vm6, %v2849_v53, %v5709_v62  ;;  %v2769_v6 = vshll.u32 %v5758_v58, 16  ;;  %v4714_v62 = vld [vmem:[%s6519_s2 + $0x10] sm:$0xff] }
 0x233   : > { %2003 = vst [vmem:[#allocation2 + $0x44] sm:$0x1] %v2002_v41  ;;  %3349 = vrot.lane.b32.xlu0 %v3338_v59, %s4755_s10  ;;  %v4580_v30 = vor.u32 %v4711_v0, %v4579_v63  ;;  %v5785_v41 = vpack.c.b16 %v6532_v29, %v2588_v54  ;;  %v2490_v63 = vld [vmem:[#allocation2 + $0x8] sm:$0xf]  ;;  %v2888_v0 = vunpack.c.l.b16 %v5778_v45  ;;  %v3810_v54 = vrot.slane %v3808_v39, 1 }
 0x234   : > { %3445 = vrot.lane.b32.xlu2 %v3410_v20, %s4756_s11  ;;  %v3804_v20 = vor.u32 %v3803_v27, %v3799_v19  ;;  %v2234_v27 = vshrl.u32 %v5750_v42, 16  ;;  %v4724_v19 = vld [vmem:[%s6519_s2 + $0x20] sm:$0xff]  ;;  %v2771_v53 = vrot.slane %v2769_v6, 1  ;;  %v5803_v49 = vld [vmem:[#allocation2 + $0x3c] sm:$0x1]  ;;  %3083 = vmatpush.bf16.msrb.mxu1 %v4714_v62  ;;  %v3369_v42 = vunpack.c.l.b16 %v3201_v61 }
 0x235   : > { %v2128_v22 = vshll.u32 %v4580_v30, 16  ;;  %v2126_v56 = vshrl.u32 %v4580_v30, 16  ;;  %v5796_v30 = vld [vmem:[#allocation2 + $0x2c] sm:$0x1]  ;;  %v3703_v5 = vld [vmem:[#allocation2 + $0x38] sm:$0xe]  ;;  %3567 = vmatpush.bf16.msrb.mxu2 %v4724_v19  ;;  %v6538_v9 = vunpack.c.l.b16 %v5803_v49 }
 0x236   : > { %v5806_v39 = vld [vmem:[#allocation2 + $0x10] sm:$0xf]  ;;  %v3911_v62 = vunpack.c.l.b16 %v3703_v5  ;;  %v2772_v19 = vor.u32 %v2771_v53, %v2767_v14  ;;  %v5819_v29 = vld [vmem:[#allocation2 + $0x34] sm:$0x1]  ;;  %v3269_v5 = vshrl.u32 %v5794_v47, 16 }
 0x237   : > { %v2130_v36 = vrot.slane %v2128_v22, 1  ;;  %v2238_v22 = vrot.slane %v2236_v3, 1  ;;  %v2904_v3 = vpack.c.b16 %v2888_v0, %v2888_v0  ;;  %v3979_v0 = vpop.permute.xlu2 %3978  ;;  %v3690_v58 = vld [vmem:[#allocation2 + $0x30] sm:$0xf]  ;;  %v3724_v34 = vunpack.c.l.b16 %v5806_v39 }
 0x238   : > { %v5765_v12 = vpop.permute.xlu0 %3305 }
 0x239   : > { %v5780_v23 = vpop.permute.xlu1 %3882  ;;  %v2131_v59 = vor.u32 %v2130_v36, %v2126_v56  ;;  %v3722_v56 = vunpack.c.l.b16 %v3658_v16  ;;  %v2554_v36 = vunpack.c.l.b16 %v2490_v63  ;;  %v3271_v16 = vshll.u32 %v5794_v47, 16 }
 0x23a   : > { %v2239_v63 = vor.u32 %v2238_v22, %v2234_v27  ;;  %v2924_v22 = vshrl.u32 %v2904_v3, 16 }
 0x23b   : > { %2176 = vrot.lane.b32.xlu0 %v2166_v15, %s4755_s10  ;;  %2146 = vrot.lane.b32.xlu1 %v2131_v59, %s4751_s24  ;;  %v2631_v15 = vshll.u32 %v5785_v41, 16  ;;  %v6534_v59 = vunpack.c.l.b16 %v5796_v30  ;;  %v2569_v57 = vpack.c.b16 %v2555_v55, %v2554_v36  ;;  %v2532_v55 = vld [vmem:[#allocation2 + $0x28] sm:$0xe]  ;;  %v2629_v36 = vshrl.u32 %v5785_v41, 16 }
 0x23c   : > { %3834 = vrot.lane.b32.xlu2 %v3804_v20, %s4751_s24  ;;  %v3806_v20 = vshrl.u32 %v3767_v37, 16  ;;  %v3738_v37 = vpack.c.b16 %v3723_v24, %v3722_v56  ;;  %v5829_v24 = vpack.c.b16 %v3369_v42, %v5704_v13  ;;  %v2030_v56 = vld [vmem:[#allocation2 + $0x1c] sm:$0x1]  ;;  %v3273_v53 = vrot.slane %v3271_v16, 1 }
 0x23d   : > { %v2633_v27 = vrot.slane %v2631_v15, 1  ;;  %v5826_v10 = vpack.c.b16 %v6534_v59, %v2589_v33  ;;  %v3867_v15 = vunpack.c.l.b16 %v5819_v29  ;;  %v5839_v13 = vpack.c.b16 %v6538_v9, %v3911_v62 }
 0x23e   : > { %v3811_v2 = vor.u32 %v3810_v54, %v3806_v20  ;;  %v2927_v54 = vshll.u32 %v2904_v3, 16  ;;  %v2889_v20 = vunpack.c.h.b16 %v5778_v45  ;;  %v2829_v33 = vsel %vm522_vm5, %v2569_v57, %v5740_v44 }
 0x23f   : > { %v2697_v42 = vunpack.c.l.b16 %v5831_v35  ;;  %v2740_v3 = vunpack.c.l.b16 %v2532_v55  ;;  %v2198_v14 = vunpack.c.l.b16 %v2030_v56  ;;  %v2634_v41 = vor.u32 %v2633_v27, %v2629_v36  ;;  %v2520_v36 = vld [vmem:[#allocation2 + $0x28] sm:$0xf] }
 0x240   : > { %v5817_v61 = vpop.permute.xlu0 %3828  ;;  %v2638_v16 = vshll.u32 %v5826_v10, 16  ;;  %v2929_v47 = vrot.slane %v2927_v54, 5  ;;  %v3398_v62 = vshrl.u32 %v5829_v24, 16  ;;  %v3996_v45 = vsel %vm522_vm5, %v3738_v37, %v5702_v32 }
 0x241   : > { %v5810_v6 = vpop.permute.xlu1 %3343  ;;  %v2851_v44 = vsel %vm898_vm11, %v2829_v33, %v5724_v52  ;;  %v3960_v27 = vshll.u32 %v5839_v13, 16  ;;  %v2905_v55 = vpack.c.b16 %v2889_v20, %v2889_v20  ;;  %v2636_v20 = vshrl.u32 %v5826_v10, 16  ;;  %v5876_v33 = vld [vmem:[#allocation2 + $0x34] sm:$0x1] }
 0x242   : > { %v2640_v52 = vrot.slane %v2638_v16, 1 }
 0x243   : > { %3836 = vrot.lane.b32.xlu0 %v3811_v2, %s4751_s24  ;;  %2812 = vrot.lane.b32.xlu1 %v2772_v19, %s4756_s11  ;;  %v3866_v2 = vunpack.c.l.b16 %v3690_v58  ;;  %v2926_v19 = vrot.slane %v2924_v22, 4  ;;  %v3274_v58 = vor.u32 %v3273_v53, %v3269_v5  ;;  %v4019_v22 = vsel %vm898_vm11, %v3996_v45, %v5780_v23  ;;  %v4713_v53 = vld [vmem:[%s6519_s2 + $0x8] sm:$0xff] }
 0x244   : > { %2274 = vrot.lane.b32.xlu2 %v2239_v63, %s4756_s11  ;;  %v3400_v63 = vshll.u32 %v5829_v24, 16  ;;  %v5860_v24 = vpack.c.b16 %v2697_v42, %v2740_v3  ;;  %v4727_v3 = vld [vmem:[%s6519_s2 + $0x38] sm:$0xff]  ;;  %2396 = vmatpush.bf16.msrb.mxu0 %v4713_v53  ;;  %v2933_v10 = vshll.u32 %v2905_v55, 16  ;;  %v2699_v53 = vunpack.c.l.b16 %v5876_v33 }
 0x245   : > { %v3878_v57 = vpack.c.b16 %v3867_v15, %v3866_v2  ;;  %v2930_v23 = vor.u32 %v2929_v47, %v2926_v19  ;;  %v5870_v2 = vpack.c.b16 %v2198_v14, %v5747_v4  ;;  %v3962_v19 = vrot.slane %v3960_v27, 1  ;;  %v2533_v4 = vld [vmem:[#allocation2 + $0x30] sm:$0xe]  ;;  %v4712_v47 = vld [vmem:[%s6519_s2] sm:$0xff]  ;;  %4249 = vmatpush.bf16.msrb.mxu3 %v4727_v3 }
 0x246   : > { %v3402_v56 = vrot.slane %v3400_v63, 1  ;;  %v4639_v14 = vld [vmem:[#allocation2 + $0x30] sm:$0xf]  ;;  %v2783_v45 = vshll.u32 %v5860_v24, 16  ;;  %v2641_v27 = vor.u32 %v2640_v52, %v2636_v20  ;;  %v2741_v55 = vunpack.c.l.b16 %v2533_v4 }
 0x247   : > { %v3739_v4 = vpack.c.b16 %v3725_v1, %v3724_v34  ;;  %v2781_v1 = vshrl.u32 %v5860_v24, 16 }
 0x248   : > { %v5872_v5 = vpop.permute.xlu0 %3439  ;;  %2397 = vmatpush.bf16.msrb.mxu0 %v4712_v47  ;;  %v2785_v20 = vrot.slane %v2783_v45, 1  ;;  %v3203_v47 = vld [vmem:[#allocation2 + $0x34] sm:$0x1]  ;;  %v2749_v45 = vpack.c.b16 %v2699_v53, %v2741_v55 }
 0x249   : > { %v2811_v59 = vpop.permute.xlu1 %2810 }
 0x24a   : > { %v2867_v54 = vsel %vm2324_vm6, %v2851_v44, %v2811_v59  ;;  %v5867_v59 = vpop.permute.xlu2 %3884 }
 0x24b   : > { %v2890_v32 = vunpack.c.l.b16 %v2867_v54  ;;  %v2891_v37 = vunpack.c.h.b16 %v2867_v54  ;;  %3890 = vrot.lane.b32.xlu0 %v3878_v57, %s4755_s10  ;;  %3309 = vrot.lane.b32.xlu1 %v3274_v58, %s4751_s24  ;;  %v2696_v58 = vunpack.c.l.b16 %v2520_v36  ;;  %v4721_v54 = vld [vmem:[#allocation2 + $0x30] sm:$0x10] }
 0x24c   : > { %2664 = vrot.lane.b32.xlu2 %v2634_v41, %s4751_s24  ;;  %v5882_v41 = vsel %vm2324_vm6, %v4019_v22, %v3979_v0  ;;  %v4726_v0 = vld [vmem:[%s6519_s2 + $0x30] sm:$0xff]  ;;  %v3958_v22 = vshrl.u32 %v5839_v13, 16  ;;  %v2935_v13 = vrot.slane %v2933_v10, 5  ;;  %v5902_v40 = vor.u32 %v4721_v54, %v4639_v14  ;;  %v3174_v10 = vld [vmem:[#allocation2 + $0x8] sm:$0xf] }
 0x24d   : > { %v2906_v16 = vpack.c.b16 %v2890_v32, %v2890_v32  ;;  %v2907_v63 = vpack.c.b16 %v2891_v37, %v2891_v37  ;;  %v2931_v32 = vrot.slane %v2930_v23, 4  ;;  %v4058_v37 = vunpack.c.l.b16 %v5882_v41  ;;  %4250 = vmatpush.bf16.msrb.mxu3 %v4726_v0  ;;  %v3175_v0 = vld [vmem:[#allocation2 + $0x10] sm:$0xf] }
 0x24e   : > { %v3963_v52 = vor.u32 %v3962_v19, %v3958_v22  ;;  %v3403_v23 = vor.u32 %v3402_v56, %v3398_v62  ;;  %v3195_v19 = vld [vmem:[#allocation2 + $0x30] sm:$0xf]  ;;  %v2708_v60 = vpack.c.b16 %v2697_v42, %v2696_v58  ;;  %v3457_v34 = vsel %vm522_vm5, %v3174_v10, %v5690_v18 }
 0x24f   : > { %v2938_v44 = vshrl.u32 %v2906_v16, 16  ;;  %v2941_v57 = vshll.u32 %v2906_v16, 16  ;;  %v2947_v7 = vshll.u32 %v2907_v63, 16  ;;  %v2229_v63 = vshll.u32 %v5870_v2, 16 }
 0x250   : > { %v2936_v62 = vsel %vm5896_vm13, %v2931_v32, %v2935_v13  ;;  %v4074_v56 = vpack.c.b16 %v4058_v37, %v4058_v37  ;;  %v5924_v22 = vunpack.c.l.b16 %v3195_v19  ;;  %v3371_v54 = vunpack.c.l.b16 %v3203_v47 }
 0x251   : > { %v2940_v3 = vrot.slane %v2938_v44, 4  ;;  %v2943_v50 = vrot.slane %v2941_v57, 5  ;;  %v5900_v16 = vpop.permute.xlu1 %2270  ;;  %v2949_v14 = vrot.slane %v2947_v7, 5  ;;  %v2786_v57 = vor.u32 %v2785_v20, %v2781_v1 }
 0x252   : > { %v3346_v44 = vpop.permute.xlu2 %3345  ;;  %v3040_v35 = vunpack.c.l.b16 %v2936_v62  ;;  %v3460_v42 = vsel %vm522_vm5, %v3175_v0, %v5765_v12  ;;  %v3480_v18 = vsel %vm898_vm11, %v3457_v34, %v5810_v6  ;;  %v4094_v24 = vshll.u32 %v4074_v56, 16  ;;  %v3702_v62 = vld [vmem:[#allocation2 + $0x30] sm:$0xe] }
 0x253   : > { %v2944_v9 = vor.u32 %v2943_v50, %v2940_v3  ;;  %2666 = vrot.lane.b32.xlu0 %v2641_v27, %s4751_s24  ;;  %3443 = vrot.lane.b32.xlu1 %v3403_v23, %s4756_s11  ;;  %v3285_v27 = vshll.u32 %v5902_v40, 16  ;;  %v3496_v58 = vsel %vm2324_vm6, %v3480_v18, %v5872_v5  ;;  %v3999_v37 = vsel %vm522_vm5, %v3739_v4, %v5817_v61 }
 0x254   : > { %3988 = vrot.lane.b32.xlu2 %v3963_v52, %s4756_s11  ;;  %v3482_v55 = vsel %vm898_vm11, %v3460_v42, %v3346_v44  ;;  %v2790_v12 = vshll.u32 %v2749_v45, 16  ;;  %v4059_v52 = vunpack.c.h.b16 %v5882_v41  ;;  %v2167_v13 = vpack.c.b16 %v5730_v25, %v5730_v25  ;;  %v3196_v44 = vld [vmem:[#allocation2 + $0x38] sm:$0xf]  ;;  %v2005_v42 = vld [vmem:[#allocation2 + $0x8] sm:$0xf] }
 0x255   : > { %v5914_v39 = vpop.permute.xlu0 %2138  ;;  %v2945_v50 = vrot.slane %v2944_v9, 4  ;;  %v4091_v9 = vshrl.u32 %v4074_v56, 16  ;;  %v3524_v20 = vunpack.c.l.b16 %v3496_v58  ;;  %v2231_v61 = vrot.slane %v2229_v63, 1 }
 0x256   : > { %v5944_v5 = vpack.c.b16 %v3371_v54, %v5924_v22  ;;  %v4096_v47 = vrot.slane %v4094_v24, 5  ;;  %v4021_v25 = vsel %vm898_vm11, %v3999_v37, %v5867_v59  ;;  %v3287_v10 = vrot.slane %v3285_v27, 1 }
 0x257   : > { %v2950_v7 = vsel %vm5896_vm13, %v2945_v50, %v2949_v14  ;;  %v4093_v4 = vrot.slane %v4091_v9, 4  ;;  %v2792_v1 = vrot.slane %v2790_v12, 1  ;;  %v2227_v63 = vshrl.u32 %v5870_v2, 16 }
 0x258   : > { %v3041_v32 = vunpack.c.l.b16 %v2950_v7  ;;  %v4075_v34 = vpack.c.b16 %v4059_v52, %v4059_v52  ;;  %v3283_v0 = vshrl.u32 %v5902_v40, 16  ;;  %v2788_v54 = vshrl.u32 %v2749_v45, 16  ;;  %v3692_v52 = vld [vmem:[#allocation2 + $0x38] sm:$0xf] }
 0x259   : > { %v3442_v3 = vpop.permute.xlu1 %3441  ;;  %v2232_v59 = vor.u32 %v2231_v61, %v2227_v63  ;;  %v3414_v27 = vshll.u32 %v5944_v5, 16  ;;  %v4097_v18 = vor.u32 %v4096_v47, %v4093_v4  ;;  %v2289_v58 = vsel %vm522_vm5, %v2005_v42, %v5718_v48  ;;  %v2032_v47 = vld [vmem:[#allocation2 + $0x2c] sm:$0x1] }
 0x25a   : > { %v3498_v6 = vsel %vm2324_vm6, %v3482_v55, %v3442_v3  ;;  %v3048_v23 = vpack.c.b16 %v3041_v32, %v3040_v35  ;;  %v3910_v35 = vunpack.c.l.b16 %v3702_v62  ;;  %v5955_v7 = vpop.permute.xlu2 %3886  ;;  %v3288_v24 = vor.u32 %v3287_v10, %v3283_v0 }
 0x25b   : > { %v3525_v19 = vunpack.c.l.b16 %v3498_v6  ;;  %2720 = vrot.lane.b32.xlu0 %v2708_v60, %s4755_s10  ;;  %2178 = vrot.lane.b32.xlu1 %v2167_v13, %s4755_s10  ;;  %v2793_v40 = vor.u32 %v2792_v1, %v2788_v54  ;;  %v5959_v32 = vunpack.c.l.b16 %v3196_v44  ;;  %v2311_v45 = vsel %vm898_vm11, %v2289_v58, %v5728_v31  ;;  %v3680_v1 = vld [vmem:[#allocation2 + $0x38] sm:$0xe] }
 0x25c   : > { %2816 = vrot.lane.b32.xlu2 %v2786_v57, %s4756_s11  ;;  %4605 = vmatmul.msk.bf16.vlgmr.msrb.gmra.mxu1 %vm2377_vm14, %v3048_v23  ;;  %v3204_v57 = vld [vmem:[#allocation2 + $0x3c] sm:$0x1]  ;;  %v4100_v55 = vshll.u32 %v4075_v34, 16  ;;  %v2328_v6 = vsel %vm2324_vm6, %v2311_v45, %v5900_v16  ;;  %v5971_v48 = vpack.c.b16 %v3867_v15, %v3910_v35  ;;  %v2024_v23 = vld [vmem:[#allocation2 + $0x28] sm:$0xf]  ;;  %v3339_v63 = vpack.c.b16 %v5924_v22, %v5924_v22 }
 0x25d   : > { %v3981_v41 = vpop.permute.xlu0 %3980  ;;  %v3532_v56 = vpack.c.b16 %v3525_v19, %v3524_v20  ;;  %v3372_v37 = vunpack.c.l.b16 %v3204_v57  ;;  %v4098_v20 = vrot.slane %v4097_v18, 4  ;;  %v2354_v29 = vunpack.c.l.b16 %v2328_v6  ;;  %v2033_v6 = vld [vmem:[#allocation2 + $0x34] sm:$0x1] }
 0x25e   : > { %v4037_v60 = vsel %vm2324_vm6, %v4021_v25, %v3981_v41  ;;  %v3416_v25 = vrot.slane %v3414_v27, 1  ;;  %v3868_v41 = vunpack.c.l.b16 %v3692_v52  ;;  %v4102_v62 = vrot.slane %v4100_v55, 5 }
 0x25f   : > { %v4060_v50 = vunpack.c.l.b16 %v4037_v60  ;;  %v4061_v14 = vunpack.c.h.b16 %v4037_v60  ;;  %4661 = vmatmul.msk.bf16.vlgmr.msrb.gmra.mxu2 %vm2377_vm14, %v3532_v56  ;;  %v3380_v10 = vpack.c.b16 %v3372_v37, %v5959_v32  ;;  %v5977_v60 = vld [vmem:[#allocation2 + $0x3c] sm:$0x1]  ;;  %v3412_v34 = vshrl.u32 %v5944_v5, 16 }
 0x260   : > { %v4103_v57 = vsel %vm5896_vm13, %v4098_v20, %v4102_v62  ;;  %v3735_v35 = vunpack.c.l.b16 %v5977_v60  ;;  %v3760_v42 = vunpack.c.l.b16 %v3680_v1  ;;  %v6561_v5 = vunpack.c.l.b16 %v5803_v49  ;;  %v4635_v62 = vld [vmem:[#allocation2 + $0x28] sm:$0xf]  ;;  %v6012_v1 = vld [vmem:[#allocation2 + $0x34] sm:$0x1] }
 0x261   : > { %v4076_v9 = vpack.c.b16 %v4060_v50, %v4060_v50  ;;  %v4077_v2 = vpack.c.b16 %v4061_v14, %v4061_v14  ;;  %v5965_v13 = vpop.permute.xlu1 %3830  ;;  %v5982_v50 = vunpack.c.l.b16 %v2024_v23  ;;  %v2200_v14 = vunpack.c.l.b16 %v2032_v47 }
 0x262   : > { %v3417_v54 = vor.u32 %v3416_v25, %v3412_v34  ;;  %v3421_v27 = vshll.u32 %v3380_v10, 16  ;;  %v5987_v18 = vpop.permute.xlu2 %3832  ;;  %v4207_v58 = vunpack.c.l.b16 %v4103_v57  ;;  %v3768_v52 = vpack.c.b16 %v3735_v35, %v3760_v42 }
 0x263   : > { %v4105_v3 = vshrl.u32 %v4076_v9, 16  ;;  %v4108_v12 = vshll.u32 %v4076_v9, 16  ;;  %2818 = vrot.lane.b32.xlu0 %v2793_v40, %s4756_s11  ;;  %v4114_v61 = vshll.u32 %v4077_v2, 16  ;;  %2272 = vrot.lane.b32.xlu1 %v2232_v59, %s4756_s11  ;;  %v2025_v59 = vld [vmem:[#allocation2 + $0x30] sm:$0xf]  ;;  %v3879_v9 = vpack.c.b16 %v6561_v5, %v3868_v41 }
 0x264   : > { %3313 = vrot.lane.b32.xlu2 %v3288_v24, %s4751_s24  ;;  %v3953_v2 = vshll.u32 %v5971_v48, 16  ;;  %v1854_v40 = vld [vmem:[#allocation2 + $0x4c] sm:$0x1]  ;;  %v2161_v37 = vunpack.c.l.b16 %v2025_v59  ;;  %v3423_v49 = vrot.slane %v3421_v27, 1  ;;  %v3419_v20 = vshrl.u32 %v3380_v10, 16 }
 0x265   : > { %v4107_v31 = vrot.slane %v4105_v3, 4  ;;  %v4110_v19 = vrot.slane %v4108_v12, 5  ;;  %v2269_v4 = vpop.permute.xlu0 %2268  ;;  %v4116_v0 = vrot.slane %v4114_v61, 5  ;;  %v1855_v45 = vsel %vm5486_vm8, 0, %v1854_v40  ;;  %v2522_v41 = vld [vmem:[#allocation2 + $0x30] sm:$0xf] }
 0x266   : > { %v2326_v16 = vsel %vm2324_vm6, %v5673_v21, %v2269_v4  ;;  %v2208_v12 = vpack.c.b16 %v2200_v14, %v5982_v50  ;;  %1856 = vst [vmem:[#allocation2 + $0x4c] sm:$0x1] %v1855_v45  ;;  %v3955_v23 = vrot.slane %v3953_v2, 1  ;;  %v2169_v28 = vpack.c.b16 %v2161_v37, %v2161_v37  ;;  %v3696_v27 = vld [vmem:[#allocation2 + $0x48] sm:$0xf] }
 0x267   : > { %v4111_v15 = vor.u32 %v4110_v19, %v4107_v31  ;;  %v2353_v56 = vunpack.c.l.b16 %v2326_v16  ;;  %v3951_v31 = vshrl.u32 %v5971_v48, 16  ;;  %v2201_v19 = vunpack.c.l.b16 %v2033_v6 }
 0x268   : > { %v3424_v61 = vor.u32 %v3423_v49, %v3419_v20  ;;  %v2243_v4 = vshll.u32 %v2208_v12, 16  ;;  %v3815_v47 = vshll.u32 %v3768_v52, 16  ;;  %v2698_v34 = vunpack.c.l.b16 %v2522_v41  ;;  %v3705_v20 = vld [vmem:[#allocation2 + $0x48] sm:$0xe] }
 0x269   : > { %v4112_v21 = vrot.slane %v4111_v15, 4  ;;  %v2361_v44 = vpack.c.b16 %v2354_v29, %v2353_v56  ;;  %v6000_v55 = vpop.permute.xlu1 %2140  ;;  %v3956_v25 = vor.u32 %v3955_v23, %v3951_v31  ;;  %v4720_v29 = vld [vmem:[#allocation2 + $0x28] sm:$0x10]  ;;  %v3664_v15 = vld [vmem:[#allocation2 + $0x20] sm:$0xf]  ;;  %v2209_v10 = vpack.c.b16 %v2201_v19, %v2161_v37 }
 0x26a   : > { %v6007_v16 = vpop.permute.xlu2 %2142  ;;  %v2245_v48 = vrot.slane %v2243_v4, 1  ;;  %v3817_v56 = vrot.slane %v3815_v47, 1  ;;  %v4636_v14 = vor.u32 %v4720_v29, %v4635_v62  ;;  %v2241_v57 = vshrl.u32 %v2208_v12, 16  ;;  %v3662_v29 = vld [vmem:[#allocation2 + $0x18] sm:$0xf] }
 0x26b   : > { %v4117_v22 = vsel %vm5896_vm13, %v4112_v21, %v4116_v0  ;;  %4589 = vmatmul.msk.bf16.vlgmr.msrb.gmra.mxu0 %vm2377_vm14, %v2361_v44  ;;  %3351 = vrot.lane.b32.xlu0 %v3339_v63, %s4755_s10  ;;  %v2510_v63 = vld [vmem:[#allocation2 + $0x30] sm:$0xe]  ;;  %v6014_v21 = vld [vmem:[#allocation2 + $0x44] sm:$0x1]  ;;  %v3704_v0 = vld [vmem:[#allocation2 + $0x40] sm:$0xe]  ;;  %v3728_v59 = vunpack.c.l.b16 %v3664_v15  ;;  %v2565_v5 = vunpack.c.l.b16 %v6012_v1  ;;  %v2709_v37 = vpack.c.b16 %v2699_v53, %v2698_v34 }
 0x26c   : > { %v4208_v24 = vunpack.c.l.b16 %v4117_v22  ;;  %3447 = vrot.lane.b32.xlu2 %v3417_v54, %s4756_s11  ;;  %3892 = vrot.lane.b32.xlu1 %v3879_v9, %s4755_s10  ;;  %v3813_v54 = vshrl.u32 %v3768_v52, 16  ;;  %v2250_v22 = vshll.u32 %v2209_v10, 16  ;;  %v2590_v9 = vunpack.c.l.b16 %v2510_v63 }
 0x26d   : > { %v3697_v42 = vld [vmem:[#allocation2 + $0x4c] sm:$0x1]  ;;  %v2246_v2 = vor.u32 %v2245_v48, %v2241_v57  ;;  %v3912_v40 = vunpack.c.l.b16 %v3704_v0  ;;  %v3278_v45 = vshll.u32 %v4636_v14, 16  ;;  %v6562_v12 = vunpack.c.l.b16 %v5628_v38  ;;  %v6040_v57 = vld [vmem:[#allocation2 + $0x3c] sm:$0x1] }
 0x26e   : > { %v4215_v3 = vpack.c.b16 %v4208_v24, %v4207_v58  ;;  %v3818_v24 = vor.u32 %v3817_v56, %v3813_v54  ;;  %v3871_v58 = vunpack.c.l.b16 %v6014_v21  ;;  %v3873_v49 = vunpack.c.l.b16 %v3697_v42 }
 0x26f   : > { %v3741_v52 = vpack.c.b16 %v6562_v12, %v3728_v59  ;;  %v2252_v31 = vrot.slane %v2250_v22, 1  ;;  %v2598_v33 = vpack.c.b16 %v2565_v5, %v2590_v9  ;;  %v2248_v47 = vshrl.u32 %v2209_v10, 16  ;;  %v2534_v10 = vld [vmem:[#allocation2 + $0x38] sm:$0xe]  ;;  %v6046_v9 = vld [vmem:[#allocation2 + $0x44] sm:$0x1] }
 0x270   : > { %4685 = vmatmul.msk.bf16.vlgmr.msrb.gmra.mxu3 %vm2377_vm14, %v4215_v3  ;;  %v3872_v3 = vunpack.c.l.b16 %v3696_v27  ;;  %v3920_v53 = vpack.c.b16 %v3871_v58, %v3912_v40  ;;  %v3276_v62 = vshrl.u32 %v4636_v14, 16  ;;  %v3726_v0 = vunpack.c.l.b16 %v3662_v29 }
 0x271   : > { %v6016_v44 = vpop.permute.xlu1 %2660  ;;  %v4005_v19 = vsel %vm522_vm5, %v3741_v52, %v5987_v18  ;;  %v2253_v15 = vor.u32 %v2252_v31, %v2248_v47  ;;  %v2645_v48 = vshll.u32 %v2598_v33, 16  ;;  %v2643_v22 = vshrl.u32 %v2598_v33, 16  ;;  %v4643_v31 = vld [vmem:[#allocation2 + $0x38] sm:$0xf]  ;;  %v4722_v33 = vld [vmem:[#allocation2 + $0x38] sm:$0x10] }
 0x272   : > { %v6026_v6 = vpop.permute.xlu2 %2662  ;;  %v3881_v4 = vpack.c.b16 %v3873_v49, %v3872_v3  ;;  %v3967_v56 = vshll.u32 %v3920_v53, 16  ;;  %v2701_v40 = vunpack.c.l.b16 %v6040_v57  ;;  %v6563_v3 = vunpack.c.l.b16 %v5616_v26 }
 0x273   : > { %3449 = vrot.lane.b32.xlu0 %v3424_v61, %s4756_s11  ;;  %v2647_v14 = vrot.slane %v2645_v48, 1  ;;  %v3340_v52 = vpack.c.b16 %v5959_v32, %v5959_v32 }
 0x274   : > { %2182 = vrot.lane.b32.xlu2 %v2169_v28, %s4755_s10  ;;  %3986 = vrot.lane.b32.xlu1 %v3956_v25, %s4756_s11  ;;  %v3280_v28 = vrot.slane %v3278_v45, 1  ;;  %v3913_v25 = vunpack.c.l.b16 %v3705_v20  ;;  %v3969_v59 = vrot.slane %v3967_v56, 1  ;;  %v3681_v45 = vld [vmem:[#allocation2 + $0x40] sm:$0xe]  ;;  %v3737_v20 = vunpack.c.l.b16 %v6046_v9 }
 0x275   : > { %v2648_v12 = vor.u32 %v2647_v14, %v2643_v22 }
 0x276   : > { %v3281_v34 = vor.u32 %v3280_v28, %v3276_v62  ;;  %v3921_v18 = vpack.c.b16 %v3873_v49, %v3913_v25  ;;  %v3740_v49 = vpack.c.b16 %v6563_v3, %v3726_v0  ;;  %v4644_v62 = vor.u32 %v4722_v33, %v4643_v31 }
 0x278   : > { %v3972_v26 = vshrl.u32 %v3921_v18, 16  ;;  %v3292_v22 = vshll.u32 %v4644_v62, 16 }
 0x279   : > { %v3889_v23 = vpop.permute.xlu0 %3888 }
 0x27a   : > { %v4025_v38 = vsel %vm898_vm11, %v4005_v19, %v3889_v23  ;;  %v6044_v27 = vpop.permute.xlu2 %2716 }
 0x27b   : > { %3838 = vrot.lane.b32.xlu0 %v3818_v24, %s4751_s24  ;;  %v3974_v24 = vshll.u32 %v3921_v18, 16 }
 0x27c   : > { %2276 = vrot.lane.b32.xlu2 %v2246_v2, %s4756_s11  ;;  %2722 = vrot.lane.b32.xlu1 %v2709_v37, %s4755_s10  ;;  %v3965_v2 = vshrl.u32 %v3920_v53, 16  ;;  %v2742_v37 = vunpack.c.l.b16 %v2534_v10  ;;  %v4002_v53 = vsel %vm522_vm5, %v3740_v49, %v5965_v13  ;;  %v2168_v49 = vpack.c.b16 %v5982_v50, %v5982_v50 }
 0x27d   : > { %v3976_v32 = vrot.slane %v3974_v24, 1  ;;  %v4023_v13 = vsel %vm898_vm11, %v4002_v53, %v5955_v7  ;;  %v3294_v53 = vrot.slane %v3292_v22, 1  ;;  %v3198_v22 = vld [vmem:[#allocation2 + $0x48] sm:$0xf] }
 0x27e   : > { %v3970_v23 = vor.u32 %v3969_v59, %v3965_v2  ;;  %v2750_v47 = vpack.c.b16 %v2701_v40, %v2742_v37  ;;  %v4647_v37 = vld [vmem:[#allocation2 + $0x40] sm:$0xf] }
 0x280   : > { %v3985_v61 = vpop.permute.xlu1 %3984  ;;  %v2797_v14 = vshll.u32 %v2750_v47, 16 }
 0x281   : > { %v4041_v41 = vsel %vm2324_vm6, %v4025_v38, %v3985_v61  ;;  %v2526_v38 = vld [vmem:[#allocation2 + $0x40] sm:$0xf]  ;;  %v6056_v61 = vld [vmem:[#allocation2 + $0x44] sm:$0x1] }
 0x282   : > { %v4064_v63 = vunpack.c.l.b16 %v4041_v41  ;;  %v4065_v25 = vunpack.c.h.b16 %v4041_v41  ;;  %v2703_v48 = vunpack.c.l.b16 %v6056_v61  ;;  %v3977_v41 = vor.u32 %v3976_v32, %v3972_v26  ;;  %v6069_v59 = vpop.permute.xlu2 %2814 }
 0x283   : > { %2278 = vrot.lane.b32.xlu0 %v2253_v15, %s4756_s11  ;;  %v2702_v15 = vunpack.c.l.b16 %v2526_v38  ;;  %v2799_v31 = vrot.slane %v2797_v14, 1  ;;  %v2795_v32 = vshrl.u32 %v2750_v47, 16 }
 0x284   : > { %3896 = vrot.lane.b32.xlu2 %v3881_v4, %s4755_s10  ;;  %3311 = vrot.lane.b32.xlu1 %v3281_v34, %s4751_s24  ;;  %v4080_v42 = vpack.c.b16 %v4064_v63, %v4064_v63  ;;  %v3761_v4 = vunpack.c.l.b16 %v3681_v45  ;;  %v4723_v45 = vld [vmem:[#allocation2 + $0x40] sm:$0x10] }
 0x285   : > { %v6042_v54 = vpop.permute.xlu0 %2144  ;;  %v2711_v24 = vpack.c.b16 %v2703_v48, %v2702_v15  ;;  %v3205_v15 = vld [vmem:[#allocation2 + $0x44] sm:$0x1] }
 0x286   : > { %v4133_v19 = vshrl.u32 %v4080_v42, 16  ;;  %v4136_v28 = vshll.u32 %v4080_v42, 16  ;;  %v3769_v18 = vpack.c.b16 %v3737_v20, %v3761_v4  ;;  %v4081_v42 = vpack.c.b16 %v4065_v25, %v4065_v25  ;;  %v3197_v25 = vld [vmem:[#allocation2 + $0x40] sm:$0xf] }
 0x287   : > { %v3373_v47 = vunpack.c.l.b16 %v3205_v15 }
 0x288   : > { %v4135_v56 = vrot.slane %v4133_v19, 4  ;;  %v4138_v63 = vrot.slane %v4136_v28, 5  ;;  %v4142_v33 = vshll.u32 %v4081_v42, 16  ;;  %v4648_v19 = vor.u32 %v4723_v45, %v4647_v37 }
 0x289   : > { %v6080_v37 = vunpack.c.l.b16 %v3197_v25 }
 0x28a   : > { %v4139_v3 = vor.u32 %v4138_v63, %v4135_v56  ;;  %v2800_v63 = vor.u32 %v2799_v31, %v2795_v32  ;;  %v3299_v42 = vshll.u32 %v4648_v19, 16  ;;  %v6082_v45 = vpop.permute.xlu2 %3347  ;;  %v3297_v15 = vshrl.u32 %v4648_v19, 16 }
 0x28b   : > { %2668 = vrot.lane.b32.xlu0 %v2648_v12, %s4751_s24  ;;  %v3822_v12 = vshll.u32 %v3769_v18, 16 }
 0x28c   : > { %3990 = vrot.lane.b32.xlu2 %v3970_v23, %s4756_s11  ;;  %3353 = vrot.lane.b32.xlu1 %v3340_v52, %s4755_s10  ;;  %v4140_v50 = vrot.slane %v4139_v3, 4 }
 0x28d   : > { %v3983_v29 = vpop.permute.xlu0 %3982 }
 0x28e   : > { %v4039_v34 = vsel %vm2324_vm6, %v4023_v13, %v3983_v29  ;;  %v3824_v13 = vrot.slane %v3822_v12, 1  ;;  %v3290_v29 = vshrl.u32 %v4644_v62, 16 }
 0x28f   : > { %v4062_v0 = vunpack.c.l.b16 %v4039_v34  ;;  %v4063_v10 = vunpack.c.h.b16 %v4039_v34  ;;  %v6078_v34 = vld [vmem:[#allocation2 + $0x3c] sm:$0x1] }
 0x290   : > { %v3295_v14 = vor.u32 %v3294_v53, %v3290_v29 }
 0x291   : > { %v4078_v7 = vpack.c.b16 %v4062_v0, %v4062_v0  ;;  %v4079_v2 = vpack.c.b16 %v4063_v10, %v4063_v10  ;;  %v2511_v0 = vld [vmem:[#allocation2 + $0x38] sm:$0xe]  ;;  %v4144_v10 = vrot.slane %v4142_v33, 5 }
 0x292   : > { %v2591_v12 = vunpack.c.l.b16 %v2511_v0 }
 0x293   : > { %v4119_v52 = vshrl.u32 %v4078_v7, 16  ;;  %v4122_v23 = vshll.u32 %v4078_v7, 16  ;;  %3992 = vrot.lane.b32.xlu0 %v3977_v41, %s4756_s11  ;;  %v4128_v4 = vshll.u32 %v4079_v2, 16  ;;  %v3820_v41 = vshrl.u32 %v3769_v18, 16  ;;  %v2494_v7 = vld [vmem:[#allocation2 + $0x18] sm:$0xf] }
 0x294   : > { %2726 = vrot.lane.b32.xlu2 %v2711_v24, %s4755_s10  ;;  %2180 = vrot.lane.b32.xlu1 %v2168_v49, %s4755_s10  ;;  %v4145_v3 = vsel %vm5896_vm13, %v4140_v50, %v4144_v10  ;;  %v2567_v49 = vunpack.c.l.b16 %v6078_v34  ;;  %v2558_v31 = vunpack.c.l.b16 %v2494_v7  ;;  %v2027_v50 = vld [vmem:[#allocation2 + $0x40] sm:$0xf] }
 0x295   : > { %v4121_v28 = vrot.slane %v4119_v52, 4  ;;  %v4124_v38 = vrot.slane %v4122_v23, 5  ;;  %v2719_v26 = vpop.permute.xlu0 %2718  ;;  %v4130_v2 = vrot.slane %v4128_v4, 5  ;;  %v3825_v62 = vor.u32 %v3824_v13, %v3820_v41  ;;  %v3694_v52 = vld [vmem:[#allocation2 + $0x40] sm:$0xf] }
 0x296   : > { %v6091_v23 = vunpack.c.l.b16 %v3198_v22  ;;  %v3381_v4 = vpack.c.b16 %v3373_v47, %v6080_v37  ;;  %v3870_v32 = vunpack.c.l.b16 %v3694_v52  ;;  %v2599_v25 = vpack.c.b16 %v2567_v49, %v2591_v12  ;;  %v2035_v13 = vld [vmem:[#allocation2 + $0x44] sm:$0x1] }
 0x297   : > { %v4125_v56 = vor.u32 %v4124_v38, %v4121_v28  ;;  %v4210_v28 = vunpack.c.l.b16 %v4145_v3  ;;  %v3301_v38 = vrot.slane %v3299_v42, 1  ;;  %v2203_v42 = vunpack.c.l.b16 %v2035_v13  ;;  %v2492_v13 = vld [vmem:[#allocation2 + $0x10] sm:$0xf] }
 0x298   : > { %v3428_v41 = vshll.u32 %v3381_v4, 16  ;;  %v3880_v22 = vpack.c.b16 %v3871_v58, %v3870_v32  ;;  %v2652_v7 = vshll.u32 %v2599_v25, 16  ;;  %v3426_v12 = vshrl.u32 %v3381_v4, 16 }
 0x299   : > { %v4126_v24 = vrot.slane %v4125_v56, 4  ;;  %v3342_v56 = vpack.c.b16 %v6091_v23, %v6091_v23  ;;  %v3302_v10 = vor.u32 %v3301_v38, %v3297_v15  ;;  %v2650_v52 = vshrl.u32 %v2599_v25, 16 }
 0x29a   : > { %v2654_v3 = vrot.slane %v2652_v7, 1 }
 0x29b   : > { %2820 = vrot.lane.b32.xlu0 %v2800_v63, %s4756_s11  ;;  %v4131_v18 = vsel %vm5896_vm13, %v4126_v24, %v4130_v2  ;;  %v6564_v63 = vunpack.c.l.b16 %v5656_v8  ;;  %v2026_v24 = vld [vmem:[#allocation2 + $0x38] sm:$0xf]  ;;  %v6110_v8 = vpop.permute.xlu2 %3445 }
 0x29c   : > { %3315 = vrot.lane.b32.xlu2 %v3295_v14, %s4751_s24  ;;  %3840 = vrot.lane.b32.xlu1 %v3825_v62, %s4751_s24  ;;  %v4209_v33 = vunpack.c.l.b16 %v4131_v18  ;;  %v2163_v14 = vunpack.c.l.b16 %v2027_v50  ;;  %v3430_v62 = vrot.slane %v3428_v41, 1  ;;  %v6116_v21 = vunpack.c.l.b16 %v2026_v24  ;;  %v2535_v18 = vld [vmem:[#allocation2 + $0x40] sm:$0xe]  ;;  %v2524_v50 = vld [vmem:[#allocation2 + $0x38] sm:$0xf] }
 0x29d   : > { %v6094_v53 = vpop.permute.xlu0 %3307  ;;  %v2571_v0 = vpack.c.b16 %v6564_v63, %v2558_v31  ;;  %v2655_v38 = vor.u32 %v2654_v3, %v2650_v52  ;;  %v2743_v32 = vunpack.c.l.b16 %v2535_v18 }
 0x29e   : > { %v4216_v29 = vpack.c.b16 %v4210_v28, %v4209_v33  ;;  %v2211_v58 = vpack.c.b16 %v2203_v42, %v2163_v14  ;;  %v3431_v31 = vor.u32 %v3430_v62, %v3426_v12  ;;  %v2170_v33 = vpack.c.b16 %v6116_v21, %v6116_v21 }
 0x29f   : > { %v2835_v19 = vsel %vm522_vm5, %v2571_v0, %v6026_v6  ;;  %v2751_v63 = vpack.c.b16 %v2703_v48, %v2743_v32  ;;  %v2556_v0 = vunpack.c.l.b16 %v2492_v13  ;;  %v2171_v42 = vpack.c.b16 %v2163_v14, %v2163_v14  ;;  %v3206_v14 = vld [vmem:[#allocation2 + $0x4c] sm:$0x1] }
 0x2a0   : > { %4686 = vmatmul.msk.bf16.gmra.mxu3 %vm2377_vm14, %v4216_v29  ;;  %v2855_v2 = vsel %vm898_vm11, %v2835_v19, %v2719_v26  ;;  %v2264_v26 = vshll.u32 %v2211_v58, 16 }
 0x2a1   : > { %v2871_v6 = vsel %vm2324_vm6, %v2855_v2, %v6069_v59  ;;  %v2804_v19 = vshll.u32 %v2751_v63, 16  ;;  %v6565_v2 = vunpack.c.l.b16 %v5639_v17  ;;  %v2802_v52 = vshrl.u32 %v2751_v63, 16 }
 0x2a2   : > { %v2894_v28 = vunpack.c.l.b16 %v2871_v6  ;;  %v2266_v4 = vrot.slane %v2264_v26, 1  ;;  %v2895_v3 = vunpack.c.h.b16 %v2871_v6 }
 0x2a3   : > { %3317 = vrot.lane.b32.xlu0 %v3302_v10, %s4751_s24  ;;  %v6127_v25 = vpop.permute.xlu2 %3834  ;;  %v2262_v10 = vshrl.u32 %v2211_v58, 16  ;;  %v2570_v62 = vpack.c.b16 %v6565_v2, %v2556_v0  ;;  %v2806_v12 = vrot.slane %v2804_v19, 1 }
 0x2a4   : > { %3357 = vrot.lane.b32.xlu2 %v3342_v56, %s4755_s10  ;;  %3894 = vrot.lane.b32.xlu1 %v3880_v22, %s4755_s10  ;;  %v2910_v29 = vpack.c.b16 %v2894_v28, %v2894_v28  ;;  %v2700_v56 = vunpack.c.l.b16 %v2524_v50  ;;  %v3374_v28 = vunpack.c.l.b16 %v3206_v14  ;;  %v3176_v14 = vld [vmem:[#allocation2 + $0x18] sm:$0xf] }
 0x2a5   : > { %v6114_v47 = vpop.permute.xlu0 %3349  ;;  %v2267_v41 = vor.u32 %v2266_v4, %v2262_v10  ;;  %v2832_v61 = vsel %vm522_vm5, %v2570_v62, %v6016_v44  ;;  %v2807_v50 = vor.u32 %v2806_v12, %v2802_v52  ;;  %v3463_v12 = vsel %vm522_vm5, %v3176_v14, %v6094_v53 }
 0x2a6   : > { %v2966_v22 = vshrl.u32 %v2910_v29, 16  ;;  %v2969_v7 = vshll.u32 %v2910_v29, 16  ;;  %v2710_v24 = vpack.c.b16 %v2701_v40, %v2700_v56  ;;  %v2853_v57 = vsel %vm898_vm11, %v2832_v61, %v6044_v27  ;;  %v3177_v56 = vld [vmem:[#allocation2 + $0x20] sm:$0xf] }
 0x2a7   : > { %v3382_v29 = vpack.c.b16 %v3374_v28, %v6091_v23 }
 0x2a8   : > { %v2968_v40 = vrot.slane %v2966_v22, 4  ;;  %v2971_v58 = vrot.slane %v2969_v7, 5  ;;  %v2034_v7 = vld [vmem:[#allocation2 + $0x3c] sm:$0x1] }
 0x2a9   : > { %v3435_v62 = vshll.u32 %v3382_v29, 16  ;;  %v2202_v61 = vunpack.c.l.b16 %v2034_v7 }
 0x2aa   : > { %v2972_v44 = vor.u32 %v2971_v58, %v2968_v40 }
 0x2ab   : > { %3451 = vrot.lane.b32.xlu0 %v3431_v31, %s4756_s11  ;;  %v2911_v31 = vpack.c.b16 %v2895_v3, %v2895_v3  ;;  %v6147_v6 = vpop.permute.xlu2 %2274  ;;  %v3341_v3 = vpack.c.b16 %v6080_v37, %v6080_v37  ;;  %v3433_v37 = vshrl.u32 %v3382_v29, 16  ;;  %v3437_v52 = vrot.slane %v3435_v62, 1  ;;  %v3668_v62 = vld [vmem:[#allocation2 + $0x30] sm:$0xf] }
 0x2ac   : > { %2184 = vrot.lane.b32.xlu2 %v2170_v33, %s4755_s10  ;;  %2670 = vrot.lane.b32.xlu1 %v2655_v38, %s4751_s24  ;;  %v2973_v63 = vrot.slane %v2972_v44, 4  ;;  %v3484_v44 = vsel %vm898_vm11, %v3463_v12, %v6082_v45  ;;  %v2210_v53 = vpack.c.b16 %v2202_v61, %v6116_v21  ;;  %v2007_v21 = vld [vmem:[#allocation2 + $0x18] sm:$0xf]  ;;  %s4699_s24 = sshll.u32 %s6571_s19, 7  ;;  %v3732_v12 = vunpack.c.l.b16 %v3668_v62 }
 0x2ad   : > { %v6125_v59 = vpop.permute.xlu0 %2176  ;;  %v6129_v15 = vpop.permute.xlu1 %2146  ;;  %v2975_v13 = vshll.u32 %v2911_v31, 16  ;;  %s6195_s8 = scalar_lea.vmem %s6520_s3, %s4699_s24 }
 0x2ae   : > { %v2257_v29 = vshll.u32 %v2210_v53, 16 }
 0x2af   : > { %v2977_v19 = vrot.slane %v2975_v13, 5  ;;  %v3438_v13 = vor.u32 %v3437_v52, %v3433_v37  ;;  %v3666_v52 = vld [vmem:[#allocation2 + $0x28] sm:$0xf] }
 0x2b0   : > { %v2259_v45 = vrot.slane %v2257_v29, 1  ;;  %v6568_v29 = vunpack.c.l.b16 %v5707_v46 }
 0x2b3   : > { %2186 = vrot.lane.b32.xlu0 %v2171_v42, %s4755_s10  ;;  %v2665_v23 = vpop.permute.xlu2 %2664 }
 0x2b4   : > { %2282 = vrot.lane.b32.xlu2 %v2267_v41, %s4756_s11  ;;  %2724 = vrot.lane.b32.xlu1 %v2710_v24, %s4755_s10 }
 0x2b5   : > { %v6142_v48 = vpop.permute.xlu0 %3836  ;;  %v2813_v17 = vpop.permute.xlu1 %2812 }
 0x2b6   : > { %v2869_v18 = vsel %vm2324_vm6, %v2853_v57, %v2813_v17  ;;  %v2978_v17 = vsel %vm5896_vm13, %v2973_v63, %v2977_v19 }
 0x2b7   : > { %v2892_v33 = vunpack.c.l.b16 %v2869_v18  ;;  %v2893_v26 = vunpack.c.h.b16 %v2869_v18 }
 0x2b9   : > { %v2908_v38 = vpack.c.b16 %v2892_v33, %v2892_v33  ;;  %v2909_v32 = vpack.c.b16 %v2893_v26, %v2893_v26  ;;  %v3043_v26 = vunpack.c.l.b16 %v2978_v17 }
 0x2bb   : > { %v2952_v4 = vshrl.u32 %v2908_v38, 16  ;;  %v2955_v27 = vshll.u32 %v2908_v38, 16  ;;  %v2961_v42 = vshll.u32 %v2909_v32, 16 }
 0x2bc   : > { %2822 = vrot.lane.b32.xlu1 %v2807_v50, %s4756_s11 }
 0x2bd   : > { %v6151_v0 = vpop.permute.xlu0 %3890  ;;  %v2954_v10 = vrot.slane %v2952_v4, 4  ;;  %v2957_v41 = vrot.slane %v2955_v27, 5  ;;  %v3310_v22 = vpop.permute.xlu1 %3309  ;;  %v2963_v40 = vrot.slane %v2961_v42, 5  ;;  %v2295_v42 = vsel %vm522_vm5, %v2007_v21, %v5914_v39  ;;  %v2498_v21 = vld [vmem:[#allocation2 + $0x28] sm:$0xf] }
 0x2be   : > { %v3466_v24 = vsel %vm522_vm5, %v3177_v56, %v3310_v22  ;;  %v3989_v56 = vpop.permute.xlu2 %3988 }
 0x2bf   : > { %v2958_v2 = vor.u32 %v2957_v41, %v2954_v10  ;;  %v3486_v58 = vsel %vm898_vm11, %v3466_v24, %v6114_v47  ;;  %v2255_v10 = vshrl.u32 %v2210_v53, 16  ;;  %v2496_v41 = vld [vmem:[#allocation2 + $0x20] sm:$0xf]  ;;  %v2006_v24 = vld [vmem:[#allocation2 + $0x10] sm:$0xf] }
 0x2c0   : > { %v3502_v47 = vsel %vm2324_vm6, %v3486_v58, %v6110_v8  ;;  %v2560_v19 = vunpack.c.l.b16 %v2496_v41  ;;  %v6566_v58 = vunpack.c.l.b16 %v5745_v11 }
 0x2c1   : > { %v2959_v57 = vrot.slane %v2958_v2, 4  ;;  %v3527_v4 = vunpack.c.l.b16 %v3502_v47  ;;  %v2260_v22 = vor.u32 %v2259_v45, %v2255_v10  ;;  %v2292_v2 = vsel %vm522_vm5, %v2006_v24, %v5763_v51 }
 0x2c2   : > { %v2313_v61 = vsel %vm898_vm11, %v2292_v2, %v6125_v59  ;;  %v2572_v17 = vpack.c.b16 %v6566_v58, %v2560_v19  ;;  %v2562_v19 = vunpack.c.l.b16 %v2498_v21 }
 0x2c3   : > { %v2964_v18 = vsel %vm5896_vm13, %v2959_v57, %v2963_v40 }
 0x2c4   : > { %3355 = vrot.lane.b32.xlu1 %v3341_v3, %s4755_s10  ;;  %v3042_v33 = vunpack.c.l.b16 %v2964_v18 }
 0x2c5   : > { %v6165_v31 = vpop.permute.xlu0 %2666  ;;  %v3444_v28 = vpop.permute.xlu1 %3443 }
 0x2c6   : > { %v3500_v38 = vsel %vm2324_vm6, %v3484_v44, %v3444_v28  ;;  %v3049_v32 = vpack.c.b16 %v3043_v26, %v3042_v33  ;;  %v2817_v14 = vpop.permute.xlu2 %2816  ;;  %v6567_v26 = vunpack.c.l.b16 %v5726_v43  ;;  %v3730_v28 = vunpack.c.l.b16 %v3666_v52 }
 0x2c7   : > { %v3526_v50 = vunpack.c.l.b16 %v3500_v38 }
 0x2c8   : > { %4606 = vmatmul.msk.bf16.gmra.mxu1 %vm2377_vm14, %v3049_v32  ;;  %v3743_v47 = vpack.c.b16 %v6567_v26, %v3732_v12 }
 0x2c9   : > { %v3533_v27 = vpack.c.b16 %v3527_v4, %v3526_v50 }
 0x2ca   : > { %v4011_v44 = vsel %vm522_vm5, %v3743_v47, %v6142_v48  ;;  %v3742_v48 = vpack.c.b16 %v6568_v29, %v3730_v28 }
 0x2cb   : > { %4662 = vmatmul.msk.bf16.gmra.mxu2 %vm2377_vm14, %v3533_v27 }
 0x2cc   : > { %3453 = vrot.lane.b32.xlu1 %v3438_v13, %s4756_s11 }
 0x2cd   : > { %v2721_v8 = vpop.permute.xlu0 %2720  ;;  %v2179_v63 = vpop.permute.xlu1 %2178 }
 0x2ce   : > { %v2315_v7 = vsel %vm898_vm11, %v2295_v42, %v2179_v63  ;;  %v6214_v50 = vpop.permute.xlu2 %3313 }
 0x2cf   : > { %v2332_v39 = vsel %vm2324_vm6, %v2315_v7, %v6147_v6  ;;  %v2838_v6 = vsel %vm522_vm5, %v2572_v17, %v2665_v23 }
 0x2d0   : > { %v2356_v51 = vunpack.c.l.b16 %v2332_v39  ;;  %v2857_v11 = vsel %vm898_vm11, %v2838_v6, %v2721_v8 }
 0x2d1   : > { %v2873_v23 = vsel %vm2324_vm6, %v2857_v11, %v2817_v14 }
 0x2d2   : > { %v2896_v13 = vunpack.c.l.b16 %v2873_v23  ;;  %v2897_v26 = vunpack.c.h.b16 %v2873_v23 }
 0x2d4   : > { %2280 = vrot.lane.b32.xlu1 %v2260_v22, %s4756_s11  ;;  %v2912_v41 = vpack.c.b16 %v2896_v13, %v2896_v13  ;;  %v2913_v23 = vpack.c.b16 %v2897_v26, %v2897_v26  ;;  %s238_s11 = scalar_lea.vmem %s6521_s4, %s6571_s19 }
 0x2d5   : > { %v6182_v3 = vpop.permute.xlu0 %2818  ;;  %v2273_v57 = vpop.permute.xlu1 %2272 }
 0x2d6   : > { %v2330_v40 = vsel %vm2324_vm6, %v2313_v61, %v2273_v57  ;;  %v2980_v58 = vshrl.u32 %v2912_v41, 16  ;;  %v2983_v12 = vshll.u32 %v2912_v41, 16 }
 0x2d7   : > { %v2355_v18 = vunpack.c.l.b16 %v2330_v40 }
 0x2d9   : > { %v6197_v59 = vpop.f32.mrf.mxu1  ;;  %v2362_v33 = vpack.c.b16 %v2356_v51, %v2355_v18 }
 0x2da   : > { %v3105_v37 = vpack.c.bf16 %v6197_v59, %v6197_v59  ;;  %v3144_v36 = vmul.f32 %v6197_v59, %v6197_v59 }
 0x2db   : > { %4590 = vmatmul.msk.bf16.gmra.mxu0 %vm2377_vm14, %v2362_v33 }
 0x2dc   : > { %4609 = vst.msk [vmem:[%s6195_s8 + $0x20] sm:$0xf] %vm2427_vm15, %v3105_v37  ;;  %v6569_v37 = vunpack.c.l.b16 %v5796_v30 }
 0x2dd   : > { %v6211_v38 = vpop.permute.xlu0 %3351 }
 0x2de   : > { %v3893_v53 = vpop.permute.xlu1 %3892  ;;  %v2573_v52 = vpack.c.b16 %v6569_v37, %v2562_v19  ;;  %v3178_v37 = vld [vmem:[#allocation2 + $0x28] sm:$0xf] }
 0x2df   : > { %v4029_v32 = vsel %vm898_vm11, %v4011_v44, %v3893_v53  ;;  %v2982_v53 = vrot.slane %v2980_v58, 4 }
 0x2e0   : > { %v4045_v43 = vsel %vm2324_vm6, %v4029_v32, %v3989_v56  ;;  %v4008_v56 = vsel %vm522_vm5, %v3742_v48, %v6127_v25  ;;  %v2841_v44 = vsel %vm522_vm5, %v2573_v52, %v6165_v31 }
 0x2e1   : > { %v4068_v4 = vunpack.c.l.b16 %v4045_v43  ;;  %v6217_v27 = vpop.f32.mrf.mxu1  ;;  %v4069_v42 = vunpack.c.h.b16 %v4045_v43  ;;  %v4027_v7 = vsel %vm898_vm11, %v4008_v56, %v6151_v0  ;;  %v6242_v0 = vpop.permute.xlu2 %3447  ;;  %v2985_v43 = vrot.slane %v2983_v12, 5 }
 0x2e2   : > { %v3106_v8 = vpack.c.bf16 %v6217_v27, %v6217_v27  ;;  %v6223_v63 = vpop.f32.mrf.mxu2 }
 0x2e3   : > { %v4084_v45 = vpack.c.b16 %v4068_v4, %v4068_v4  ;;  %v3589_v10 = vpack.c.bf16 %v6223_v63, %v6223_v63  ;;  %v4085_v17 = vpack.c.b16 %v4069_v42, %v4069_v42 }
 0x2e4   : > { %4610 = vst.msk [vmem:[%s6195_s8 + $0x24] sm:$0xf] %vm2427_vm15, %v3106_v8 }
 0x2e5   : > { %v4161_v22 = vshrl.u32 %v4084_v45, 16  ;;  %v4164_v46 = vshll.u32 %v4084_v45, 16  ;;  %4665 = vst.msk [vmem:[%s6195_s8 + $0x40] sm:$0xf] %vm2427_vm15, %v3589_v10  ;;  %v6238_v57 = vpop.permute.xlu0 %3449  ;;  %v4170_v32 = vshll.u32 %v4085_v17, 16 }
 0x2e6   : > { %v3987_v24 = vpop.permute.xlu1 %3986 }
 0x2e7   : > { %v4163_v2 = vrot.slane %v4161_v22, 4  ;;  %v4166_v62 = vrot.slane %v4164_v46, 5  ;;  %v4043_v61 = vsel %vm2324_vm6, %v4027_v7, %v3987_v24  ;;  %v4172_v21 = vrot.slane %v4170_v32, 5 }
 0x2e8   : > { %v6236_v25 = vpop.f32.mrf.mxu0  ;;  %v4066_v14 = vunpack.c.l.b16 %v4043_v61  ;;  %v4067_v39 = vunpack.c.h.b16 %v4043_v61  ;;  %v2986_v22 = vor.u32 %v2985_v43, %v2982_v53 }
 0x2e9   : > { %v2419_v40 = vpack.c.bf16 %v6236_v25, %v6236_v25  ;;  %v4167_v11 = vor.u32 %v4166_v62, %v4163_v2 }
 0x2ea   : > { %v4082_v18 = vpack.c.b16 %v4066_v14, %v4066_v14  ;;  %v4083_v51 = vpack.c.b16 %v4067_v39, %v4067_v39  ;;  %v6246_v6 = vpop.f32.mrf.mxu2  ;;  %v2183_v14 = vpop.permute.xlu2 %2182  ;;  %v2989_v39 = vshll.u32 %v2913_v23, 16 }
 0x2eb   : > { %2428 = vst.msk [vmem:[%s6195_s8] sm:$0xf] %vm2427_vm15, %v2419_v40  ;;  %v3590_v33 = vpack.c.bf16 %v6246_v6, %v6246_v6  ;;  %v4168_v48 = vrot.slane %v4167_v11, 4 }
 0x2ec   : > { %v4147_v47 = vshrl.u32 %v4082_v18, 16  ;;  %v4150_v28 = vshll.u32 %v4082_v18, 16  ;;  %v4156_v29 = vshll.u32 %v4083_v51, 16  ;;  %v2987_v18 = vrot.slane %v2986_v22, 4 }
 0x2ed   : > { %4666 = vst.msk [vmem:[%s6195_s8 + $0x44] sm:$0xf] %vm2427_vm15, %v3590_v33  ;;  %v6263_v24 = vpop.permute.xlu0 %3838 }
 0x2ee   : > { %v4149_v13 = vrot.slane %v4147_v47, 4  ;;  %v4152_v4 = vrot.slane %v4150_v28, 5  ;;  %v2723_v30 = vpop.permute.xlu1 %2722  ;;  %v4158_v7 = vrot.slane %v4156_v29, 5  ;;  %v2991_v28 = vrot.slane %v2989_v39, 5 }
 0x2ef   : > { %v2859_v8 = vsel %vm898_vm11, %v2841_v44, %v2723_v30 }
 0x2f0   : > { %v6257_v45 = vpop.f32.mrf.mxu0  ;;  %v4153_v10 = vor.u32 %v4152_v4, %v4149_v13  ;;  %v2875_v31 = vsel %vm2324_vm6, %v2859_v8, %v6182_v3  ;;  %v4173_v3 = vsel %vm5896_vm13, %v4168_v48, %v4172_v21  ;;  %v2992_v30 = vsel %vm5896_vm13, %v2987_v18, %v2991_v28 }
 0x2f1   : > { %v2420_v56 = vpack.c.bf16 %v6257_v45, %v6257_v45  ;;  %v2898_v41 = vunpack.c.l.b16 %v2875_v31  ;;  %v2899_v42 = vunpack.c.h.b16 %v2875_v31  ;;  %v4212_v11 = vunpack.c.l.b16 %v4173_v3  ;;  %v3179_v31 = vld [vmem:[#allocation2 + $0x30] sm:$0xf] }
 0x2f2   : > { %v4154_v46 = vrot.slane %v4153_v10, 4 }
 0x2f3   : > { %2429 = vst.msk [vmem:[%s6195_s8 + $0x4] sm:$0xf] %vm2427_vm15, %v2420_v56  ;;  %v4252_v19 = vpop.f32.mrf.mxu3  ;;  %v2914_v2 = vpack.c.b16 %v2898_v41, %v2898_v41  ;;  %v2915_v62 = vpack.c.b16 %v2899_v42, %v2899_v42  ;;  %v3472_v41 = vsel %vm522_vm5, %v3179_v31, %v6214_v50 }
 0x2f4   : > { %v4272_v61 = vpack.c.bf16 %v4252_v19, %v4252_v19  ;;  %v4159_v40 = vsel %vm5896_vm13, %v4154_v46, %v4158_v7  ;;  %v4311_v32 = vmul.f32 %v4252_v19, %v4252_v19  ;;  %v4289_v13 = vsel %vm497_vm4, %v4252_v19, 0.0  ;;  %v2277_v46 = vpop.permute.xlu2 %2276 }
 0x2f5   : > { %v2994_v58 = vshrl.u32 %v2914_v2, 16  ;;  %v2997_v17 = vshll.u32 %v2914_v2, 16  ;;  %v4211_v12 = vunpack.c.l.b16 %v4159_v40  ;;  %v3003_v51 = vshll.u32 %v2915_v62, 16  ;;  %v2279_v56 = vpop.permute.xlu0 %2278 }
 0x2f6   : > { %4689 = vst.msk [vmem:[%s6195_s8 + $0x60] sm:$0xf] %vm2427_vm15, %v4272_v61  ;;  %v3312_v52 = vpop.permute.xlu1 %3311  ;;  %v3044_v2 = vunpack.c.l.b16 %v2992_v30 }
 0x2f7   : > { %v2996_v33 = vrot.slane %v2994_v58, 4  ;;  %v2999_v26 = vrot.slane %v2997_v17, 5  ;;  %v3469_v47 = vsel %vm522_vm5, %v3178_v37, %v3312_v52  ;;  %v4217_v44 = vpack.c.b16 %v4212_v11, %v4211_v12  ;;  %v2009_v17 = vld [vmem:[#allocation2 + $0x28] sm:$0xf] }
 0x2f8   : > { %v3005_v43 = vrot.slane %v3003_v51, 5  ;;  %v3488_v4 = vsel %vm898_vm11, %v3469_v47, %v6211_v38  ;;  %v4319_v38 = vsel %vm497_vm4, %v4311_v32, 0.0  ;;  %v2301_v18 = vsel %vm522_vm5, %v2009_v17, %v6007_v16  ;;  %v2008_v51 = vld [vmem:[#allocation2 + $0x20] sm:$0xf]  ;;  %v3670_v32 = vld [vmem:[#allocation2 + $0x38] sm:$0xf] }
 0x2f9   : > { %v3000_v53 = vor.u32 %v2999_v26, %v2996_v33  ;;  %4687 = vmatmul.msk.bf16.gmra.mxu3 %vm2377_vm14, %v4217_v44  ;;  %v3504_v61 = vsel %vm2324_vm6, %v3488_v4, %v6242_v0  ;;  %v2319_v37 = vsel %vm898_vm11, %v2301_v18, %v2183_v14  ;;  %v2298_v0 = vsel %vm522_vm5, %v2008_v51, %v6000_v55  ;;  %v3672_v33 = vld [vmem:[#allocation2 + $0x40] sm:$0xf] }
 0x2fa   : > { %v3528_v58 = vunpack.c.l.b16 %v3504_v61  ;;  %v3734_v4 = vunpack.c.l.b16 %v3670_v32 }
 0x2fb   : > { %v4254_v29 = vpop.f32.mrf.mxu3  ;;  %v3001_v48 = vrot.slane %v3000_v53, 4  ;;  %v3736_v53 = vunpack.c.l.b16 %v3672_v33 }
 0x2fc   : > { %v4273_v8 = vpack.c.bf16 %v4254_v29, %v4254_v29  ;;  %v4290_v23 = vsel %vm497_vm4, %v4254_v29, 0.0  ;;  %v4312_v10 = vmul.f32 %v4254_v29, %v4254_v29  ;;  %v3897_v47 = vpop.permute.xlu2 %3896 }
 0x2fd   : > { %v6281_v21 = vadd.f32 %v4290_v23, %v4289_v13  ;;  %v3006_v22 = vsel %vm5896_vm13, %v3001_v48, %v3005_v43  ;;  %v6306_v52 = vpop.permute.xlu0 %2668  ;;  %v3745_v55 = vpack.c.b16 %v3737_v20, %v3736_v53 }
 0x2fe   : > { %4690 = vst.msk [vmem:[%s6195_s8 + $0x64] sm:$0xf] %vm2427_vm15, %v4273_v8  ;;  %v4320_v42 = vsel %vm497_vm4, %v4312_v10, 0.0  ;;  %v3354_v19 = vpop.permute.xlu1 %3353  ;;  %v3045_v62 = vunpack.c.l.b16 %v3006_v22  ;;  %v3744_v10 = vpack.c.b16 %v3735_v35, %v3734_v4 }
 0x2ff   : > { %v6291_v7 = vadd.f32 %v4320_v42, %v4319_v38  ;;  %v3490_v50 = vsel %vm898_vm11, %v3472_v41, %v3354_v19 }
 0x300   : > { %v3506_v3 = vsel %vm2324_vm6, %v3490_v50, %v6238_v57  ;;  %v3050_v39 = vpack.c.b16 %v3045_v62, %v3044_v2  ;;  %v2336_v57 = vsel %vm2324_vm6, %v2319_v37, %v2279_v56  ;;  %v4014_v9 = vsel %vm522_vm5, %v3744_v10, %v6263_v24 }
 0x301   : > { %v3529_v40 = vunpack.c.l.b16 %v3506_v3  ;;  %v2358_v16 = vunpack.c.l.b16 %v2336_v57 }
 0x302   : > { %4607 = vmatmul.msk.bf16.gmra.mxu1 %vm2377_vm14, %v3050_v39  ;;  %v2500_v39 = vld [vmem:[#allocation2 + $0x30] sm:$0xf] }
 0x303   : > { %v3534_v12 = vpack.c.b16 %v3529_v40, %v3528_v58 }
 0x304   : > { %v3991_v8 = vpop.permute.xlu2 %3990 }
 0x305   : > { %4663 = vmatmul.msk.bf16.gmra.mxu2 %vm2377_vm14, %v3534_v12  ;;  %v3993_v29 = vpop.permute.xlu0 %3992 }
 0x306   : > { %v2181_v11 = vpop.permute.xlu1 %2180 }
 0x307   : > { %v2317_v26 = vsel %vm898_vm11, %v2298_v0, %v2181_v11  ;;  %v2564_v0 = vunpack.c.l.b16 %v2500_v39 }
 0x308   : > { %v2334_v28 = vsel %vm2324_vm6, %v2317_v26, %v2277_v46  ;;  %v2502_v26 = vld [vmem:[#allocation2 + $0x38] sm:$0xf] }
 0x309   : > { %v2357_v44 = vunpack.c.l.b16 %v2334_v28  ;;  %v2566_v53 = vunpack.c.l.b16 %v2502_v26 }
 0x30b   : > { %v2363_v14 = vpack.c.b16 %v2358_v16, %v2357_v44  ;;  %v2574_v44 = vpack.c.b16 %v2565_v5, %v2564_v0 }
 0x30c   : > { %v2727_v3 = vpop.permute.xlu2 %2726 }
 0x30d   : > { %4591 = vmatmul.msk.bf16.gmra.mxu0 %vm2377_vm14, %v2363_v14  ;;  %v2821_v11 = vpop.permute.xlu0 %2820 }
 0x30e   : > { %v3841_v43 = vpop.permute.xlu1 %3840 }
 0x30f   : > { %v4017_v13 = vsel %vm522_vm5, %v3745_v55, %v3841_v43 }
 0x310   : > { %v4033_v30 = vsel %vm898_vm11, %v4017_v13, %v3897_v47 }
 0x311   : > { %v4049_v48 = vsel %vm2324_vm6, %v4033_v30, %v3993_v29  ;;  %v2844_v29 = vsel %vm522_vm5, %v2574_v44, %v6306_v52 }
 0x312   : > { %v4072_v23 = vunpack.c.l.b16 %v4049_v48  ;;  %v4073_v56 = vunpack.c.h.b16 %v4049_v48 }
 0x314   : > { %v4088_v31 = vpack.c.b16 %v4072_v23, %v4072_v23  ;;  %v4089_v2 = vpack.c.b16 %v4073_v56, %v4073_v56  ;;  %v3316_v4 = vpop.permute.xlu2 %3315 }
 0x316   : > { %v4189_v20 = vshrl.u32 %v4088_v31, 16  ;;  %v4192_v41 = vshll.u32 %v4088_v31, 16  ;;  %v3895_v38 = vpop.permute.xlu1 %3894  ;;  %v4198_v40 = vshll.u32 %v4089_v2, 16 }
 0x317   : > { %v4031_v42 = vsel %vm898_vm11, %v4014_v9, %v3895_v38  ;;  %v3318_v9 = vpop.permute.xlu0 %3317 }
 0x318   : > { %v4191_v22 = vrot.slane %v4189_v20, 4  ;;  %v4194_v46 = vrot.slane %v4192_v41, 5  ;;  %v4047_v19 = vsel %vm2324_vm6, %v4031_v42, %v3991_v8  ;;  %v4200_v57 = vrot.slane %v4198_v40, 5 }
 0x319   : > { %v4070_v62 = vunpack.c.l.b16 %v4047_v19  ;;  %v4071_v61 = vunpack.c.h.b16 %v4047_v19 }
 0x31a   : > { %v4195_v35 = vor.u32 %v4194_v46, %v4191_v22 }
 0x31b   : > { %v4086_v50 = vpack.c.b16 %v4070_v62, %v4070_v62  ;;  %v4087_v60 = vpack.c.b16 %v4071_v61, %v4071_v61 }
 0x31c   : > { %v4196_v37 = vrot.slane %v4195_v35, 4 }
 0x31d   : > { %v4175_v58 = vshrl.u32 %v4086_v50, 16  ;;  %v4178_v24 = vshll.u32 %v4086_v50, 16  ;;  %v4184_v51 = vshll.u32 %v4087_v60, 16 }
 0x31e   : > { %v2671_v17 = vpop.permute.xlu1 %2670  ;;  %v4201_v16 = vsel %vm5896_vm13, %v4196_v37, %v4200_v57 }
 0x31f   : > { %v4177_v12 = vrot.slane %v4175_v58, 4  ;;  %v4180_v18 = vrot.slane %v4178_v24, 5  ;;  %v4186_v28 = vrot.slane %v4184_v51, 5  ;;  %v4214_v1 = vunpack.c.l.b16 %v4201_v16  ;;  %v3452_v24 = vpop.permute.xlu0 %3451  ;;  %v3181_v16 = vld [vmem:[#allocation2 + $0x40] sm:$0xf] }
 0x321   : > { %v4181_v33 = vor.u32 %v4180_v18, %v4177_v12 }
 0x323   : > { %v4182_v47 = vrot.slane %v4181_v33, 4  ;;  %v4257_v14 = vpop.f32.mrf.mxu3  ;;  %v3180_v33 = vld [vmem:[#allocation2 + $0x38] sm:$0xf] }
 0x324   : > { %v4274_v32 = vpack.c.bf16 %v4257_v14, %v4257_v14  ;;  %v4292_v55 = vsel %vm497_vm4, %v4257_v14, 0.0  ;;  %v4313_v43 = vmul.f32 %v4257_v14, %v4257_v14 }
 0x325   : > { %v4187_v13 = vsel %vm5896_vm13, %v4182_v47, %v4186_v28  ;;  %v6332_v30 = vadd.f32 %v4292_v55, %v6281_v21  ;;  %v2575_v21 = vpack.c.b16 %v2567_v49, %v2566_v53  ;;  %v3358_v49 = vpop.permute.xlu2 %3357  ;;  %v3478_v53 = vsel %vm522_vm5, %v3181_v16, %v3318_v9 }
 0x326   : > { %v2725_v48 = vpop.permute.xlu1 %2724  ;;  %v4213_v8 = vunpack.c.l.b16 %v4187_v13  ;;  %4691 = vst.msk [vmem:[%s6195_s8 + $0x68] sm:$0xf] %vm2427_vm15, %v4274_v32  ;;  %v4322_v5 = vsel %vm497_vm4, %v4313_v43, 0.0  ;;  %v3145_v9 = vmul.f32 %v6217_v27, %v6217_v27 }
 0x327   : > { %v2861_v23 = vsel %vm898_vm11, %v2844_v29, %v2725_v48  ;;  %v6339_v10 = vadd.f32 %v4322_v5, %v6291_v7  ;;  %v2847_v41 = vsel %vm522_vm5, %v2575_v21, %v2671_v17 }
 0x328   : > { %v2877_v31 = vsel %vm2324_vm6, %v2861_v23, %v2821_v11  ;;  %v4218_v56 = vpack.c.b16 %v4214_v1, %v4213_v8  ;;  %v2863_v34 = vsel %vm898_vm11, %v2847_v41, %v2727_v3  ;;  %v3475_v3 = vsel %vm522_vm5, %v3180_v33, %v3316_v4  ;;  %v2187_v1 = vpop.permute.xlu0 %2186  ;;  %v2011_v23 = vld [vmem:[#allocation2 + $0x38] sm:$0xf] }
 0x329   : > { %v2900_v52 = vunpack.c.l.b16 %v2877_v31  ;;  %v2901_v42 = vunpack.c.h.b16 %v2877_v31  ;;  %v3494_v4 = vsel %vm898_vm11, %v3478_v53, %v3358_v49  ;;  %v2307_v21 = vsel %vm522_vm5, %v2011_v23, %v6129_v15 }
 0x32a   : > { %4688 = vmatmul.msk.bf16.gmra.mxu3 %vm2377_vm14, %v4218_v56 }
 0x32b   : > { %v2916_v20 = vpack.c.b16 %v2900_v52, %v2900_v52  ;;  %v6346_v38 = vpop.f32.mrf.mxu3  ;;  %v2917_v50 = vpack.c.b16 %v2901_v42, %v2901_v42  ;;  %v3123_v42 = vsel %vm497_vm4, %v6217_v27, 0.0 }
 0x32c   : > { %v4275_v46 = vpack.c.bf16 %v6346_v38, %v6346_v38 }
 0x32d   : > { %v3008_v22 = vshrl.u32 %v2916_v20, 16  ;;  %v3011_v7 = vshll.u32 %v2916_v20, 16  ;;  %v3017_v17 = vshll.u32 %v2917_v50, 16  ;;  %v2185_v28 = vpop.permute.xlu2 %2184  ;;  %v2323_v20 = vsel %vm898_vm11, %v2307_v21, %v2187_v1 }
 0x32e   : > { %v2823_v19 = vpop.permute.xlu1 %2822  ;;  %4692 = vst.msk [vmem:[%s6195_s8 + $0x6c] sm:$0xf] %vm2427_vm15, %v4275_v46  ;;  %v3122_v46 = vsel %vm497_vm4, %v6197_v59, 0.0 }
 0x32f   : > { %v3010_v2 = vrot.slane %v3008_v22, 4  ;;  %v3013_v62 = vrot.slane %v3011_v7, 5  ;;  %v2879_v61 = vsel %vm2324_vm6, %v2863_v34, %v2823_v19  ;;  %v3019_v26 = vrot.slane %v3017_v17, 5  ;;  %v2010_v22 = vld [vmem:[#allocation2 + $0x30] sm:$0xf] }
 0x330   : > { %v2902_v60 = vunpack.c.l.b16 %v2879_v61  ;;  %v2903_v35 = vunpack.c.h.b16 %v2879_v61  ;;  %v2304_v15 = vsel %vm522_vm5, %v2010_v22, %v6042_v54  ;;  %v3153_v19 = vsel %vm497_vm4, %v3145_v9, 0.0 }
 0x331   : > { %v3014_v39 = vor.u32 %v3013_v62, %v3010_v2  ;;  %v3152_v62 = vsel %vm497_vm4, %v3144_v36, 0.0  ;;  %v3124_v34 = vadd.f32 %v3123_v42, %v3122_v46  ;;  %v2321_v27 = vsel %vm898_vm11, %v2304_v15, %v2185_v28 }
 0x332   : > { %v2918_v40 = vpack.c.b16 %v2902_v60, %v2902_v60  ;;  %v2919_v58 = vpack.c.b16 %v2903_v35, %v2903_v35  ;;  %v3628_v17 = vmul.f32 %v6223_v63, %v6223_v63 }
 0x333   : > { %v3015_v37 = vrot.slane %v3014_v39, 4  ;;  %v3154_v39 = vadd.f32 %v3153_v19, %v3152_v62 }
 0x334   : > { %v3022_v12 = vshrl.u32 %v2918_v40, 16  ;;  %v3025_v18 = vshll.u32 %v2918_v40, 16  ;;  %v3031_v11 = vshll.u32 %v2919_v58, 16 }
 0x335   : > { %v3020_v55 = vsel %vm5896_vm13, %v3015_v37, %v3019_v26  ;;  %v2283_v7 = vpop.permute.xlu2 %2282  ;;  %v3607_v37 = vsel %vm497_vm4, %v6246_v6, 0.0 }
 0x336   : > { %v3356_v51 = vpop.permute.xlu1 %3355  ;;  %v3024_v0 = vrot.slane %v3022_v12, 4  ;;  %v3027_v57 = vrot.slane %v3025_v18, 5  ;;  %v3033_v32 = vrot.slane %v3031_v11, 5  ;;  %v3046_v48 = vunpack.c.l.b16 %v3020_v55 }
 0x337   : > { %v3492_v44 = vsel %vm898_vm11, %v3475_v3, %v3356_v51  ;;  %v2340_v2 = vsel %vm2324_vm6, %v2323_v20, %v2283_v7  ;;  %v3629_v12 = vmul.f32 %v6246_v6, %v6246_v6 }
 0x338   : > { %v3028_v47 = vor.u32 %v3027_v57, %v3024_v0  ;;  %v3508_v43 = vsel %vm2324_vm6, %v3492_v44, %v3452_v24  ;;  %v2360_v59 = vunpack.c.l.b16 %v2340_v2  ;;  %v3606_v0 = vsel %vm497_vm4, %v6223_v63, 0.0 }
 0x339   : > { %v3530_v31 = vunpack.c.l.b16 %v3508_v43  ;;  %v3636_v57 = vsel %vm497_vm4, %v3628_v17, 0.0  ;;  %v3637_v11 = vsel %vm497_vm4, %v3629_v12, 0.0  ;;  %v3608_v3 = vadd.f32 %v3607_v37, %v3606_v0 }
 0x33a   : > { %v3029_v14 = vrot.slane %v3028_v47, 4 }
 0x33c   : > { %v3034_v13 = vsel %vm5896_vm13, %v3029_v14, %v3033_v32  ;;  %v3638_v32 = vadd.f32 %v3637_v11, %v3636_v57 }
 0x33d   : > { %v3047_v8 = vunpack.c.l.b16 %v3034_v13 }
 0x33e   : > { %v3454_v29 = vpop.permute.xlu1 %3453 }
 0x33f   : > { %v3510_v5 = vsel %vm2324_vm6, %v3494_v4, %v3454_v29  ;;  %v3051_v52 = vpack.c.b16 %v3047_v8, %v3046_v48  ;;  %v2459_v4 = vmul.f32 %v6257_v45, %v6257_v45  ;;  %v2458_v48 = vmul.f32 %v6236_v25, %v6236_v25 }
 0x340   : > { %v3531_v56 = vunpack.c.l.b16 %v3510_v5  ;;  %v2437_v8 = vsel %vm497_vm4, %v6257_v45, 0.0 }
 0x341   : > { %4608 = vmatmul.msk.bf16.gmra.mxu1 %vm2377_vm14, %v3051_v52  ;;  %v2467_v52 = vsel %vm497_vm4, %v2459_v4, 0.0  ;;  %v2466_v9 = vsel %vm497_vm4, %v2458_v48, 0.0 }
 0x342   : > { %v3535_v41 = vpack.c.b16 %v3531_v56, %v3530_v31  ;;  %v2436_v56 = vsel %vm497_vm4, %v6236_v25, 0.0  ;;  %v2468_v15 = vadd.f32 %v2467_v52, %v2466_v9 }
 0x343   : > { %v2438_v36 = vadd.f32 %v2437_v8, %v2436_v56 }
 0x344   : > { %4664 = vmatmul.msk.bf16.gmra.mxu2 %vm2377_vm14, %v3535_v41 }
 0x345   : > { %v3090_v61 = vpop.f32.mrf.mxu1 }
 0x346   : > { %v2281_v49 = vpop.permute.xlu1 %2280  ;;  %v3107_v60 = vpack.c.bf16 %v3090_v61, %v3090_v61  ;;  %v3125_v54 = vsel %vm497_vm4, %v3090_v61, 0.0  ;;  %v3146_v35 = vmul.f32 %v3090_v61, %v3090_v61 }
 0x347   : > { %v2338_v50 = vsel %vm2324_vm6, %v2321_v27, %v2281_v49  ;;  %v3126_v58 = vadd.f32 %v3125_v54, %v3124_v34  ;;  %v4294_v54 = vsel %vm497_vm4, %v6346_v38, 0.0 }
 0x348   : > { %v2359_v40 = vunpack.c.l.b16 %v2338_v50  ;;  %4611 = vst.msk [vmem:[%s6195_s8 + $0x28] sm:$0xf] %vm2427_vm15, %v3107_v60  ;;  %v3155_v24 = vsel %vm497_vm4, %v3146_v35, 0.0  ;;  %v4314_v60 = vmul.f32 %v6346_v38, %v6346_v38 }
 0x349   : > { %v3156_v18 = vadd.f32 %v3155_v24, %v3154_v39  ;;  %v4295_v39 = vadd.f32 %v4294_v54, %v6332_v30 }
 0x34a   : > { %v2364_v51 = vpack.c.b16 %v2360_v59, %v2359_v40  ;;  %v4324_v35 = vsel %vm497_vm4, %v4314_v60, 0.0 }
 0x34b   : > { %v4325_v17 = vadd.f32 %v4324_v35, %v6339_v10 }
 0x34c   : > { %4592 = vmatmul.msk.bf16.gmra.mxu0 %vm2377_vm14, %v2364_v51 }
 0x34d   : > { %v3092_v33 = vpop.f32.mrf.mxu1 }
 0x34e   : > { %v3108_v26 = vpack.c.bf16 %v3092_v33, %v3092_v33  ;;  %v3127_v47 = vsel %vm497_vm4, %v3092_v33, 0.0  ;;  %v3147_v28 = vmul.f32 %v3092_v33, %v3092_v33  ;;  %v3574_v16 = vpop.f32.mrf.mxu2 }
 0x34f   : > { %v3128_v44 = vadd.f32 %v3127_v47, %v3126_v58  ;;  %v3591_v6 = vpack.c.bf16 %v3574_v16, %v3574_v16  ;;  %v3609_v53 = vsel %vm497_vm4, %v3574_v16, 0.0  ;;  %v3630_v14 = vmul.f32 %v3574_v16, %v3574_v16 }
 0x350   : > { %4612 = vst.msk [vmem:[%s6195_s8 + $0x2c] sm:$0xf] %vm2427_vm15, %v3108_v26  ;;  %v3157_v63 = vsel %vm497_vm4, %v3147_v28, 0.0  ;;  %v3610_v55 = vadd.f32 %v3609_v53, %v3608_v3 }
 0x351   : > { %v3158_v43 = vadd.f32 %v3157_v63, %v3156_v18  ;;  %4667 = vst.msk [vmem:[%s6195_s8 + $0x48] sm:$0xf] %vm2427_vm15, %v3591_v6  ;;  %v3639_v13 = vsel %vm497_vm4, %v3630_v14, 0.0 }
 0x352   : > { %v3640_v29 = vadd.f32 %v3639_v13, %v3638_v32 }
 0x356   : > { %v3576_v1 = vpop.f32.mrf.mxu2 }
 0x357   : > { %v3592_v5 = vpack.c.bf16 %v3576_v1, %v3576_v1  ;;  %v3611_v23 = vsel %vm497_vm4, %v3576_v1, 0.0  ;;  %v3631_v31 = vmul.f32 %v3576_v1, %v3576_v1 }
 0x358   : > { %v3612_v21 = vadd.f32 %v3611_v23, %v3610_v55  ;;  %v2404_v45 = vpop.f32.mrf.mxu0 }
 0x359   : > { %4668 = vst.msk [vmem:[%s6195_s8 + $0x4c] sm:$0xf] %vm2427_vm15, %v3592_v5  ;;  %v3641_v20 = vsel %vm497_vm4, %v3631_v31, 0.0  ;;  %v2421_v42 = vpack.c.bf16 %v2404_v45, %v2404_v45  ;;  %v2439_v22 = vsel %vm497_vm4, %v2404_v45, 0.0  ;;  %v2460_v7 = vmul.f32 %v2404_v45, %v2404_v45 }
 0x35a   : > { %v6421_v41 = vadd.f32 %v3641_v20, %v3640_v29  ;;  %v2440_v25 = vadd.f32 %v2439_v22, %v2438_v36 }
 0x35b   : > { %2430 = vst.msk [vmem:[%s6195_s8 + $0x8] sm:$0xf] %vm2427_vm15, %v2421_v42  ;;  %v2469_v46 = vsel %vm497_vm4, %v2460_v7, 0.0 }
 0x35c   : > { %v2470_v19 = vadd.f32 %v2469_v46, %v2468_v15 }
 0x360   : > { %v2406_v2 = vpop.f32.mrf.mxu0 }
 0x361   : > { %v2422_v62 = vpack.c.bf16 %v2406_v2, %v2406_v2  ;;  %v2441_v34 = vsel %vm497_vm4, %v2406_v2, 0.0  ;;  %v2461_v27 = vmul.f32 %v2406_v2, %v2406_v2 }
 0x362   : > { %v2442_v49 = vadd.f32 %v2441_v34, %v2440_v25 }
 0x363   : > { %2431 = vst.msk [vmem:[%s6195_s8 + $0xc] sm:$0xf] %vm2427_vm15, %v2422_v62  ;;  %v2471_v61 = vsel %vm497_vm4, %v2461_v27, 0.0 }
 0x364   : > { %v2472_v50 = vadd.f32 %v2471_v61, %v2470_v19 }
 0x37c   : > { %v4262_v59 = vpop.f32.mrf.mxu3 }
 0x37d   : > { %v4276_v40 = vpack.c.bf16 %v4262_v59, %v4262_v59  ;;  %v4296_v58 = vsel %vm497_vm4, %v4262_v59, 0.0  ;;  %v4315_v24 = vmul.f32 %v4262_v59, %v4262_v59 }
 0x37e   : > { %v4297_v12 = vadd.f32 %v4296_v58, %v4295_v39 }
 0x37f   : > { %v3095_v18 = vpop.f32.mrf.mxu1  ;;  %4693 = vst.msk [vmem:[%s6195_s8 + $0x70] sm:$0xf] %vm2427_vm15, %v4276_v40  ;;  %v4326_v51 = vsel %vm497_vm4, %v4315_v24, 0.0 }
 0x380   : > { %v3109_v38 = vpack.c.bf16 %v3095_v18, %v3095_v18  ;;  %v3129_v37 = vsel %vm497_vm4, %v3095_v18, 0.0  ;;  %v3148_v0 = vmul.f32 %v3095_v18, %v3095_v18  ;;  %v4327_v57 = vadd.f32 %v4326_v51, %v4325_v17 }
 0x381   : > { %v3130_v30 = vadd.f32 %v3129_v37, %v3128_v44 }
 0x382   : > { %4613 = vst.msk [vmem:[%s6195_s8 + $0x30] sm:$0xf] %vm2427_vm15, %v3109_v38  ;;  %v3159_v11 = vsel %vm497_vm4, %v3148_v0, 0.0 }
 0x383   : > { %v3160_v33 = vadd.f32 %v3159_v11, %v3158_v43 }
 0x384   : > { %v4264_v3 = vpop.f32.mrf.mxu3 }
 0x385   : > { %v4277_v10 = vpack.c.bf16 %v4264_v3, %v4264_v3  ;;  %v4298_v26 = vsel %vm497_vm4, %v4264_v3, 0.0  ;;  %v4316_v47 = vmul.f32 %v4264_v3, %v4264_v3 }
 0x386   : > { %v6447_v28 = vadd.f32 %v4298_v26, %v4297_v12 }
 0x387   : > { %v3097_v16 = vpop.f32.mrf.mxu1  ;;  %4694 = vst.msk [vmem:[%s6195_s8 + $0x74] sm:$0xf] %vm2427_vm15, %v4277_v10  ;;  %v4328_v6 = vsel %vm497_vm4, %v4316_v47, 0.0 }
 0x388   : > { %v3110_v44 = vpack.c.bf16 %v3097_v16, %v3097_v16  ;;  %v3131_v53 = vsel %vm497_vm4, %v3097_v16, 0.0  ;;  %v3149_v14 = vmul.f32 %v3097_v16, %v3097_v16  ;;  %v3579_v32 = vpop.f32.mrf.mxu2  ;;  %v4329_v63 = vadd.f32 %v4328_v6, %v4327_v57 }
 0x389   : > { %v3132_v55 = vadd.f32 %v3131_v53, %v3130_v30  ;;  %v3593_v43 = vpack.c.bf16 %v3579_v32, %v3579_v32  ;;  %v3613_v13 = vsel %vm497_vm4, %v3579_v32, 0.0  ;;  %v3632_v48 = vmul.f32 %v3579_v32, %v3579_v32 }
 0x38a   : > { %4614 = vst.msk [vmem:[%s6195_s8 + $0x34] sm:$0xf] %vm2427_vm15, %v3110_v44  ;;  %v3161_v29 = vsel %vm497_vm4, %v3149_v14, 0.0  ;;  %v3614_v4 = vadd.f32 %v3613_v13, %v3612_v21  ;;  %v2409_v8 = vpop.f32.mrf.mxu0 }
 0x38b   : > { %v3162_v1 = vadd.f32 %v3161_v29, %v3160_v33  ;;  %4669 = vst.msk [vmem:[%s6195_s8 + $0x50] sm:$0xf] %vm2427_vm15, %v3593_v43  ;;  %v2423_v5 = vpack.c.bf16 %v2409_v8, %v2409_v8  ;;  %v2443_v23 = vsel %vm497_vm4, %v2409_v8, 0.0  ;;  %v2462_v31 = vmul.f32 %v2409_v8, %v2409_v8 }
 0x38c   : > { %v3643_v56 = vsel %vm497_vm4, %v3632_v48, 0.0  ;;  %v2444_v52 = vadd.f32 %v2443_v23, %v2442_v49 }
 0x38d   : > { %v3644_v9 = vadd.f32 %v3643_v56, %v6421_v41  ;;  %2432 = vst.msk [vmem:[%s6195_s8 + $0x10] sm:$0xf] %vm2427_vm15, %v2423_v5  ;;  %v2473_v21 = vsel %vm497_vm4, %v2462_v31, 0.0 }
 0x38e   : > { %v2474_v36 = vadd.f32 %v2473_v21, %v2472_v50 }
 0x390   : > { %v3581_v20 = vpop.f32.mrf.mxu2 }
 0x391   : > { %v3594_v45 = vpack.c.bf16 %v3581_v20, %v3581_v20  ;;  %v3615_v42 = vsel %vm497_vm4, %v3581_v20, 0.0  ;;  %v3633_v22 = vmul.f32 %v3581_v20, %v3581_v20 }
 0x392   : > { %v3616_v7 = vadd.f32 %v3615_v42, %v3614_v4  ;;  %v2411_v15 = vpop.f32.mrf.mxu0 }
 0x393   : > { %4670 = vst.msk [vmem:[%s6195_s8 + $0x54] sm:$0xf] %vm2427_vm15, %v3594_v45  ;;  %v3645_v25 = vsel %vm497_vm4, %v3633_v22, 0.0  ;;  %v2424_v41 = vpack.c.bf16 %v2411_v15, %v2411_v15  ;;  %v2463_v40 = vmul.f32 %v2411_v15, %v2411_v15  ;;  %v2445_v10 = vsel %vm497_vm4, %v2411_v15, 0.0 }
 0x394   : > { %v3646_v46 = vadd.f32 %v3645_v25, %v3644_v9 }
 0x395   : > { %2433 = vst.msk [vmem:[%s6195_s8 + $0x14] sm:$0xf] %vm2427_vm15, %v2424_v41  ;;  %v2475_v6 = vsel %vm497_vm4, %v2463_v40, 0.0 }
 0x396   : > { %v2476_v29 = vadd.f32 %v2475_v6, %v2474_v36 }
 0x3ad   : > { %v4267_v19 = vpop.f32.mrf.mxu3 }
 0x3ae   : > { %v4278_v2 = vpack.c.bf16 %v4267_v19, %v4267_v19  ;;  %v4317_v61 = vmul.f32 %v4267_v19, %v4267_v19  ;;  %v4300_v35 = vsel %vm497_vm4, %v4267_v19, 0.0 }
 0x3af   : > { %v4301_v57 = vadd.f32 %v4300_v35, %v6447_v28 }
 0x3b0   : > { %4695 = vst.msk [vmem:[%s6195_s8 + $0x78] sm:$0xf] %vm2427_vm15, %v4278_v2  ;;  %v4330_v39 = vsel %vm497_vm4, %v4317_v61, 0.0 }
 0x3b1   : > { %v4331_v30 = vadd.f32 %v4330_v39, %v4329_v63 }
 0x3b5   : > { %v4269_v62 = vpop.f32.mrf.mxu3 }
 0x3b6   : > { %v4279_v34 = vpack.c.bf16 %v4269_v62, %v4269_v62  ;;  %v4318_v60 = vmul.f32 %v4269_v62, %v4269_v62  ;;  %v4302_v58 = vsel %vm497_vm4, %v4269_v62, 0.0 }
 0x3b7   : > { %v4303_v44 = vadd.f32 %v4302_v58, %v4301_v57 }
 0x3b8   : > { %4696 = vst.msk [vmem:[%s6195_s8 + $0x7c] sm:$0xf] %vm2427_vm15, %v4279_v34  ;;  %v4332_v24 = vsel %vm497_vm4, %v4318_v60, 0.0 }
 0x3b9   : > { %v4333_v53 = vadd.f32 %v4332_v24, %v4331_v30  ;;  %v4304_v48 = vrot.slane %v4303_v44, 4 }
 0x3bb   : > { %v4334_v8 = vrot.slane %v4333_v53, 4  ;;  %v4305_v41 = vadd.f32 %v4304_v48, %v4303_v44 }
 0x3bd   : > { %v4306_v39 = vrot.slane %v4305_v41, 2 }
 0x3be   : > { %v3100_v27 = vpop.f32.mrf.mxu1 }
 0x3bf   : > { %v3111_v49 = vpack.c.bf16 %v3100_v27, %v3100_v27  ;;  %v3150_v50 = vmul.f32 %v3100_v27, %v3100_v27  ;;  %v3133_v54 = vsel %vm497_vm4, %v3100_v27, 0.0  ;;  %v4307_v57 = vadd.f32 %v4306_v39, %v4305_v41 }
 0x3c0   : > { %v3134_v17 = vadd.f32 %v3133_v54, %v3132_v55  ;;  %v2446_v55 = vadd.f32 %v2445_v10, %v2444_v52 }
 0x3c1   : > { %4615 = vst.msk [vmem:[%s6195_s8 + $0x38] sm:$0xf] %vm2427_vm15, %v3111_v49  ;;  %v3163_v59 = vsel %vm497_vm4, %v3150_v50, 0.0  ;;  %v4335_v49 = vadd.f32 %v4334_v8, %v4333_v53  ;;  %v4308_v44 = vrot.slane %v4307_v57, 1 }
 0x3c2   : > { %v3164_v11 = vadd.f32 %v3163_v59, %v3162_v1 }
 0x3c6   : > { %v3102_v12 = vpop.f32.mrf.mxu1 }
 0x3c7   : > { %v3584_v18 = vpop.f32.mrf.mxu2  ;;  %v3112_v51 = vpack.c.bf16 %v3102_v12, %v3102_v12  ;;  %v3135_v38 = vsel %vm497_vm4, %v3102_v12, 0.0  ;;  %v3151_v37 = vmul.f32 %v3102_v12, %v3102_v12  ;;  %v4336_v12 = vrot.slane %v4335_v49, 2 }
 0x3c8   : > { %v3595_v0 = vpack.c.bf16 %v3584_v18, %v3584_v18  ;;  %v3136_v33 = vadd.f32 %v3135_v38, %v3134_v17  ;;  %v3634_v47 = vmul.f32 %v3584_v18, %v3584_v18  ;;  %v3617_v32 = vsel %vm497_vm4, %v3584_v18, 0.0 }
 0x3c9   : > { %v2414_v3 = vpop.f32.mrf.mxu0  ;;  %4616 = vst.msk [vmem:[%s6195_s8 + $0x3c] sm:$0xf] %vm2427_vm15, %v3112_v51  ;;  %v3165_v26 = vsel %vm497_vm4, %v3151_v37, 0.0  ;;  %v3618_v1 = vadd.f32 %v3617_v32, %v3616_v7  ;;  %v4337_v10 = vadd.f32 %v4336_v12, %v4335_v49 }
 0x3ca   : > { %v2425_v16 = vpack.c.bf16 %v2414_v3, %v2414_v3  ;;  %v3166_v14 = vadd.f32 %v3165_v26, %v3164_v11  ;;  %4671 = vst.msk [vmem:[%s6195_s8 + $0x58] sm:$0xf] %vm2427_vm15, %v3595_v0  ;;  %v3137_v28 = vrot.slane %v3136_v33, 4  ;;  %v2447_v63 = vsel %vm497_vm4, %v2414_v3, 0.0 }
 0x3cb   : > { %v2464_v13 = vmul.f32 %v2414_v3, %v2414_v3  ;;  %v3647_v4 = vsel %vm497_vm4, %v3634_v47, 0.0  ;;  %v2448_v5 = vadd.f32 %v2447_v63, %v2446_v55  ;;  %v4338_v63 = vrot.slane %v4337_v10, 1 }
 0x3cc   : > { %2434 = vst.msk [vmem:[%s6195_s8 + $0x18] sm:$0xf] %vm2427_vm15, %v2425_v16  ;;  %v3167_v43 = vrot.slane %v3166_v14, 4  ;;  %v3138_v31 = vadd.f32 %v3137_v28, %v3136_v33  ;;  %v3648_v45 = vadd.f32 %v3647_v4, %v3646_v46  ;;  %v4309_v4 = vadd.f32 %v4308_v44, %v4307_v57 }
 0x3cd   : > { %v2477_v52 = vsel %vm497_vm4, %v2464_v13, 0.0 }
 0x3ce   : > { %v3168_v20 = vadd.f32 %v3167_v43, %v3166_v14  ;;  %v3139_v62 = vrot.slane %v3138_v31, 2  ;;  %v2478_v34 = vadd.f32 %v2477_v52, %v2476_v29 }
 0x3cf   : > { %v3586_v23 = vpop.f32.mrf.mxu2 }
 0x3d0   : > { %v3596_v56 = vpack.c.bf16 %v3586_v23, %v3586_v23  ;;  %v3619_v9 = vsel %vm497_vm4, %v3586_v23, 0.0  ;;  %v3635_v21 = vmul.f32 %v3586_v23, %v3586_v23  ;;  %v3169_v60 = vrot.slane %v3168_v20, 2 }
 0x3d1   : > { %v3620_v42 = vadd.f32 %v3619_v9, %v3618_v1  ;;  %v2416_v36 = vpop.f32.mrf.mxu0  ;;  %v3140_v58 = vadd.f32 %v3139_v62, %v3138_v31 }
 0x3d2   : > { %4672 = vst.msk [vmem:[%s6195_s8 + $0x5c] sm:$0xf] %vm2427_vm15, %v3596_v56  ;;  %v3649_v22 = vsel %vm497_vm4, %v3635_v21, 0.0  ;;  %v2426_v15 = vpack.c.bf16 %v2416_v36, %v2416_v36  ;;  %v2449_v7 = vsel %vm497_vm4, %v2416_v36, 0.0  ;;  %v2465_v25 = vmul.f32 %v2416_v36, %v2416_v36 }
 0x3d3   : > { %v3621_v19 = vrot.slane %v3620_v42, 4  ;;  %v3650_v2 = vadd.f32 %v3649_v22, %v3648_v45  ;;  %v2450_v46 = vadd.f32 %v2449_v7, %v2448_v5  ;;  %v3170_v51 = vadd.f32 %v3169_v60, %v3168_v20 }
 0x3d4   : > { %2435 = vst.msk [vmem:[%s6195_s8 + $0x1c] sm:$0xf] %vm2427_vm15, %v2426_v15  ;;  %v2479_v27 = vsel %vm497_vm4, %v2465_v25, 0.0  ;;  %v3141_v30 = vrot.slane %v3140_v58, 1  ;;  %vm4341_vm4 = vcmask 24576   ;;  %v4339_v5 = vadd.f32 %v4338_v63, %v4337_v10 }
 0x3d5   : > { %v3622_v61 = vadd.f32 %v3621_v19, %v3620_v42  ;;  %v3651_v50 = vrot.slane %v3650_v2, 4  ;;  %v2451_v54 = vrot.slane %v2450_v46, 4  ;;  %v2480_v35 = vadd.f32 %v2479_v27, %v2478_v34 }
 0x3d6   : > { %v3171_v26 = vrot.slane %v3170_v51, 1  ;;  %v3142_v53 = vadd.f32 %v3141_v30, %v3140_v58 }
 0x3d7   : > { %v3623_v59 = vrot.slane %v3622_v61, 2  ;;  %v3652_v40 = vadd.f32 %v3651_v50, %v3650_v2  ;;  %v2452_v24 = vadd.f32 %v2451_v54, %v2450_v46  ;;  %v2481_v17 = vrot.slane %v2480_v35, 4 }
 0x3d8   : > { %v3172_v55 = vadd.f32 %v3171_v26, %v3170_v51 }
 0x3d9   : > { %v3653_v18 = vrot.slane %v3652_v40, 2  ;;  %v3624_v38 = vadd.f32 %v3623_v59, %v3622_v61  ;;  %v2453_v37 = vrot.slane %v2452_v24, 2  ;;  %v2482_v0 = vadd.f32 %v2481_v17, %v2480_v35 }
 0x3db   : > { %v3654_v11 = vadd.f32 %v3653_v18, %v3652_v40  ;;  %v2454_v33 = vadd.f32 %v2453_v37, %v2452_v24  ;;  %v2483_v3 = vrot.slane %v2482_v0, 2  ;;  %v3625_v47 = vrot.slane %v3624_v38, 1 }
 0x3dd   : > { %v2455_v16 = vrot.slane %v2454_v33, 1  ;;  %v2484_v6 = vadd.f32 %v2483_v3, %v2482_v0  ;;  %v3655_v14 = vrot.slane %v3654_v11, 1  ;;  %v3626_v43 = vadd.f32 %v3625_v47, %v3624_v38 }
 0x3df   : > { %v2456_v28 = vadd.f32 %v2455_v16, %v2454_v33  ;;  %v2485_v32 = vrot.slane %v2484_v6, 1  ;;  %v3656_v48 = vadd.f32 %v3655_v14, %v3654_v11 }
 0x3e1   : > { %v2486_v13 = vadd.f32 %v2485_v32, %v2484_v6  ;;  %v3143_v29 = vadd.f32 %v3142_v53, %v2456_v28 }
 0x3e3   : > { %v3173_v8 = vadd.f32 %v3172_v55, %v2486_v13  ;;  %v3627_v1 = vadd.f32 %v3626_v43, %v3143_v29 }
 0x3e5   : > { %v3657_v23 = vadd.f32 %v3656_v48, %v3173_v8  ;;  %v4310_v31 = vadd.f32 %v4309_v4, %v3627_v1 }
 0x3e7   : > { %v4340_v56 = vadd.f32 %v4339_v5, %v3657_v23  ;;  %4342 = vst.msk [vmem:[%s238_s11] sm:$0x1] %vm4341_vm4, %v4310_v31 }
 0x3e9   : > { %4343 = vst.msk [vmem:[%s241_s14] sm:$0x1] %vm4341_vm4, %v4340_v56 }
 0x3ea PF: > { %s16_s18 = sadd.s32 1, %s4749_s18  }
 0x3eb   : > { %p13_p4 = scmp.ge.s32.totalorder %s16_s18, 4  }
 0x3ed   :  { %15 = sbr.rel (!%p13_p4) target bundleno = 1 (0x1), region = 101 }

</bundles_post_ra>
